<compile_context>
chip_gen: v7x
topology: tpu7x:2x2x1
jax: 0.10.0
libtpu: 0.0.40
codegen_flags: <defaults>
</compile_context>

<pallas_src>
import jax
import jax.numpy as jnp
from jax.experimental import pallas as pl
from jax.experimental.pallas import tpu as pltpu


# --------------------------------------------------------------------------
# Kernels
# --------------------------------------------------------------------------
def _layers12_kernel(x_ref, w1_ref, b1_ref, w2_ref, b2_ref, h2_ref):
    """Linear(D->1024)+ReLU, Linear(1024->2048)+ReLU.  h2 written as bf16.

    w2 arrives in bf16; h1 is cast to bf16 for the second MXU pass while
    accumulation stays f32 (bias-add / ReLU in f32).
    """
    h1 = jnp.dot(x_ref[...], w1_ref[...], preferred_element_type=jnp.float32)
    h1 = jnp.maximum(h1 + b1_ref[...], 0.0)
    h2 = jnp.dot(h1.astype(w2_ref.dtype), w2_ref[...],
                 preferred_element_type=jnp.float32)
    h2 = jnp.maximum(h2 + b2_ref[...], 0.0)
    h2_ref[...] = h2.astype(h2_ref.dtype)


def _layer3_kernel(h2_ref, w3_ref, b3_ref, o_ref):
    """One N-tile of Linear(2048 -> 3*S*S) + Tanh.

    h2 is resident (B, 2048) bf16; w3 tile (2048, TN) bf16 streamed from HBM;
    f32 accumulation on the MXU, f32 bias-add + tanh epilogue.
    """
    h3 = jnp.dot(h2_ref[...], w3_ref[...], preferred_element_type=jnp.float32)
    o_ref[...] = jnp.tanh(h3 + b3_ref[...]).astype(o_ref.dtype)


# --------------------------------------------------------------------------
# Generation-aware sizing
# --------------------------------------------------------------------------
def _stage2_sizing(batch, h2_dim, out_dim_padded, requested_tn=None):
    """Pick (TN, vmem_limit_bytes) for the stage-2 weight stream.

    TN is a multiple of 128 that divides out_dim_padded, sized so the
    double-buffered bf16 w3 tile + f32 output tile fit the per-generation
    VMEM budget (128 MiB parts -> big tiles; 64 MiB v7x -> hard cap 2688).
    """
    vmem_phys = 64 << 20                      # conservative default (v7x)
    try:
        info = pltpu.get_tpu_info()
        vmem_phys = int(getattr(info, "vmem_capacity_bytes", vmem_phys))
    except Exception:
        pass

    if vmem_phys >= (128 << 20):              # v5e / v6e class
        vmem_limit = 96 << 20
        tn_cap = 7168
    else:                                     # v7x class (64 MiB physical)
        vmem_limit = min(vmem_phys * 3 // 4, 48 << 20)
        tn_cap = 2688

    # Per-column VMEM bytes in stage 2 (double-buffered):
    #   w3 tile bf16: 2 * h2_dim * 2 ; output f32: 2 * B * 4 ; bias f32: 2 * 4
    bytes_per_col = 2 * h2_dim * 2 + 2 * batch * 4 + 2 * 4
    budget = vmem_limit - (2 << 20)           # headroom for h2 + internal scratch
    tn_max = max(128, min(tn_cap, budget // bytes_per_col))

    if requested_tn is not None:
        tn = int(requested_tn)
        if tn % 128 != 0 or out_dim_padded % tn != 0 or tn > tn_max:
            raise ValueError(
                f"requested tn={tn} must be a multiple of 128, divide "
                f"{out_dim_padded}, and be <= {tn_max}")
        return tn, vmem_limit

    tn = 128
    for k in range(out_dim_padded // 128, 0, -1):
        cand = 128 * k
        if cand <= tn_max and out_dim_padded % cand == 0:
            tn = cand
            break
    return tn, vmem_limit


def _pad_to_128(n):
    return ((n + 127) // 128) * 128


# --------------------------------------------------------------------------
# Wrapper
# --------------------------------------------------------------------------
def fully_connected_decoder(x, params, image_size, tn=None):
    """x: (B, D) float32.  Returns (B, 3, image_size, image_size) float32.

    params = (w1 f32, b1 f32, w2 bf16, b2 f32, w3 bf16, b3 f32) with w3/b3
    column-padded to a multiple of 128 (see init_params).  w3 must already be
    bf16 -- no per-call cast is performed.
    """
    w1, b1, w2, b2, w3, b3 = params
    B, _ = x.shape
    h2_dim = w2.shape[1]                       # 2048
    out_dim = 3 * image_size * image_size
    out_dim_padded = _pad_to_128(out_dim)

    if w3.dtype != jnp.bfloat16:
        raise ValueError(
            "w3 must be stored in bf16 (pre-cast at load time); got "
            f"{w3.dtype}.  A per-call astype would dominate wall time.")
    if w3.shape != (h2_dim, out_dim_padded):
        raise ValueError(
            f"w3 must be pre-padded to ({h2_dim}, {out_dim_padded}); got "
            f"{w3.shape}.  Use init_params / pad columns with zeros.")
    if b3.shape != (1, out_dim_padded):
        raise ValueError(f"b3 must be (1, {out_dim_padded}); got {b3.shape}")

    tn, vmem_limit = _stage2_sizing(B, h2_dim, out_dim_padded, tn)

    # ---- Stage 1: layers 1 + 2 (tiny, fully VMEM-resident) ----------------
    h2 = pl.pallas_call(
        _layers12_kernel,
        out_shape=jax.ShapeDtypeStruct((B, h2_dim), jnp.bfloat16),
        in_specs=[
            pl.BlockSpec(memory_space=pltpu.VMEM),  # x  (B, D)      f32
            pl.BlockSpec(memory_space=pltpu.VMEM),  # w1 (D, 1024)   f32
            pl.BlockSpec(memory_space=pltpu.VMEM),  # b1 (1, 1024)   f32
            pl.BlockSpec(memory_space=pltpu.VMEM),  # w2 (1024,2048) bf16
            pl.BlockSpec(memory_space=pltpu.VMEM),  # b2 (1, 2048)   f32
        ],
        out_specs=pl.BlockSpec(memory_space=pltpu.VMEM),
        compiler_params=pltpu.CompilerParams(vmem_limit_bytes=vmem_limit),
    )(x, w1, b1, w2, b2)

    # ---- Stage 2: layer 3, weight-streaming over the output dimension -----
    grid = (out_dim_padded // tn,)

    flat = pl.pallas_call(
        _layer3_kernel,
        out_shape=jax.ShapeDtypeStruct((B, out_dim_padded), jnp.float32),
        grid_spec=pltpu.PrefetchScalarGridSpec(
            num_scalar_prefetch=0,
            grid=grid,
            in_specs=[
                pl.BlockSpec((B, h2_dim), lambda j: (0, 0)),   # h2 resident
                pl.BlockSpec((h2_dim, tn), lambda j: (0, j)),  # w3 tile (streamed)
                pl.BlockSpec((1, tn), lambda j: (0, j)),       # b3 tile
            ],
            out_specs=pl.BlockSpec((B, tn), lambda j: (0, j)),
        ),
        compiler_params=pltpu.CompilerParams(
            # Independent per-tile work -> both v7x TensorCores stream half of w3.
            dimension_semantics=("parallel",),
            vmem_limit_bytes=vmem_limit,
        ),
    )(h2, w3, b3)

    if out_dim_padded != out_dim:
        flat = flat[:, :out_dim]
    # Glue: reshape flat slab to NCHW, same as .view(-1, 3, S, S) in PyTorch.
    return flat.reshape(-1, 3, image_size, image_size)


# --------------------------------------------------------------------------
# Params / reference
# --------------------------------------------------------------------------
def init_params(key, text_embedding_dim, image_size):
    """nn.Linear-style U(-1/sqrt(fan_in), 1/sqrt(fan_in)) init.

    Weights stored (in, out) so kernels compute x @ W + b (== PyTorch
    x @ W.T + b).  w2 and the big layer-3 weight w3 are stored in bf16 at
    init time (the stage-2 kernel is weight-bandwidth bound; storing bf16
    halves HBM traffic and avoids any per-call cast).  w3/b3 columns are
    zero-padded to a multiple of 128 so every stage-2 tile is lane-dense.
    """
    out_dim = 3 * image_size * image_size
    out_dim_padded = _pad_to_128(out_dim)
    dims = [(text_embedding_dim, 1024), (1024, 2048), (2048, out_dim)]
    params = []
    for i, (fan_in, fan_out) in enumerate(dims):
        key, kw, kb = jax.random.split(key, 3)
        bound = 1.0 / jnp.sqrt(jnp.float32(fan_in))
        w = jax.random.uniform(kw, (fan_in, fan_out), jnp.float32, -bound, bound)
        b = jax.random.uniform(kb, (1, fan_out), jnp.float32, -bound, bound)
        if i == 1:
            w = w.astype(jnp.bfloat16)
        if i == 2:
            pad = out_dim_padded - fan_out
            if pad:
                w = jnp.pad(w, ((0, 0), (0, pad)))
                b = jnp.pad(b, ((0, 0), (0, pad)))
            w = w.astype(jnp.bfloat16)
        params += [w, b]
    return tuple(params)


def _reference(x, params, out_dim):
    """Plain-JAX reference matching the kernel's numeric recipe
    (f32 layer 1, bf16 operands + f32 accumulation for layers 2/3)."""
    w1, b1, w2, b2, w3, b3 = params
    h1 = jnp.maximum(x @ w1 + b1, 0.0)
    h2 = jnp.dot(h1.astype(jnp.bfloat16), w2, preferred_element_type=jnp.float32)
    h2 = jnp.maximum(h2 + b2, 0.0).astype(jnp.bfloat16)
    h3 = jnp.dot(h2, w3, preferred_element_type=jnp.float32) + b3
    return jnp.tanh(h3)[:, :out_dim]


def _reference_f32(x, params, out_dim):
    """Full-f32 reference (original PyTorch semantics) for a loose sanity check."""
    w1, b1, w2, b2, w3, b3 = params
    h1 = jnp.maximum(x @ w1 + b1, 0.0)
    h2 = jnp.maximum(h1 @ w2.astype(jnp.float32) + b2, 0.0)
    return jnp.tanh(h2 @ w3.astype(jnp.float32) + b3)[:, :out_dim]


# --------------------------------------------------------------------------
# Demo / test
# --------------------------------------------------------------------------
if __name__ == "__main__":
    # Small shapes consistent with the module: batch=2, text_embedding_dim=32,
    # image_size=16 (hidden widths 1024 / 2048 are fixed by the module).
    # tn=256 -> 3-step grid so the weight-streaming pipeline is exercised.
    B = 2
    TEXT_EMBEDDING_DIM = 32
    IMAGE_SIZE = 16
    OUT_DIM = 3 * IMAGE_SIZE * IMAGE_SIZE

    key = jax.random.PRNGKey(0)
    key, kx = jax.random.split(key)
    x = jax.random.normal(kx, (B, TEXT_EMBEDDING_DIM), jnp.float32)
    params = init_params(key, TEXT_EMBEDDING_DIM, IMAGE_SIZE)

    out = fully_connected_decoder(x, params, IMAGE_SIZE, tn=256)
    out = jax.block_until_ready(out)

    assert out.shape == (B, 3, IMAGE_SIZE, IMAGE_SIZE), out.shape

    # Tight check against a reference using the same bf16 recipe.
    ref = _reference(x, params, OUT_DIM).reshape(-1, 3, IMAGE_SIZE, IMAGE_SIZE)
    assert jnp.allclose(out, ref, atol=2e-3, rtol=2e-3), \
        float(jnp.abs(out - ref).max())

    # Loose check against the full-f32 PyTorch-equivalent path (bf16 weight
    # quantization bounds the deviation).
    ref32 = _reference_f32(x, params, OUT_DIM).reshape(-1, 3, IMAGE_SIZE, IMAGE_SIZE)
    assert jnp.allclose(out, ref32, atol=5e-2), float(jnp.abs(out - ref32).max())

    # Also exercise the auto-picked TN path (single full-width 768 tile here).
    out2 = jax.block_until_ready(fully_connected_decoder(x, params, IMAGE_SIZE))
    assert jnp.allclose(out2, ref.astype(out2.dtype), atol=2e-3, rtol=2e-3)

    print("KERNEL_OK")
</pallas_src>

<mosaic_0001>
module attributes {stable_mosaic.version = 11 : i64} {
  func.func @_layers12_kernel(%arg0: memref<2x32xf32, #tpu.memory_space<vmem>>, %arg1: memref<32x1024xf32, #tpu.memory_space<vmem>>, %arg2: memref<1x1024xf32, #tpu.memory_space<vmem>>, %arg3: memref<1024x2048xbf16, #tpu.memory_space<vmem>>, %arg4: memref<1x2048xf32, #tpu.memory_space<vmem>>, %arg5: memref<2x2048xbf16, #tpu.memory_space<vmem>>) attributes {dimension_semantics = [], scalar_prefetch = 0 : i64, scratch_operands = 0 : i64, tpu.core_type = #tpu.core_type<tc>} {
    %c0 = arith.constant 0 : index
    %c0_0 = arith.constant 0 : index
    %0 = vector.load %arg0[%c0, %c0_0] : memref<2x32xf32, #tpu.memory_space<vmem>>, vector<2x32xf32>
    %c0_1 = arith.constant 0 : index
    %c0_2 = arith.constant 0 : index
    %1 = vector.load %arg1[%c0_1, %c0_2] : memref<32x1024xf32, #tpu.memory_space<vmem>>, vector<32x1024xf32>
    %cst = arith.constant dense<0.000000e+00> : vector<2x1024xf32>
    %2 = tpu.matmul %0, %1, %cst {dimension_numbers = #tpu.dot_dimension_numbers<[1], [0], [0], [1], [0, 0, 1, 1], [], []>} : vector<2x32xf32>, vector<32x1024xf32>, vector<2x1024xf32> -> vector<2x1024xf32>
    %c0_3 = arith.constant 0 : index
    %c0_4 = arith.constant 0 : index
    %3 = vector.load %arg2[%c0_3, %c0_4] : memref<1x1024xf32, #tpu.memory_space<vmem>>, vector<1x1024xf32>
    %4 = vector.broadcast %3 : vector<1x1024xf32> to vector<2x1024xf32>
    %5 = arith.addf %2, %4 : vector<2x1024xf32>
    %cst_5 = arith.constant 0.000000e+00 : f32
    %6 = vector.broadcast %cst_5 : f32 to vector<2x1024xf32>
    %7 = arith.maximumf %5, %6 : vector<2x1024xf32>
    %8 = arith.truncf %7 : vector<2x1024xf32> to vector<2x1024xbf16>
    %c0_6 = arith.constant 0 : index
    %c0_7 = arith.constant 0 : index
    %9 = vector.load %arg3[%c0_6, %c0_7] : memref<1024x2048xbf16, #tpu.memory_space<vmem>>, vector<1024x2048xbf16>
    %cst_8 = arith.constant dense<0.000000e+00> : vector<2x2048xf32>
    %10 = tpu.matmul %8, %9, %cst_8 {dimension_numbers = #tpu.dot_dimension_numbers<[1], [0], [0], [1], [0, 0, 1, 1], [], []>} : vector<2x1024xbf16>, vector<1024x2048xbf16>, vector<2x2048xf32> -> vector<2x2048xf32>
    %c0_9 = arith.constant 0 : index
    %c0_10 = arith.constant 0 : index
    %11 = vector.load %arg4[%c0_9, %c0_10] : memref<1x2048xf32, #tpu.memory_space<vmem>>, vector<1x2048xf32>
    %12 = vector.broadcast %11 : vector<1x2048xf32> to vector<2x2048xf32>
    %13 = arith.addf %10, %12 : vector<2x2048xf32>
    %cst_11 = arith.constant 0.000000e+00 : f32
    %14 = vector.broadcast %cst_11 : f32 to vector<2x2048xf32>
    %15 = arith.maximumf %13, %14 : vector<2x2048xf32>
    %16 = arith.truncf %15 : vector<2x2048xf32> to vector<2x2048xbf16>
    %c0_12 = arith.constant 0 : index
    %c0_13 = arith.constant 0 : index
    %17 = vector.load %arg5[%c0_12, %c0_13] : memref<2x2048xbf16, #tpu.memory_space<vmem>>, vector<2x2048xbf16>
    tpu.vector_store %arg5[%c0_12, %c0_13], %16 {strides = array<i32>} : memref<2x2048xbf16, #tpu.memory_space<vmem>>, vector<2x2048xbf16>,
    return
  }
}

</mosaic_0001>

<bundles_post_ra>
// kernel: tpu_custom_call.1
= control target key start
LH: loop header
LB: loop body
LE: loop exit
PB: predicated region body
PF: predicated region fallthrough
CT: control target
= control target key end

     0   :  { %10 = vsyncpa [#allocation3], 0  ;;  %s9812_s0 = inlined_call_operand.hbm [shape: f32[2,32], index: 0, kind: input, shape index: {}]   ;;  %s9813_s1 = inlined_call_operand.hbm [shape: f32[32,1024], index: 1, kind: input, shape index: {}]   ;;  %s9814_s2 = inlined_call_operand.hbm [shape: f32[1,1024], index: 2, kind: input, shape index: {}]   ;;  %s9815_s3 = inlined_call_operand.hbm [shape: bf16[1024,2048], index: 3, kind: input, shape index: {}]   ;;  %s9816_s4 = inlined_call_operand.hbm [shape: f32[1,2048], index: 4, kind: input, shape index: {}]   ;;  %s9817_s5 = inlined_call_operand.hbm [shape: bf16[2,2048], index: 5, kind: output, shape index: {}]  }
   0x1   :  { %11 = vsyncpa [#allocation6], 0 }
   0x2   :  { %12 = vsyncpa [#allocation9], 0 }
   0x3   :  { %13 = vsyncpa [#allocation4], 0  ;;  %s9501_s18 = smov [#allocation5]   ;;  %s9361_s22 = scalar_lea.hbm %s9813_s1, 4096 }
   0x4   :  { %s29_s19 = sshll.u32 %s9501_s18, 4  ;;  %p9362_p0 = scmp.ne.s32.totalorder %s9813_s1, %s9361_s22  ;;  %s30_s19 = int_to_ptr.vmem [resolvable:$true] %s29_s19 }
   0x5   :  { %p9365_p1 = scmp.lt.u32.totalorder %s9361_s22, %s9813_s1 }
   0x7   :  { %p9367_p2 = pnand %p9365_p1, %p9362_p0 }
   0x9   :  { %9370 = shalt.err (!%p9367_p2)
}
   0xa   :  { %s9371_s27 = scalar_lea.vmem %s30_s19, 4096  ;;  %p9376_p4 = scmp.lt.s32.totalorder %s30_s19, %s30_s19 }
   0xb   :  { %p9372_p3 = scmp.ne.s32.totalorder %s30_s19, %s9371_s27  ;;  %p9377_p5 = scmp.lt.s32.totalorder %s9371_s27, %s9371_s27 }
   0xd   :  { %p9378_p6 = por %p9377_p5, %p9376_p4 }
   0xf   :  { %p9379_p7 = pnand %p9378_p6, %p9372_p3 }
  0x11   :  { %9382 = shalt.err (!%p9379_p7)
}
  0x12   :  { %s9502_s28 = smov 1024   ;;  %s9503_s29 = smov 64  }
  0x13   :  { %35 = dma.hbm_to_vmem [thread:$0]  %s9813_s1, 4096, %s30_s19, [#allocation6], %s9502_s28, %s9502_s28, %s9503_s29  }
  0x14   :  { %s9504_s7 = smov [#allocation8]   ;;  %s9505_s9 = smov [#allocation2]  }
  0x15   :  { %s51_s8 = sshll.u32 %s9504_s7, 4  ;;  %s20_s10 = sshll.u32 %s9505_s9, 4  ;;  %s52_s8 = int_to_ptr.vmem [resolvable:$true] %s51_s8  ;;  %s21_s10 = int_to_ptr.vmem [resolvable:$true] %s20_s10 }
  0x16   :  { %s9383_s13 = scalar_lea.hbm %s9815_s3, 131072 }
  0x17   :  { %p9384_p8 = scmp.ne.s32.totalorder %s9815_s3, %s9383_s13  ;;  %p9387_p9 = scmp.lt.u32.totalorder %s9383_s13, %s9815_s3 }
  0x19   :  { %p9389_p10 = pnand %p9387_p9, %p9384_p8 }
  0x1b   :  { %9392 = shalt.err (!%p9389_p10)
}
  0x1c   :  { %s9393_s1 = scalar_lea.vmem %s52_s8, 131072  ;;  %p9398_p12 = scmp.lt.s32.totalorder %s52_s8, %s52_s8 }
  0x1d   :  { %p9394_p11 = scmp.ne.s32.totalorder %s52_s8, %s9393_s1  ;;  %p9399_p13 = scmp.lt.s32.totalorder %s9393_s1, %s9393_s1 }
  0x1f   :  { %p9400_p0 = por %p9399_p13, %p9398_p12 }
  0x21   :  { %p9401_p1 = pnand %p9400_p0, %p9394_p11 }
  0x23   :  { %9404 = shalt.err (!%p9401_p1)
}
  0x24   :  { %57 = dma.hbm_to_vmem [thread:$0]  %s9815_s3, 131072, %s52_s8, [#allocation9], %s9502_s28, %s9502_s28, %s9503_s29  }
  0x25   :  { %s9405_s22 = scalar_lea.hbm %s9812_s0, 32 }
  0x26   :  { %p9406_p2 = scmp.ne.s32.totalorder %s9812_s0, %s9405_s22  ;;  %p9409_p3 = scmp.lt.u32.totalorder %s9405_s22, %s9812_s0 }
  0x28   :  { %p9411_p4 = pnand %p9409_p3, %p9406_p2 }
  0x2a   :  { %9414 = shalt.err (!%p9411_p4)
}
  0x2b   :  { %s9415_s27 = scalar_lea.vmem %s21_s10, 32  ;;  %p9420_p6 = scmp.lt.s32.totalorder %s21_s10, %s21_s10 }
  0x2c   :  { %p9416_p5 = scmp.ne.s32.totalorder %s21_s10, %s9415_s27  ;;  %p9421_p7 = scmp.lt.s32.totalorder %s9415_s27, %s9415_s27 }
  0x2e   :  { %p9422_p8 = por %p9421_p7, %p9420_p6 }
  0x30   :  { %p9423_p9 = pnand %p9422_p8, %p9416_p5 }
  0x32   :  { %9426 = shalt.err (!%p9423_p9)
}
  0x33   :  { %23 = dma.hbm_to_vmem [thread:$0]  %s9812_s0, 32, %s21_s10, [#allocation3]  }
  0x34   :  { %s9506_s29 = smov [#allocation7]   ;;  %s9507_s6 = smov [#allocation10]  }
  0x35   :  { %s42_s30 = sshll.u32 %s9506_s29, 4  ;;  %s64_s7 = sshll.u32 %s9507_s6, 4  ;;  %s43_s30 = int_to_ptr.vmem [resolvable:$true] %s42_s30  ;;  %s65_s7 = int_to_ptr.vmem [resolvable:$true] %s64_s7 }
  0x36   :  { %s9427_s11 = scalar_lea.hbm %s9814_s2, 128 }
  0x37   :  { %p9428_p10 = scmp.ne.s32.totalorder %s9814_s2, %s9427_s11  ;;  %p9431_p11 = scmp.lt.u32.totalorder %s9427_s11, %s9814_s2 }
  0x39   :  { %p9433_p12 = pnand %p9431_p11, %p9428_p10 }
  0x3b   :  { %9436 = shalt.err (!%p9433_p12)
}
  0x3c   :  { %s9437_s0 = scalar_lea.vmem %s43_s30, 128  ;;  %p9442_p0 = scmp.lt.s32.totalorder %s43_s30, %s43_s30 }
  0x3d   :  { %p9438_p13 = scmp.ne.s32.totalorder %s43_s30, %s9437_s0  ;;  %p9443_p1 = scmp.lt.s32.totalorder %s9437_s0, %s9437_s0 }
  0x3f   :  { %p9444_p2 = por %p9443_p1, %p9442_p0 }
  0x41   :  { %p9445_p3 = pnand %p9444_p2, %p9438_p13 }
  0x43   :  { %9448 = shalt.err (!%p9445_p3)
}
  0x44   :  { %45 = dma.hbm_to_vmem [thread:$0]  %s9814_s2, 128, %s43_s30, [#allocation6]  }
  0x45   :  { %s9449_s18 = scalar_lea.hbm %s9816_s4, 256 }
  0x46   :  { %p9450_p4 = scmp.ne.s32.totalorder %s9816_s4, %s9449_s18  ;;  %p9453_p5 = scmp.lt.u32.totalorder %s9449_s18, %s9816_s4 }
  0x48   :  { %p9455_p6 = pnand %p9453_p5, %p9450_p4 }
  0x4a   :  { %9458 = shalt.err (!%p9455_p6)
}
  0x4b   :  { %s9459_s23 = scalar_lea.vmem %s65_s7, 256  ;;  %p9464_p8 = scmp.lt.s32.totalorder %s65_s7, %s65_s7 }
  0x4c   :  { %p9460_p7 = scmp.ne.s32.totalorder %s65_s7, %s9459_s23  ;;  %p9465_p9 = scmp.lt.s32.totalorder %s9459_s23, %s9459_s23 }
  0x4e   :  { %p9466_p10 = por %p9465_p9, %p9464_p8 }
  0x50   :  { %p9467_p11 = pnand %p9466_p10, %p9460_p7 }
  0x52   :  { %9470 = shalt.err (!%p9467_p11)
}
  0x53   :  { %67 = dma.hbm_to_vmem [thread:$0]  %s9816_s4, 256, %s65_s7, [#allocation9]  }
  0x54   :  { %9493 = dma.done.wait [#allocation3], 32  }
  0x55   :  { %9494 = vsyncadd [#allocation3], 4294967264 }
  0x56   :  { %9495 = dma.done.wait [#allocation6], 4224  }
  0x57   :  { %9496 = vsyncadd [#allocation6], 4294963072 }
  0x58   :  { %9497 = dma.done.wait [#allocation9], 131328  }
  0x59   :  { %9498 = vsyncadd [#allocation9], 4294835968  ;;  %v9508_v0 = vmov 0.0   ;;  %v85_v1 = vld [vmem:[#allocation5 + $0x8] sm:$0xff]  ;;  %v84_v3 = vld [vmem:[#allocation5] sm:$0xff]  ;;  %vm158_vm0 = vcmask 261120  }
  0x5a   :  { %226 = vmatprep.mubr.f32.mxu0 %v9508_v0  ;;  %297 = vmatprep.mubr.f32.mxu1 %v9508_v0  ;;  %v93_v2 = vld [vmem:[#allocation5 + $0x48] sm:$0xff]  ;;  %v92_v5 = vld [vmem:[#allocation5 + $0x40] sm:$0xff]  ;;  %v87_v12 = vld [vmem:[#allocation5 + $0x18] sm:$0xff]  ;;  %s9510_s4 = smov [#allocation11]  }
  0x5b   :  { %v9205_v4 = vpack.c.bf16 %v93_v2, %v85_v1  ;;  %v101_v6 = vld [vmem:[#allocation5 + $0x88] sm:$0xff]  ;;  %v9207_v8 = vpack.c.bf16 %v92_v5, %v84_v3  ;;  %v100_v10 = vld [vmem:[#allocation5 + $0x80] sm:$0xff]  ;;  %v95_v13 = vld [vmem:[#allocation5 + $0x58] sm:$0xff]  ;;  %s8158_s25 = sshll.u32 %s9510_s4, 4  ;;  %s8159_s25 = int_to_ptr.vmem [resolvable:$true] %s8158_s25 }
  0x5c   :  { %v109_v7 = vld [vmem:[#allocation5 + $0xc8] sm:$0xff]  ;;  %v108_v11 = vld [vmem:[#allocation5 + $0xc0] sm:$0xff]  ;;  %v86_v14 = vld [vmem:[#allocation5 + $0x10] sm:$0xff]  ;;  %v9213_v16 = vpack.c.bf16 %v95_v13, %v87_v12  ;;  %s9471_s26 = scalar_lea.vmem %s8159_s25, 256  ;;  %p9476_p13 = scmp.lt.s32.totalorder %s8159_s25, %s8159_s25 }
  0x5d   :  { %v9209_v9 = vpack.c.bf16 %v109_v7, %v101_v6  ;;  %9206 = vmatprep.subr.bf16.mxu0 %v9205_v4  ;;  %v9211_v15 = vpack.c.bf16 %v108_v11, %v100_v10  ;;  %v94_v17 = vld [vmem:[#allocation5 + $0x50] sm:$0xff]  ;;  %v103_v18 = vld [vmem:[#allocation5 + $0x98] sm:$0xff]  ;;  %v89_v24 = vld [vmem:[#allocation5 + $0x28] sm:$0xff]  ;;  %p9472_p12 = scmp.ne.s32.totalorder %s8159_s25, %s9471_s26  ;;  %p9477_p0 = scmp.lt.s32.totalorder %s9471_s26, %s9471_s26 }
  0x5e   :  { %9208 = vmatpush1.bf16.msra.mxu0 %v9207_v8  ;;  %v111_v19 = vld [vmem:[#allocation5 + $0xd8] sm:$0xff]  ;;  %v9215_v20 = vpack.c.bf16 %v94_v17, %v86_v14  ;;  %v102_v22 = vld [vmem:[#allocation5 + $0x90] sm:$0xff]  ;;  %9214 = vmatprep.subr.bf16.mxu1 %v9213_v16  ;;  %v97_v26 = vld [vmem:[#allocation5 + $0x68] sm:$0xff] }
  0x5f   :  { %9210 = vmatprep.subr.bf16.mxu0 %v9209_v9  ;;  %v9217_v21 = vpack.c.bf16 %v111_v19, %v103_v18  ;;  %v110_v23 = vld [vmem:[#allocation5 + $0xd0] sm:$0xff]  ;;  %v9603_v25 = vld [vmem:[#allocation2] sm:$0x3]  ;;  %v88_v27 = vld [vmem:[#allocation5 + $0x20] sm:$0xff]  ;;  %v9221_v30 = vpack.c.bf16 %v97_v26, %v89_v24  ;;  %p9478_p1 = por %p9477_p0, %p9476_p13 }
  0x60   :  { %v96_v28 = vld [vmem:[#allocation5 + $0x60] sm:$0xff]  ;;  %9216 = vmatpush1.bf16.msra.mxu1 %v9215_v20  ;;  %v9219_v29 = vpack.c.bf16 %v110_v23, %v102_v22  ;;  %v105_v31 = vld [vmem:[#allocation5 + $0xa8] sm:$0xff]  ;;  %v91_v36 = vld [vmem:[#allocation5 + $0x38] sm:$0xff] }
  0x61   :  { %v113_v32 = vld [vmem:[#allocation5 + $0xe8] sm:$0xff]  ;;  %v104_v33 = vld [vmem:[#allocation5 + $0xa0] sm:$0xff]  ;;  %9218 = vmatprep.subr.bf16.mxu1 %v9217_v21  ;;  %v9223_v34 = vpack.c.bf16 %v96_v28, %v88_v27  ;;  %v99_v37 = vld [vmem:[#allocation5 + $0x78] sm:$0xff]  ;;  %p9479_p2 = pnand %p9478_p1, %p9472_p12 }
  0x62   :  { %9212 = vmatpush1.bf16.msra.mxu0 %v9211_v15  ;;  %v112_v35 = vld [vmem:[#allocation5 + $0xe0] sm:$0xff]  ;;  %v9225_v38 = vpack.c.bf16 %v113_v32, %v105_v31  ;;  %v9229_v39 = vpack.c.bf16 %v99_v37, %v91_v36  ;;  %v90_v40 = vld [vmem:[#allocation5 + $0x30] sm:$0xff]  ;;  %v107_v42 = vld [vmem:[#allocation5 + $0xb8] sm:$0xff] }
  0x63   :  { %9222 = vmatprep.subr.bf16.mxu0 %v9221_v30  ;;  %v98_v41 = vld [vmem:[#allocation5 + $0x70] sm:$0xff]  ;;  %v115_v43 = vld [vmem:[#allocation5 + $0xf8] sm:$0xff]  ;;  %v462_v45 = vld [vmem:[#allocation8] sm:$0xff]  ;;  %v9227_v47 = vpack.c.bf16 %v112_v35, %v104_v33 }
  0x64   :  { %9220 = vmatpush1.bf16.msra.mxu1 %v9219_v29  ;;  %v9231_v44 = vpack.c.bf16 %v98_v41, %v90_v40  ;;  %v470_v46 = vld [vmem:[#allocation8 + $0x40] sm:$0xff]  ;;  %v9233_v48 = vpack.c.bf16 %v115_v43, %v107_v42  ;;  %v106_v49 = vld [vmem:[#allocation5 + $0xb0] sm:$0xff] }
  0x65   :  { %8169 = vmatmul.mubr.msk.f32.vlgmr.msra.gmra.mrb[0].mxu0 %vm158_vm0, %v9603_v25  ;;  %v114_v50 = vld [vmem:[#allocation5 + $0xf0] sm:$0xff]  ;;  %9230 = vmatprep.subr.bf16.mxu1 %v9229_v39  ;;  %v8174_v51 = vcombine.high %v462_v45, %v470_v46  ;;  %v478_v54 = vld [vmem:[#allocation8 + $0x80] sm:$0xff]  ;;  %v8173_v57 = vcombine.low %v462_v45, %v470_v46 }
  0x66   :  { %9224 = vmatpush1.bf16.msra.mxu0 %v9223_v34  ;;  %368 = vmatprep.mubr.f32.mxu0 %v9508_v0  ;;  %v463_v52 = vld [vmem:[#allocation8 + $0x8] sm:$0xff]  ;;  %v486_v55 = vld [vmem:[#allocation8 + $0xc0] sm:$0xff]  ;;  %v9235_v56 = vpack.c.bf16 %v114_v50, %v106_v49 }
  0x67   :  { %9226 = vmatprep.subr.bf16.mxu0 %v9225_v38  ;;  %v471_v53 = vld [vmem:[#allocation8 + $0x48] sm:$0xff]  ;;  %8170 = vmatmul.mubr.msk.f32.vlgmr.msra.gmra.mrb[0].mxu1 %vm158_vm0, %v9603_v25  ;;  %v8190_v59 = vcombine.high %v478_v54, %v486_v55  ;;  %v494_v62 = vld [vmem:[#allocation8 + $0x100] sm:$0xff]  ;;  %v8189_v2 = vcombine.low %v478_v54, %v486_v55 }
  0x68   :  { %9232 = vmatpush1.bf16.msra.mxu1 %v9231_v44  ;;  %439 = vmatprep.mubr.f32.mxu1 %v9508_v0  ;;  %v8176_v58 = vcombine.high %v463_v52, %v471_v53  ;;  %v479_v60 = vld [vmem:[#allocation8 + $0x88] sm:$0xff]  ;;  %v502_v63 = vld [vmem:[#allocation8 + $0x140] sm:$0xff]  ;;  %v8175_v1 = vcombine.low %v463_v52, %v471_v53 }
  0x69   :  { %9234 = vmatprep.subr.bf16.mxu1 %v9233_v48  ;;  %v487_v61 = vld [vmem:[#allocation8 + $0xc8] sm:$0xff]  ;;  %v8206_v0 = vcombine.high %v494_v62, %v502_v63  ;;  %v510_v6 = vld [vmem:[#allocation8 + $0x180] sm:$0xff]  ;;  %v8205_v9 = vcombine.low %v494_v62, %v502_v63 }
  0x6a   :  { %9228 = vmatpush1.bf16.msra.mxu0 %v9227_v47  ;;  %v8192_v3 = vcombine.high %v479_v60, %v487_v61  ;;  %v495_v4 = vld [vmem:[#allocation8 + $0x108] sm:$0xff]  ;;  %v518_v7 = vld [vmem:[#allocation8 + $0x1c0] sm:$0xff]  ;;  %v8191_v8 = vcombine.low %v479_v60, %v487_v61 }
  0x6b   :  { %6690 = vmatprep.subr.bf16.mxu0 %v8174_v51  ;;  %v503_v5 = vld [vmem:[#allocation8 + $0x148] sm:$0xff]  ;;  %v8222_v11 = vcombine.high %v510_v6, %v518_v7  ;;  %v526_v14 = vld [vmem:[#allocation8 + $0x200] sm:$0xff]  ;;  %v8221_v17 = vcombine.low %v510_v6, %v518_v7 }
  0x6c   :  { %9236 = vmatpush1.bf16.msra.mxu1 %v9235_v56  ;;  %v8208_v10 = vcombine.high %v495_v4, %v503_v5  ;;  %v511_v12 = vld [vmem:[#allocation8 + $0x188] sm:$0xff]  ;;  %v534_v15 = vld [vmem:[#allocation8 + $0x240] sm:$0xff]  ;;  %v8207_v16 = vcombine.low %v495_v4, %v503_v5 }
  0x6d   :  { %8171 = vmatmul.mubr.msk.f32.vlgmr.msra.gmra.mrb[2].mxu0 %vm158_vm0, %v9603_v25  ;;  %6854 = vmatprep.subr.bf16.mxu1 %v8176_v58  ;;  %v519_v13 = vld [vmem:[#allocation8 + $0x1c8] sm:$0xff]  ;;  %v8238_v19 = vcombine.high %v526_v14, %v534_v15  ;;  %v542_v22 = vld [vmem:[#allocation8 + $0x280] sm:$0xff] }
  0x6e   :  { %6691 = vmatpush1.bf16.msra.mxu0 %v8173_v57  ;;  %v8224_v18 = vcombine.high %v511_v12, %v519_v13  ;;  %v527_v20 = vld [vmem:[#allocation8 + $0x208] sm:$0xff]  ;;  %v550_v23 = vld [vmem:[#allocation8 + $0x2c0] sm:$0xff]  ;;  %v8223_v24 = vcombine.low %v511_v12, %v519_v13 }
  0x6f   :  { %6692 = vmatprep.subr.bf16.mxu0 %v8190_v59  ;;  %8172 = vmatmul.mubr.msk.f32.vlgmr.msra.gmra.mrb[2].mxu1 %vm158_vm0, %v9603_v25  ;;  %v535_v21 = vld [vmem:[#allocation8 + $0x248] sm:$0xff]  ;;  %v8237_v25 = vcombine.low %v526_v14, %v534_v15  ;;  %v8254_v27 = vcombine.high %v542_v22, %v550_v23  ;;  %v558_v30 = vld [vmem:[#allocation8 + $0x300] sm:$0xff]  ;;  %v8253_v33 = vcombine.low %v542_v22, %v550_v23 }
  0x70   :  { %6855 = vmatpush1.bf16.msra.mxu1 %v8175_v1  ;;  %v8240_v26 = vcombine.high %v527_v20, %v535_v21  ;;  %v543_v28 = vld [vmem:[#allocation8 + $0x288] sm:$0xff]  ;;  %v566_v31 = vld [vmem:[#allocation8 + $0x340] sm:$0xff]  ;;  %v8239_v32 = vcombine.low %v527_v20, %v535_v21 }
  0x71   :  { %6856 = vmatprep.subr.bf16.mxu1 %v8192_v3  ;;  %v551_v29 = vld [vmem:[#allocation8 + $0x2c8] sm:$0xff]  ;;  %v8270_v35 = vcombine.high %v558_v30, %v566_v31  ;;  %v574_v38 = vld [vmem:[#allocation8 + $0x380] sm:$0xff]  ;;  %v8269_v41 = vcombine.low %v558_v30, %v566_v31 }
  0x72   :  { %6693 = vmatpush1.bf16.msra.mxu0 %v8189_v2  ;;  %v8256_v34 = vcombine.high %v543_v28, %v551_v29  ;;  %v559_v36 = vld [vmem:[#allocation8 + $0x308] sm:$0xff]  ;;  %v582_v39 = vld [vmem:[#allocation8 + $0x3c0] sm:$0xff]  ;;  %v8255_v40 = vcombine.low %v543_v28, %v551_v29 }
  0x73   :  { %6694 = vmatprep.subr.bf16.mxu0 %v8206_v0  ;;  %v567_v37 = vld [vmem:[#allocation8 + $0x348] sm:$0xff]  ;;  %v8286_v43 = vcombine.high %v574_v38, %v582_v39  ;;  %v590_v46 = vld [vmem:[#allocation8 + $0x400] sm:$0xff]  ;;  %v8285_v49 = vcombine.low %v574_v38, %v582_v39 }
  0x74   :  { %6857 = vmatpush1.bf16.msra.mxu1 %v8191_v8  ;;  %v8272_v42 = vcombine.high %v559_v36, %v567_v37  ;;  %v575_v44 = vld [vmem:[#allocation8 + $0x388] sm:$0xff]  ;;  %v598_v47 = vld [vmem:[#allocation8 + $0x440] sm:$0xff]  ;;  %v8271_v48 = vcombine.low %v559_v36, %v567_v37 }
  0x75   :  { %6858 = vmatprep.subr.bf16.mxu1 %v8208_v10  ;;  %v583_v45 = vld [vmem:[#allocation8 + $0x3c8] sm:$0xff]  ;;  %v8302_v51 = vcombine.high %v590_v46, %v598_v47  ;;  %v606_v54 = vld [vmem:[#allocation8 + $0x480] sm:$0xff]  ;;  %v8301_v57 = vcombine.low %v590_v46, %v598_v47 }
  0x76   :  { %6695 = vmatpush1.bf16.msra.mxu0 %v8205_v9  ;;  %v8288_v50 = vcombine.high %v575_v44, %v583_v45  ;;  %v591_v52 = vld [vmem:[#allocation8 + $0x408] sm:$0xff]  ;;  %v614_v55 = vld [vmem:[#allocation8 + $0x4c0] sm:$0xff]  ;;  %v8287_v56 = vcombine.low %v575_v44, %v583_v45 }
  0x77   :  { %6696 = vmatprep.subr.bf16.mxu0 %v8222_v11  ;;  %v599_v53 = vld [vmem:[#allocation8 + $0x448] sm:$0xff]  ;;  %v8318_v59 = vcombine.high %v606_v54, %v614_v55  ;;  %v622_v62 = vld [vmem:[#allocation8 + $0x500] sm:$0xff]  ;;  %v8317_v2 = vcombine.low %v606_v54, %v614_v55 }
  0x78   :  { %6859 = vmatpush1.bf16.msra.mxu1 %v8207_v16  ;;  %v8304_v58 = vcombine.high %v591_v52, %v599_v53  ;;  %v607_v60 = vld [vmem:[#allocation8 + $0x488] sm:$0xff]  ;;  %v630_v63 = vld [vmem:[#allocation8 + $0x540] sm:$0xff]  ;;  %v8303_v1 = vcombine.low %v591_v52, %v599_v53 }
  0x79   :  { %6860 = vmatprep.subr.bf16.mxu1 %v8224_v18  ;;  %v615_v61 = vld [vmem:[#allocation8 + $0x4c8] sm:$0xff]  ;;  %v8334_v0 = vcombine.high %v622_v62, %v630_v63  ;;  %v638_v6 = vld [vmem:[#allocation8 + $0x580] sm:$0xff]  ;;  %v8333_v9 = vcombine.low %v622_v62, %v630_v63 }
  0x7a   :  { %6697 = vmatpush1.bf16.msra.mxu0 %v8221_v17  ;;  %v8320_v3 = vcombine.high %v607_v60, %v615_v61  ;;  %v623_v4 = vld [vmem:[#allocation8 + $0x508] sm:$0xff]  ;;  %v646_v7 = vld [vmem:[#allocation8 + $0x5c0] sm:$0xff]  ;;  %v8319_v8 = vcombine.low %v607_v60, %v615_v61  ;;  %v9620_v61 = vld [vmem:[#allocation7] sm:$0xff] }
  0x7b   :  { %6698 = vmatprep.subr.bf16.mxu0 %v8238_v19  ;;  %v631_v5 = vld [vmem:[#allocation8 + $0x548] sm:$0xff]  ;;  %v8350_v11 = vcombine.high %v638_v6, %v646_v7  ;;  %v654_v14 = vld [vmem:[#allocation8 + $0x600] sm:$0xff]  ;;  %v8349_v17 = vcombine.low %v638_v6, %v646_v7 }
  0x7c   :  { %6861 = vmatpush1.bf16.msra.mxu1 %v8223_v24  ;;  %v8336_v10 = vcombine.high %v623_v4, %v631_v5  ;;  %v639_v12 = vld [vmem:[#allocation8 + $0x588] sm:$0xff]  ;;  %v662_v15 = vld [vmem:[#allocation8 + $0x640] sm:$0xff]  ;;  %v8335_v16 = vcombine.low %v623_v4, %v631_v5 }
  0x7d   :  { %6862 = vmatprep.subr.bf16.mxu1 %v8240_v26  ;;  %v647_v13 = vld [vmem:[#allocation8 + $0x5c8] sm:$0xff]  ;;  %v8366_v19 = vcombine.high %v654_v14, %v662_v15  ;;  %v670_v22 = vld [vmem:[#allocation8 + $0x680] sm:$0xff] }
  0x7e   :  { %6699 = vmatpush1.bf16.msra.mxu0 %v8237_v25  ;;  %v8352_v18 = vcombine.high %v639_v12, %v647_v13  ;;  %v655_v20 = vld [vmem:[#allocation8 + $0x608] sm:$0xff]  ;;  %v678_v23 = vld [vmem:[#allocation8 + $0x6c0] sm:$0xff]  ;;  %v8351_v24 = vcombine.low %v639_v12, %v647_v13  ;;  %v8365_v25 = vcombine.low %v654_v14, %v662_v15 }
  0x7f   :  { %6700 = vmatprep.subr.bf16.mxu0 %v8254_v27  ;;  %v663_v21 = vld [vmem:[#allocation8 + $0x648] sm:$0xff]  ;;  %v8382_v27 = vcombine.high %v670_v22, %v678_v23  ;;  %v8381_v31 = vcombine.low %v670_v22, %v678_v23  ;;  %v758_v22 = vld [vmem:[#allocation8 + $0x940] sm:$0xff] }
  0x80   :  { %6863 = vmatpush1.bf16.msra.mxu1 %v8239_v32  ;;  %v8368_v26 = vcombine.high %v655_v20, %v663_v21  ;;  %v671_v28 = vld [vmem:[#allocation8 + $0x688] sm:$0xff]  ;;  %v8367_v30 = vcombine.low %v655_v20, %v663_v21  ;;  %v750_v20 = vld [vmem:[#allocation8 + $0x900] sm:$0xff] }
  0x81   :  { %6864 = vmatprep.subr.bf16.mxu1 %v8256_v34  ;;  %v679_v29 = vld [vmem:[#allocation8 + $0x6c8] sm:$0xff]  ;;  %v686_v34 = vld [vmem:[#allocation8 + $0x700] sm:$0xff] }
  0x82   :  { %6701 = vmatpush1.bf16.msra.mxu0 %v8253_v33  ;;  %v8384_v32 = vcombine.high %v671_v28, %v679_v29  ;;  %v8383_v33 = vcombine.low %v671_v28, %v679_v29  ;;  %v687_v36 = vld [vmem:[#allocation8 + $0x708] sm:$0xff] }
  0x83   :  { %6702 = vmatprep.subr.bf16.mxu0 %v8270_v35  ;;  %v694_v35 = vld [vmem:[#allocation8 + $0x740] sm:$0xff]  ;;  %v695_v38 = vld [vmem:[#allocation8 + $0x748] sm:$0xff] }
  0x84   :  { %6865 = vmatpush1.bf16.msra.mxu1 %v8255_v40  ;;  %v8398_v37 = vcombine.high %v686_v34, %v694_v35  ;;  %v8397_v39 = vcombine.low %v686_v34, %v694_v35  ;;  %v8399_v40 = vcombine.low %v687_v36, %v695_v38  ;;  %v703_v44 = vld [vmem:[#allocation8 + $0x788] sm:$0xff] }
  0x85   :  { %6866 = vmatprep.subr.bf16.mxu1 %v8272_v42  ;;  %v702_v42 = vld [vmem:[#allocation8 + $0x780] sm:$0xff]  ;;  %v711_v46 = vld [vmem:[#allocation8 + $0x7c8] sm:$0xff] }
  0x86   :  { %6703 = vmatpush1.bf16.msra.mxu0 %v8269_v41  ;;  %v8400_v41 = vcombine.high %v687_v36, %v695_v38  ;;  %v719_v52 = vld [vmem:[#allocation8 + $0x808] sm:$0xff]  ;;  %v8461_v36 = vcombine.low %v750_v20, %v758_v22 }
  0x87   :  { %6704 = vmatprep.subr.bf16.mxu0 %v8286_v43  ;;  %v710_v43 = vld [vmem:[#allocation8 + $0x7c0] sm:$0xff]  ;;  %v727_v54 = vld [vmem:[#allocation8 + $0x848] sm:$0xff] }
  0x88   :  { %6867 = vmatpush1.bf16.msra.mxu1 %v8271_v48  ;;  %v8414_v45 = vcombine.high %v702_v42, %v710_v43  ;;  %v8413_v47 = vcombine.low %v702_v42, %v710_v43  ;;  %v8415_v48 = vcombine.low %v703_v44, %v711_v46  ;;  %v735_v12 = vld [vmem:[#allocation8 + $0x888] sm:$0xff] }
  0x89   :  { %6868 = vmatprep.subr.bf16.mxu1 %v8288_v50  ;;  %v718_v50 = vld [vmem:[#allocation8 + $0x800] sm:$0xff]  ;;  %v743_v13 = vld [vmem:[#allocation8 + $0x8c8] sm:$0xff] }
  0x8a   :  { %6705 = vmatpush1.bf16.msra.mxu0 %v8285_v49  ;;  %v8416_v49 = vcombine.high %v703_v44, %v711_v46  ;;  %v751_v23 = vld [vmem:[#allocation8 + $0x908] sm:$0xff]  ;;  %v8447_v29 = vcombine.low %v735_v12, %v743_v13 }
  0x8b   :  { %6706 = vmatprep.subr.bf16.mxu0 %v8302_v51  ;;  %v726_v51 = vld [vmem:[#allocation8 + $0x840] sm:$0xff]  ;;  %v767_v34 = vld [vmem:[#allocation8 + $0x988] sm:$0xff] }
  0x8c   :  { %6869 = vmatpush1.bf16.msra.mxu1 %v8287_v56  ;;  %v8430_v53 = vcombine.high %v718_v50, %v726_v51  ;;  %v8429_v55 = vcombine.low %v718_v50, %v726_v51  ;;  %v8431_v56 = vcombine.low %v719_v52, %v727_v54  ;;  %v775_v35 = vld [vmem:[#allocation8 + $0x9c8] sm:$0xff] }
  0x8d   :  { %6870 = vmatprep.subr.bf16.mxu1 %v8304_v58  ;;  %v118_v58 = vlaneseq  ;;  %v783_v42 = vld [vmem:[#allocation8 + $0xa08] sm:$0xff] }
  0x8e   :  { %6707 = vmatpush1.bf16.msra.mxu0 %v8301_v57  ;;  %v8432_v57 = vcombine.high %v719_v52, %v727_v54  ;;  %v791_v43 = vld [vmem:[#allocation8 + $0xa48] sm:$0xff] }
  0x8f   :  { %6708 = vmatprep.subr.bf16.mxu0 %v8318_v59  ;;  %v9615_v59 = vshrl.u32 %v118_v58, 7  ;;  %v799_v50 = vld [vmem:[#allocation8 + $0xa88] sm:$0xff] }
  0x90   :  { %6871 = vmatpush1.bf16.msra.mxu1 %v8303_v1  ;;  %v807_v51 = vld [vmem:[#allocation8 + $0xac8] sm:$0xff] }
  0x91   :  { %6872 = vmatprep.subr.bf16.mxu1 %v8320_v3  ;;  %v9618_v60 = vsub.s32 0, %v9615_v59  ;;  %v9623_v62 = vsub.s32 1, %v9615_v59  ;;  %v9628_v1 = vsub.s32 3, %v9615_v59  ;;  %v815_v58 = vld [vmem:[#allocation8 + $0xb08] sm:$0xff] }
  0x92   :  { %6709 = vmatpush1.bf16.msra.mxu0 %v8317_v2 }
  0x93   :  { %6710 = vmatprep.subr.bf16.mxu0 %v8334_v0  ;;  %v121_v63 = vrot.slane %v9620_v61, %v9618_v60  ;;  %v125_v2 = vrot.slane %v9620_v61, %v9623_v62  ;;  %v133_v5 = vrot.slane %v9620_v61, %v9628_v1 }
  0x94   :  { %6873 = vmatpush1.bf16.msra.mxu1 %v8319_v8  ;;  %v734_v8 = vld [vmem:[#allocation8 + $0x880] sm:$0xff] }
  0x95   :  { %6874 = vmatprep.subr.bf16.mxu1 %v8336_v10 }
  0x96   :  { %6711 = vmatpush1.bf16.msra.mxu0 %v8333_v9 }
  0x97   :  { %6712 = vmatprep.subr.bf16.mxu0 %v8350_v11  ;;  %v742_v11 = vld [vmem:[#allocation8 + $0x8c0] sm:$0xff] }
  0x98   :  { %6875 = vmatpush1.bf16.msra.mxu1 %v8335_v16  ;;  %v8445_v28 = vcombine.low %v734_v8, %v742_v11 }
  0x99   :  { %6876 = vmatprep.subr.bf16.mxu1 %v8352_v18  ;;  %v8446_v18 = vcombine.high %v734_v8, %v742_v11  ;;  %v838_v8 = vld [vmem:[#allocation8 + $0xbc0] sm:$0xff]  ;;  %v839_v11 = vld [vmem:[#allocation8 + $0xbc8] sm:$0xff] }
  0x9a   :  { %6713 = vmatpush1.bf16.msra.mxu0 %v8349_v17 }
  0x9b   :  { %6714 = vmatprep.subr.bf16.mxu0 %v8366_v19  ;;  %v8448_v19 = vcombine.high %v735_v12, %v743_v13 }
  0x9c   :  { %6877 = vmatpush1.bf16.msra.mxu1 %v8351_v24  ;;  %v759_v24 = vld [vmem:[#allocation8 + $0x948] sm:$0xff] }
  0x9d   :  { %6878 = vmatprep.subr.bf16.mxu1 %v8368_v26 }
  0x9e   :  { %6715 = vmatpush1.bf16.msra.mxu0 %v8365_v25 }
  0x9f   :  { %6716 = vmatprep.subr.bf16.mxu0 %v8382_v27 }
  0xa0   :  { %6879 = vmatpush1.bf16.msra.mxu1 %v8367_v30  ;;  %v8462_v30 = vcombine.high %v750_v20, %v758_v22  ;;  %v847_v20 = vld [vmem:[#allocation8 + $0xc08] sm:$0xff] }
  0xa1   :  { %6880 = vmatprep.subr.bf16.mxu1 %v8384_v32  ;;  %v766_v32 = vld [vmem:[#allocation8 + $0x980] sm:$0xff] }
  0xa2   :  { %6717 = vmatpush1.bf16.msra.mxu0 %v8381_v31  ;;  %v8464_v31 = vcombine.high %v751_v23, %v759_v24 }
  0xa3   :  { %6718 = vmatprep.subr.bf16.mxu0 %v8398_v37  ;;  %v8463_v37 = vcombine.low %v751_v23, %v759_v24 }
  0xa4   :  { %6881 = vmatpush1.bf16.msra.mxu1 %v8383_v33  ;;  %v774_v33 = vld [vmem:[#allocation8 + $0x9c0] sm:$0xff] }
  0xa5   :  { %6882 = vmatprep.subr.bf16.mxu1 %v8400_v41  ;;  %v8478_v38 = vcombine.high %v766_v32, %v774_v33  ;;  %v790_v41 = vld [vmem:[#allocation8 + $0xa40] sm:$0xff]  ;;  %v8477_v44 = vcombine.low %v766_v32, %v774_v33  ;;  %v871_v32 = vld [vmem:[#allocation8 + $0xcc8] sm:$0xff] }
  0xa6   :  { %6719 = vmatpush1.bf16.msra.mxu0 %v8397_v39  ;;  %v8480_v39 = vcombine.high %v767_v34, %v775_v35 }
  0xa7   :  { %6720 = vmatprep.subr.bf16.mxu0 %v8414_v45  ;;  %v8479_v45 = vcombine.low %v767_v34, %v775_v35 }
  0xa8   :  { %6883 = vmatpush1.bf16.msra.mxu1 %v8399_v40  ;;  %v782_v40 = vld [vmem:[#allocation8 + $0xa00] sm:$0xff] }
  0xa9   :  { %6884 = vmatprep.subr.bf16.mxu1 %v8416_v49  ;;  %v8494_v46 = vcombine.high %v782_v40, %v790_v41  ;;  %v806_v49 = vld [vmem:[#allocation8 + $0xac0] sm:$0xff]  ;;  %v8493_v52 = vcombine.low %v782_v40, %v790_v41  ;;  %v887_v40 = vld [vmem:[#allocation8 + $0xd48] sm:$0xff] }
  0xaa   :  { %6721 = vmatpush1.bf16.msra.mxu0 %v8413_v47  ;;  %v8496_v47 = vcombine.high %v783_v42, %v791_v43 }
  0xab   :  { %6731 = vmatprep.subr.bf16.mxu0 %v8430_v53  ;;  %v8495_v53 = vcombine.low %v783_v42, %v791_v43 }
  0xac   :  { %6885 = vmatpush1.bf16.msra.mxu1 %v8415_v48  ;;  %v798_v48 = vld [vmem:[#allocation8 + $0xa80] sm:$0xff] }
  0xad   :  { %6895 = vmatprep.subr.bf16.mxu1 %v8432_v57  ;;  %v8510_v54 = vcombine.high %v798_v48, %v806_v49  ;;  %v822_v57 = vld [vmem:[#allocation8 + $0xb40] sm:$0xff] }
 0x138   :  { %v228_v3 = vpop.f32.mrb[0].mxu0 }
 0x139   :  { %v229_v0 = vadd.f32 %v228_v3, %v121_v63  ;;  %v230_v4 = vpop.f32.mrb[1].mxu0  ;;  %v823_v63 = vld [vmem:[#allocation8 + $0xb48] sm:$0xff]  ;;  %v8511_v3 = vcombine.low %v799_v50, %v807_v51 }
 0x13a   :  { %v231_v6 = vadd.f32 %v230_v4, %v125_v2  ;;  %v9634_v9 = vpop.f32.mrb[0].mxu1  ;;  %v8509_v2 = vcombine.low %v798_v48, %v806_v49  ;;  %v8527_v13 = vcombine.low %v815_v58, %v823_v63  ;;  %v903_v48 = vld [vmem:[#allocation8 + $0xdc8] sm:$0xff] }
 0x13b   :  { %v446_v7 = vmax.f32 %v229_v0, 0.0  ;;  %v301_v14 = vpop.f32.mrb[1].mxu1 }
 0x13c   :  { %v447_v10 = vmax.f32 %v231_v6, 0.0  ;;  %v302_v15 = vadd.f32 %v301_v14, %v133_v5  ;;  %v8528_v5 = vcombine.high %v815_v58, %v823_v63  ;;  %v830_v6 = vld [vmem:[#allocation8 + $0xb80] sm:$0xff] }
 0x13d   :  { %v9638_v17 = vpack.c.bf16 %v446_v7, %v446_v7  ;;  %v8542_v14 = vcombine.high %v830_v6, %v838_v8  ;;  %v8541_v22 = vcombine.low %v830_v6, %v838_v8  ;;  %v935_v6 = vld [vmem:[#allocation8 + $0xec8] sm:$0xff]  ;;  %v9657_v8 = vsub.s32 2, %v9615_v59 }
 0x13e   :  { %v9636_v16 = vpack.c.bf16 %v447_v10, %v447_v10  ;;  %v449_v21 = vmax.f32 %v302_v15, 0.0  ;;  %v831_v10 = vld [vmem:[#allocation8 + $0xb88] sm:$0xff] }
 0x13f   :  { %v8544_v15 = vcombine.high %v831_v10, %v839_v11  ;;  %v8543_v23 = vcombine.low %v831_v10, %v839_v11 }
 0x140   :  { %6722 = vmatprep.mubr.bf16.mxu0 %v9636_v16  ;;  %6886 = vmatprep.mubr.bf16.mxu1 %v9636_v16  ;;  %v9642_v25 = vpop.f32.mrb[2].mxu0  ;;  %v9646_v26 = vpack.c.bf16 %v449_v21, %v449_v21  ;;  %v855_v21 = vld [vmem:[#allocation8 + $0xc48] sm:$0xff] }
 0x141   :  { %6723 = vmatmul.mubr.bf16.vlgmr.msra.gmra.mrb[4].mxu0 %v9638_v17  ;;  %6887 = vmatmul.mubr.bf16.vlgmr.msra.gmra.mrb[4].mxu1 %v9638_v17  ;;  %v9648_v27 = vpop.f32.mrb[3].mxu0  ;;  %v8559_v34 = vcombine.low %v847_v20, %v855_v21 }
 0x142   :  { %6732 = vmatpush1.bf16.msra.mxu0 %v8429_v55  ;;  %6896 = vmatpush1.bf16.msra.mxu1 %v8431_v56  ;;  %v8512_v55 = vcombine.high %v799_v50, %v807_v51  ;;  %v814_v56 = vld [vmem:[#allocation8 + $0xb00] sm:$0xff]  ;;  %v9652_v0 = vpop.f32.mrb[2].mxu1 }
 0x143   :  { %6733 = vmatprep.subr.bf16.mxu0 %v8446_v18  ;;  %6897 = vmatprep.subr.bf16.mxu1 %v8448_v19  ;;  %v8526_v4 = vcombine.high %v814_v56, %v822_v57  ;;  %v9654_v7 = vpop.f32.mrb[3].mxu1  ;;  %v8525_v12 = vcombine.low %v814_v56, %v822_v57  ;;  %v846_v18 = vld [vmem:[#allocation8 + $0xc00] sm:$0xff]  ;;  %v919_v56 = vld [vmem:[#allocation8 + $0xe48] sm:$0xff] }
 0x144   :  { %6763 = vmatprep.mubr.bf16.mxu0 %v9646_v26  ;;  %6927 = vmatprep.mubr.bf16.mxu1 %v9646_v26  ;;  %v854_v19 = vld [vmem:[#allocation8 + $0xc40] sm:$0xff] }
 0x145   :  { %v8558_v24 = vcombine.high %v846_v18, %v854_v19  ;;  %v8557_v33 = vcombine.low %v846_v18, %v854_v19  ;;  %v943_v18 = vld [vmem:[#allocation8 + $0xf08] sm:$0xff] }
 0x146   :  { %6734 = vmatpush1.bf16.msra.mxu0 %v8445_v28  ;;  %6898 = vmatpush1.bf16.msra.mxu1 %v8447_v29  ;;  %v8560_v28 = vcombine.high %v847_v20, %v855_v21  ;;  %v862_v29 = vld [vmem:[#allocation8 + $0xc80] sm:$0xff]  ;;  %v951_v19 = vld [vmem:[#allocation8 + $0xf48] sm:$0xff]  ;;  %v9660_v20 = vsub.s32 5, %v9615_v59  ;;  %v129_v21 = vrot.slane %v9620_v61, %v9657_v8 }
 0x147   :  { %6735 = vmatprep.subr.bf16.mxu0 %v8462_v30  ;;  %6899 = vmatprep.subr.bf16.mxu1 %v8464_v31  ;;  %v870_v30 = vld [vmem:[#allocation8 + $0xcc0] sm:$0xff]  ;;  %v863_v31 = vld [vmem:[#allocation8 + $0xc88] sm:$0xff] }
 0x148   :  { %v8574_v35 = vcombine.high %v862_v29, %v870_v30  ;;  %v8573_v41 = vcombine.low %v862_v29, %v870_v30  ;;  %v8575_v42 = vcombine.low %v863_v31, %v871_v32  ;;  %v958_v29 = vld [vmem:[#allocation8 + $0xf80] sm:$0xff] }
 0x149   :  { %v966_v30 = vld [vmem:[#allocation8 + $0xfc0] sm:$0xff] }
 0x14a   :  { %6736 = vmatpush1.bf16.msra.mxu0 %v8461_v36  ;;  %6900 = vmatpush1.bf16.msra.mxu1 %v8463_v37  ;;  %v8576_v36 = vcombine.high %v863_v31, %v871_v32  ;;  %v878_v37 = vld [vmem:[#allocation8 + $0xd00] sm:$0xff]  ;;  %v959_v31 = vld [vmem:[#allocation8 + $0xf88] sm:$0xff] }
 0x14b   :  { %6737 = vmatprep.subr.bf16.mxu0 %v8478_v38  ;;  %6901 = vmatprep.subr.bf16.mxu1 %v8480_v39  ;;  %v886_v38 = vld [vmem:[#allocation8 + $0xd40] sm:$0xff]  ;;  %v879_v39 = vld [vmem:[#allocation8 + $0xd08] sm:$0xff] }
 0x14c   :  { %v8590_v43 = vcombine.high %v878_v37, %v886_v38  ;;  %v8589_v49 = vcombine.low %v878_v37, %v886_v38  ;;  %v8591_v50 = vcombine.low %v879_v39, %v887_v40  ;;  %v967_v32 = vld [vmem:[#allocation8 + $0xfc8] sm:$0xff]  ;;  %v8670_v37 = vcombine.high %v958_v29, %v966_v30 }
 0x14d   :  { %v8672_v38 = vcombine.high %v959_v31, %v967_v32 }
 0x14e   :  { %6738 = vmatpush1.bf16.msra.mxu0 %v8477_v44  ;;  %6902 = vmatpush1.bf16.msra.mxu1 %v8479_v45  ;;  %v8592_v44 = vcombine.high %v879_v39, %v887_v40  ;;  %v894_v45 = vld [vmem:[#allocation8 + $0xd80] sm:$0xff] }
 0x14f   :  { %6739 = vmatprep.subr.bf16.mxu0 %v8494_v46  ;;  %6903 = vmatprep.subr.bf16.mxu1 %v8496_v47  ;;  %v902_v46 = vld [vmem:[#allocation8 + $0xdc0] sm:$0xff]  ;;  %v895_v47 = vld [vmem:[#allocation8 + $0xd88] sm:$0xff] }
 0x150   :  { %v8606_v51 = vcombine.high %v894_v45, %v902_v46  ;;  %v8605_v57 = vcombine.low %v894_v45, %v902_v46  ;;  %v8607_v58 = vcombine.low %v895_v47, %v903_v48  ;;  %v974_v39 = vld [vmem:[#allocation8 + $0x1000] sm:$0xff]  ;;  %v8669_v45 = vcombine.low %v958_v29, %v966_v30 }
 0x151   :  { %v982_v40 = vld [vmem:[#allocation8 + $0x1040] sm:$0xff]  ;;  %v8671_v46 = vcombine.low %v959_v31, %v967_v32 }
 0x152   :  { %6740 = vmatpush1.bf16.msra.mxu0 %v8493_v52  ;;  %6904 = vmatpush1.bf16.msra.mxu1 %v8495_v53  ;;  %v8608_v52 = vcombine.high %v895_v47, %v903_v48  ;;  %v910_v53 = vld [vmem:[#allocation8 + $0xe00] sm:$0xff] }
 0x153   :  { %6741 = vmatprep.subr.bf16.mxu0 %v8510_v54  ;;  %6905 = vmatprep.subr.bf16.mxu1 %v8512_v55  ;;  %v918_v54 = vld [vmem:[#allocation8 + $0xe40] sm:$0xff]  ;;  %v911_v55 = vld [vmem:[#allocation8 + $0xe08] sm:$0xff] }
 0x154   :  { %v8622_v63 = vcombine.high %v910_v53, %v918_v54  ;;  %v8621_v10 = vcombine.low %v910_v53, %v918_v54  ;;  %v8623_v11 = vcombine.low %v911_v55, %v919_v56  ;;  %v990_v48 = vld [vmem:[#allocation8 + $0x1080] sm:$0xff]  ;;  %v8685_v54 = vcombine.low %v974_v39, %v982_v40 }
 0x156   :  { %6742 = vmatpush1.bf16.msra.mxu0 %v8509_v2  ;;  %6906 = vmatpush1.bf16.msra.mxu1 %v8511_v3  ;;  %v8624_v2 = vcombine.high %v911_v55, %v919_v56  ;;  %v926_v3 = vld [vmem:[#allocation8 + $0xe80] sm:$0xff] }
 0x157   :  { %6743 = vmatprep.subr.bf16.mxu0 %v8526_v4  ;;  %6907 = vmatprep.subr.bf16.mxu1 %v8528_v5  ;;  %v934_v4 = vld [vmem:[#allocation8 + $0xec0] sm:$0xff]  ;;  %v927_v5 = vld [vmem:[#allocation8 + $0xe88] sm:$0xff] }
 0x15a   :  { %6744 = vmatpush1.bf16.msra.mxu0 %v8525_v12  ;;  %6908 = vmatpush1.bf16.msra.mxu1 %v8527_v13  ;;  %v8638_v12 = vcombine.high %v926_v3, %v934_v4  ;;  %v8640_v13 = vcombine.high %v927_v5, %v935_v6 }
 0x15b   :  { %6745 = vmatprep.subr.bf16.mxu0 %v8542_v14  ;;  %6909 = vmatprep.subr.bf16.mxu1 %v8544_v15  ;;  %v942_v14 = vld [vmem:[#allocation8 + $0xf00] sm:$0xff] }
 0x15c   :  { %v950_v15 = vld [vmem:[#allocation8 + $0xf40] sm:$0xff] }
 0x15e   :  { %6746 = vmatpush1.bf16.msra.mxu0 %v8541_v22  ;;  %6910 = vmatpush1.bf16.msra.mxu1 %v8543_v23  ;;  %v8637_v22 = vcombine.low %v926_v3, %v934_v4  ;;  %v8639_v23 = vcombine.low %v927_v5, %v935_v6 }
 0x15f   :  { %6747 = vmatprep.subr.bf16.mxu0 %v8558_v24  ;;  %6911 = vmatprep.subr.bf16.mxu1 %v8560_v28  ;;  %v8654_v24 = vcombine.high %v942_v14, %v950_v15  ;;  %v8656_v28 = vcombine.high %v943_v18, %v951_v19 }
 0x162   :  { %6748 = vmatpush1.bf16.msra.mxu0 %v8557_v33  ;;  %6912 = vmatpush1.bf16.msra.mxu1 %v8559_v34  ;;  %v141_v33 = vrot.slane %v9620_v61, %v9660_v20  ;;  %v300_v34 = vadd.f32 %v9634_v9, %v129_v21  ;;  %v8686_v9 = vcombine.high %v974_v39, %v982_v40 }
 0x163   :  { %6749 = vmatprep.subr.bf16.mxu0 %v8574_v35  ;;  %6913 = vmatprep.subr.bf16.mxu1 %v8576_v36  ;;  %v8653_v35 = vcombine.low %v942_v14, %v950_v15  ;;  %v8655_v36 = vcombine.low %v943_v18, %v951_v19  ;;  %v1031_v14 = vld [vmem:[#allocation8 + $0x11c8] sm:$0xff] }
 0x166   :  { %6750 = vmatpush1.bf16.msra.mxu0 %v8573_v41  ;;  %6914 = vmatpush1.bf16.msra.mxu1 %v8575_v42  ;;  %v975_v41 = vld [vmem:[#allocation8 + $0x1008] sm:$0xff] }
 0x167   :  { %6751 = vmatprep.subr.bf16.mxu0 %v8590_v43  ;;  %6915 = vmatprep.subr.bf16.mxu1 %v8592_v44  ;;  %v983_v42 = vld [vmem:[#allocation8 + $0x1048] sm:$0xff]  ;;  %v373_v43 = vadd.f32 %v9648_v27, %v141_v33  ;;  %v448_v44 = vmax.f32 %v300_v34, 0.0  ;;  %v1054_v33 = vld [vmem:[#allocation8 + $0x1280] sm:$0xff] }
 0x168   :  { %v8688_v47 = vcombine.high %v975_v41, %v983_v42  ;;  %v8687_v27 = vcombine.low %v975_v41, %v983_v42  ;;  %v1062_v34 = vld [vmem:[#allocation8 + $0x12c0] sm:$0xff] }
 0x169   :  { %v9668_v53 = vpack.c.bf16 %v448_v44, %v448_v44  ;;  %v8766_v39 = vcombine.high %v1054_v33, %v1062_v34  ;;  %v1070_v41 = vld [vmem:[#allocation8 + $0x1300] sm:$0xff]  ;;  %v1079_v44 = vld [vmem:[#allocation8 + $0x1348] sm:$0xff] }
 0x16a   :  { %6752 = vmatpush1.bf16.msra.mxu0 %v8589_v49  ;;  %6916 = vmatpush1.bf16.msra.mxu1 %v8591_v50  ;;  %v998_v49 = vld [vmem:[#allocation8 + $0x10c0] sm:$0xff]  ;;  %v991_v50 = vld [vmem:[#allocation8 + $0x1088] sm:$0xff] }
 0x16b   :  { %6753 = vmatprep.subr.bf16.mxu0 %v8606_v51  ;;  %6917 = vmatprep.subr.bf16.mxu1 %v8608_v52  ;;  %v999_v51 = vld [vmem:[#allocation8 + $0x10c8] sm:$0xff]  ;;  %v451_v52 = vmax.f32 %v373_v43, 0.0  ;;  %v8702_v55 = vcombine.high %v990_v48, %v998_v49  ;;  %v8701_v4 = vcombine.low %v990_v48, %v998_v49  ;;  %v1078_v42 = vld [vmem:[#allocation8 + $0x1340] sm:$0xff] }
 0x16c   :  { %v8704_v56 = vcombine.high %v991_v50, %v999_v51  ;;  %v8703_v5 = vcombine.low %v991_v50, %v999_v51  ;;  %v1071_v43 = vld [vmem:[#allocation8 + $0x1308] sm:$0xff]  ;;  %v1086_v48 = vld [vmem:[#allocation8 + $0x1380] sm:$0xff] }
 0x16d   :  { %v9670_v3 = vpack.c.bf16 %v451_v52, %v451_v52  ;;  %v1094_v49 = vld [vmem:[#allocation8 + $0x13c0] sm:$0xff]  ;;  %v1087_v50 = vld [vmem:[#allocation8 + $0x1388] sm:$0xff]  ;;  %v8781_v52 = vcombine.low %v1070_v41, %v1078_v42 }
 0x16e   :  { %6754 = vmatpush1.bf16.msra.mxu0 %v8605_v57  ;;  %6918 = vmatpush1.bf16.msra.mxu1 %v8607_v58  ;;  %v1006_v57 = vld [vmem:[#allocation8 + $0x1100] sm:$0xff]  ;;  %v1095_v51 = vld [vmem:[#allocation8 + $0x13c8] sm:$0xff] }
 0x16f   :  { %6755 = vmatprep.subr.bf16.mxu0 %v8622_v63  ;;  %6919 = vmatprep.subr.bf16.mxu1 %v8624_v2  ;;  %v1014_v58 = vld [vmem:[#allocation8 + $0x1140] sm:$0xff]  ;;  %v1007_v63 = vld [vmem:[#allocation8 + $0x1108] sm:$0xff] }
 0x170   :  { %v1015_v2 = vld [vmem:[#allocation8 + $0x1148] sm:$0xff]  ;;  %v8718_v6 = vcombine.high %v1006_v57, %v1014_v58  ;;  %v8717_v15 = vcombine.low %v1006_v57, %v1014_v58  ;;  %v1110_v57 = vld [vmem:[#allocation8 + $0x1440] sm:$0xff] }
 0x171   :  { %v8719_v18 = vcombine.low %v1007_v63, %v1015_v2  ;;  %v1103_v58 = vld [vmem:[#allocation8 + $0x1408] sm:$0xff] }
 0x172   :  { %6756 = vmatpush1.bf16.msra.mxu0 %v8621_v10  ;;  %6920 = vmatpush1.bf16.msra.mxu1 %v8623_v11  ;;  %v8720_v10 = vcombine.high %v1007_v63, %v1015_v2  ;;  %v1022_v11 = vld [vmem:[#allocation8 + $0x1180] sm:$0xff]  ;;  %v1111_v63 = vld [vmem:[#allocation8 + $0x1448] sm:$0xff]  ;;  %v8797_v2 = vcombine.low %v1086_v48, %v1094_v49 }
 0x173   :  { %6757 = vmatprep.subr.bf16.mxu0 %v8638_v12  ;;  %6921 = vmatprep.subr.bf16.mxu1 %v8640_v13  ;;  %v1030_v12 = vld [vmem:[#allocation8 + $0x11c0] sm:$0xff]  ;;  %v1023_v13 = vld [vmem:[#allocation8 + $0x1188] sm:$0xff] }
 0x174   :  { %v8734_v19 = vcombine.high %v1022_v11, %v1030_v12  ;;  %v8736_v21 = vcombine.high %v1023_v13, %v1031_v14  ;;  %v8733_v29 = vcombine.low %v1022_v11, %v1030_v12  ;;  %v8735_v30 = vcombine.low %v1023_v13, %v1031_v14  ;;  %v1126_v11 = vld [vmem:[#allocation8 + $0x14c0] sm:$0xff]  ;;  %v1119_v12 = vld [vmem:[#allocation8 + $0x1488] sm:$0xff] }
 0x175   :  { %v1127_v13 = vld [vmem:[#allocation8 + $0x14c8] sm:$0xff] }
 0x176   :  { %6758 = vmatpush1.bf16.msra.mxu0 %v8637_v22  ;;  %6922 = vmatpush1.bf16.msra.mxu1 %v8639_v23  ;;  %v1038_v22 = vld [vmem:[#allocation8 + $0x1200] sm:$0xff] }
 0x177   :  { %6759 = vmatprep.subr.bf16.mxu0 %v8654_v24  ;;  %6923 = vmatprep.subr.bf16.mxu1 %v8656_v28  ;;  %v1046_v23 = vld [vmem:[#allocation8 + $0x1240] sm:$0xff]  ;;  %v1039_v24 = vld [vmem:[#allocation8 + $0x1208] sm:$0xff] }
 0x178   :  { %v1047_v28 = vld [vmem:[#allocation8 + $0x1248] sm:$0xff]  ;;  %v8750_v31 = vcombine.high %v1038_v22, %v1046_v23 }
 0x179   :  { %v8752_v32 = vcombine.high %v1039_v24, %v1047_v28 }
 0x17a   :  { %6760 = vmatpush1.bf16.msra.mxu0 %v8653_v35  ;;  %6924 = vmatpush1.bf16.msra.mxu1 %v8655_v36  ;;  %v1055_v35 = vld [vmem:[#allocation8 + $0x1288] sm:$0xff] }
 0x17b   :  { %6761 = vmatprep.subr.bf16.mxu0 %v8670_v37  ;;  %6925 = vmatprep.subr.bf16.mxu1 %v8672_v38  ;;  %v1063_v36 = vld [vmem:[#allocation8 + $0x12c8] sm:$0xff]  ;;  %v8749_v37 = vcombine.low %v1038_v22, %v1046_v23  ;;  %v8751_v38 = vcombine.low %v1039_v24, %v1047_v28  ;;  %v1142_v22 = vld [vmem:[#allocation8 + $0x1540] sm:$0xff] }
 0x17c   :  { %v8768_v40 = vcombine.high %v1055_v35, %v1063_v36  ;;  %v1135_v23 = vld [vmem:[#allocation8 + $0x1508] sm:$0xff] }
 0x17d   :  { %v1143_v24 = vld [vmem:[#allocation8 + $0x1548] sm:$0xff] }
 0x17e   :  { %6762 = vmatpush1.bf16.msra.mxu0 %v8669_v45  ;;  %6926 = vmatpush1.bf16.msra.mxu1 %v8671_v46  ;;  %v8765_v45 = vcombine.low %v1054_v33, %v1062_v34  ;;  %v8767_v46 = vcombine.low %v1055_v35, %v1063_v36  ;;  %v1158_v33 = vld [vmem:[#allocation8 + $0x15c0] sm:$0xff]  ;;  %v1151_v34 = vld [vmem:[#allocation8 + $0x1588] sm:$0xff] }
 0x17f   :  { %6772 = vmatprep.subr.bf16.mxu0 %v8686_v9  ;;  %6936 = vmatprep.subr.bf16.mxu1 %v8688_v47  ;;  %v8782_v9 = vcombine.high %v1070_v41, %v1078_v42  ;;  %v8784_v47 = vcombine.high %v1071_v43, %v1079_v44  ;;  %v1159_v35 = vld [vmem:[#allocation8 + $0x15c8] sm:$0xff]  ;;  %v1174_v41 = vld [vmem:[#allocation8 + $0x1640] sm:$0xff] }
 0x180   :  { %v1167_v42 = vld [vmem:[#allocation8 + $0x1608] sm:$0xff] }
 0x181   :  { %6764 = vmatmul.mubr.bf16.vlgmr.msra.gmra.mrb[4].mxu0 %v9668_v53  ;;  %6928 = vmatmul.mubr.bf16.vlgmr.msra.gmra.mrb[4].mxu1 %v9668_v53 }
 0x182   :  { %6773 = vmatpush1.bf16.msra.mxu0 %v8685_v54  ;;  %6937 = vmatpush1.bf16.msra.mxu1 %v8687_v27  ;;  %v8783_v54 = vcombine.low %v1071_v43, %v1079_v44  ;;  %v8798_v27 = vcombine.high %v1086_v48, %v1094_v49  ;;  %v1175_v43 = vld [vmem:[#allocation8 + $0x1648] sm:$0xff]  ;;  %v1190_v48 = vld [vmem:[#allocation8 + $0x16c0] sm:$0xff] }
 0x183   :  { %6774 = vmatprep.subr.bf16.mxu0 %v8702_v55  ;;  %6938 = vmatprep.subr.bf16.mxu1 %v8704_v56  ;;  %v8800_v55 = vcombine.high %v1087_v50, %v1095_v51  ;;  %v1102_v56 = vld [vmem:[#allocation8 + $0x1400] sm:$0xff]  ;;  %v1183_v49 = vld [vmem:[#allocation8 + $0x1688] sm:$0xff] }
 0x184   :  { %6804 = vmatprep.mubr.bf16.mxu0 %v9670_v3  ;;  %6968 = vmatprep.mubr.bf16.mxu1 %v9670_v3  ;;  %v8813_v14 = vcombine.low %v1102_v56, %v1110_v57 }
 0x186   :  { %6775 = vmatpush1.bf16.msra.mxu0 %v8701_v4  ;;  %6939 = vmatpush1.bf16.msra.mxu1 %v8703_v5  ;;  %v8799_v4 = vcombine.low %v1087_v50, %v1095_v51  ;;  %v8814_v5 = vcombine.high %v1102_v56, %v1110_v57  ;;  %v1191_v50 = vld [vmem:[#allocation8 + $0x16c8] sm:$0xff]  ;;  %v9677_v51 = vsub.s32 4, %v9615_v59  ;;  %v1198_v56 = vld [vmem:[#allocation8 + $0x1700] sm:$0xff] }
 0x187   :  { %6776 = vmatprep.subr.bf16.mxu0 %v8718_v6  ;;  %6940 = vmatprep.subr.bf16.mxu1 %v8720_v10  ;;  %v8816_v6 = vcombine.high %v1103_v58, %v1111_v63  ;;  %v1118_v10 = vld [vmem:[#allocation8 + $0x1480] sm:$0xff] }
 0x188   :  { %v8829_v28 = vcombine.low %v1118_v10, %v1126_v11  ;;  %v1206_v57 = vld [vmem:[#allocation8 + $0x1740] sm:$0xff] }
 0x18a   :  { %6777 = vmatpush1.bf16.msra.mxu0 %v8717_v15  ;;  %6941 = vmatpush1.bf16.msra.mxu1 %v8719_v18  ;;  %v8815_v15 = vcombine.low %v1103_v58, %v1111_v63  ;;  %v8830_v18 = vcombine.high %v1118_v10, %v1126_v11  ;;  %v1199_v58 = vld [vmem:[#allocation8 + $0x1708] sm:$0xff]  ;;  %v8910_v10 = vcombine.high %v1198_v56, %v1206_v57 }
 0x18b   :  { %6778 = vmatprep.subr.bf16.mxu0 %v8734_v19  ;;  %6942 = vmatprep.subr.bf16.mxu1 %v8736_v21  ;;  %v8832_v19 = vcombine.high %v1119_v12, %v1127_v13  ;;  %v1134_v21 = vld [vmem:[#allocation8 + $0x1500] sm:$0xff]  ;;  %v1207_v63 = vld [vmem:[#allocation8 + $0x1748] sm:$0xff] }
 0x18c   :  { %v8845_v36 = vcombine.low %v1134_v21, %v1142_v22  ;;  %v8912_v11 = vcombine.high %v1199_v58, %v1207_v63 }
 0x18e   :  { %6779 = vmatpush1.bf16.msra.mxu0 %v8733_v29  ;;  %6943 = vmatpush1.bf16.msra.mxu1 %v8735_v30  ;;  %v8831_v29 = vcombine.low %v1119_v12, %v1127_v13  ;;  %v8846_v30 = vcombine.high %v1134_v21, %v1142_v22  ;;  %v1214_v12 = vld [vmem:[#allocation8 + $0x1780] sm:$0xff]  ;;  %v8909_v21 = vcombine.low %v1198_v56, %v1206_v57  ;;  %v1279_v56 = vld [vmem:[#allocation8 + $0x1988] sm:$0xff] }
 0x18f   :  { %6780 = vmatprep.subr.bf16.mxu0 %v8750_v31  ;;  %6944 = vmatprep.subr.bf16.mxu1 %v8752_v32  ;;  %v8848_v31 = vcombine.high %v1135_v23, %v1143_v24  ;;  %v1150_v32 = vld [vmem:[#allocation8 + $0x1580] sm:$0xff]  ;;  %v8911_v22 = vcombine.low %v1199_v58, %v1207_v63  ;;  %v1287_v57 = vld [vmem:[#allocation8 + $0x19c8] sm:$0xff] }
 0x190   :  { %v8861_v44 = vcombine.low %v1150_v32, %v1158_v33  ;;  %v1222_v13 = vld [vmem:[#allocation8 + $0x17c0] sm:$0xff] }
 0x192   :  { %6781 = vmatpush1.bf16.msra.mxu0 %v8749_v37  ;;  %6945 = vmatpush1.bf16.msra.mxu1 %v8751_v38  ;;  %v8847_v37 = vcombine.low %v1135_v23, %v1143_v24  ;;  %v8862_v38 = vcombine.high %v1150_v32, %v1158_v33  ;;  %v8926_v23 = vcombine.high %v1214_v12, %v1222_v13 }
 0x193   :  { %6782 = vmatprep.subr.bf16.mxu0 %v8766_v39  ;;  %6946 = vmatprep.subr.bf16.mxu1 %v8768_v40  ;;  %v8864_v39 = vcombine.high %v1151_v34, %v1159_v35  ;;  %v1166_v40 = vld [vmem:[#allocation8 + $0x1600] sm:$0xff] }
 0x196   :  { %6783 = vmatpush1.bf16.msra.mxu0 %v8765_v45  ;;  %6947 = vmatpush1.bf16.msra.mxu1 %v8767_v46  ;;  %v8863_v45 = vcombine.low %v1151_v34, %v1159_v35  ;;  %v8878_v46 = vcombine.high %v1166_v40, %v1174_v41 }
 0x197   :  { %6784 = vmatprep.subr.bf16.mxu0 %v8782_v9  ;;  %6948 = vmatprep.subr.bf16.mxu1 %v8784_v47  ;;  %v8880_v9 = vcombine.high %v1167_v42, %v1175_v43  ;;  %v1182_v47 = vld [vmem:[#allocation8 + $0x1680] sm:$0xff] }
 0x19a   :  { %6785 = vmatpush1.bf16.msra.mxu0 %v8781_v52  ;;  %6949 = vmatpush1.bf16.msra.mxu1 %v8783_v54  ;;  %v8877_v52 = vcombine.low %v1166_v40, %v1174_v41  ;;  %v8879_v54 = vcombine.low %v1167_v42, %v1175_v43 }
 0x19b   :  { %6786 = vmatprep.subr.bf16.mxu0 %v8798_v27  ;;  %6950 = vmatprep.subr.bf16.mxu1 %v8800_v55  ;;  %v8894_v27 = vcombine.high %v1182_v47, %v1190_v48  ;;  %v8896_v55 = vcombine.high %v1183_v49, %v1191_v50 }
 0x19e   :  { %6787 = vmatpush1.bf16.msra.mxu0 %v8797_v2  ;;  %6951 = vmatpush1.bf16.msra.mxu1 %v8799_v4  ;;  %v9680_v2 = vsub.s32 7, %v9615_v59  ;;  %v137_v4 = vrot.slane %v9620_v61, %v9677_v51 }
 0x19f   :  { %6788 = vmatprep.subr.bf16.mxu0 %v8814_v5  ;;  %6952 = vmatprep.subr.bf16.mxu1 %v8816_v6  ;;  %v8893_v5 = vcombine.low %v1182_v47, %v1190_v48  ;;  %v8895_v6 = vcombine.low %v1183_v49, %v1191_v50  ;;  %v1271_v47 = vld [vmem:[#allocation8 + $0x1948] sm:$0xff] }
 0x1a2   :  { %6789 = vmatpush1.bf16.msra.mxu0 %v8813_v14  ;;  %6953 = vmatpush1.bf16.msra.mxu1 %v8815_v15  ;;  %v1215_v14 = vld [vmem:[#allocation8 + $0x1788] sm:$0xff] }
 0x1a3   :  { %6790 = vmatprep.subr.bf16.mxu0 %v8830_v18  ;;  %6954 = vmatprep.subr.bf16.mxu1 %v8832_v19  ;;  %v1223_v15 = vld [vmem:[#allocation8 + $0x17c8] sm:$0xff]  ;;  %v149_v18 = vrot.slane %v9620_v61, %v9680_v2  ;;  %v371_v19 = vadd.f32 %v9642_v25, %v137_v4  ;;  %v8925_v61 = vcombine.low %v1214_v12, %v1222_v13 }
 0x1a4   :  { %v8928_v24 = vcombine.high %v1215_v14, %v1223_v15  ;;  %v8927_v34 = vcombine.low %v1215_v14, %v1223_v15  ;;  %v1303_v12 = vld [vmem:[#allocation8 + $0x1a48] sm:$0xff]  ;;  %v8991_v14 = vcombine.low %v1279_v56, %v1287_v57 }
 0x1a5   :  { %v444_v32 = vadd.f32 %v9654_v7, %v149_v18  ;;  %v450_v33 = vmax.f32 %v371_v19, 0.0  ;;  %v1310_v19 = vld [vmem:[#allocation8 + $0x1a80] sm:$0xff] }
 0x1a6   :  { %6791 = vmatpush1.bf16.msra.mxu0 %v8829_v28  ;;  %6955 = vmatpush1.bf16.msra.mxu1 %v8831_v29  ;;  %v1230_v28 = vld [vmem:[#allocation8 + $0x1800] sm:$0xff] }
 0x1a7   :  { %6792 = vmatprep.subr.bf16.mxu0 %v8846_v30  ;;  %6956 = vmatprep.subr.bf16.mxu1 %v8848_v31  ;;  %v1238_v29 = vld [vmem:[#allocation8 + $0x1840] sm:$0xff]  ;;  %v1231_v30 = vld [vmem:[#allocation8 + $0x1808] sm:$0xff]  ;;  %v453_v40 = vmax.f32 %v444_v32, 0.0  ;;  %v9688_v41 = vpack.c.bf16 %v450_v33, %v450_v33 }
 0x1a8   :  { %v1239_v31 = vld [vmem:[#allocation8 + $0x1848] sm:$0xff]  ;;  %v8942_v25 = vcombine.high %v1230_v28, %v1238_v29  ;;  %v8941_v42 = vcombine.low %v1230_v28, %v1238_v29  ;;  %v1334_v32 = vld [vmem:[#allocation8 + $0x1b40] sm:$0xff] }
 0x1a9   :  { %v8944_v35 = vcombine.high %v1231_v30, %v1239_v31  ;;  %v8943_v7 = vcombine.low %v1231_v30, %v1239_v31  ;;  %v9690_v48 = vpack.c.bf16 %v453_v40, %v453_v40  ;;  %v1326_v31 = vld [vmem:[#allocation8 + $0x1b00] sm:$0xff]  ;;  %v1327_v33 = vld [vmem:[#allocation8 + $0x1b08] sm:$0xff] }
 0x1aa   :  { %6793 = vmatpush1.bf16.msra.mxu0 %v8845_v36  ;;  %6957 = vmatpush1.bf16.msra.mxu1 %v8847_v37  ;;  %v1246_v36 = vld [vmem:[#allocation8 + $0x1880] sm:$0xff]  ;;  %v1351_v40 = vld [vmem:[#allocation8 + $0x1bc8] sm:$0xff] }
 0x1ab   :  { %6794 = vmatprep.subr.bf16.mxu0 %v8862_v38  ;;  %6958 = vmatprep.subr.bf16.mxu1 %v8864_v39  ;;  %v1254_v37 = vld [vmem:[#allocation8 + $0x18c0] sm:$0xff]  ;;  %v1247_v38 = vld [vmem:[#allocation8 + $0x1888] sm:$0xff] }
 0x1ac   :  { %v1255_v39 = vld [vmem:[#allocation8 + $0x18c8] sm:$0xff]  ;;  %v8958_v43 = vcombine.high %v1246_v36, %v1254_v37  ;;  %v8957_v49 = vcombine.low %v1246_v36, %v1254_v37  ;;  %v1342_v37 = vld [vmem:[#allocation8 + $0x1b80] sm:$0xff] }
 0x1ad   :  { %v8959_v50 = vcombine.low %v1247_v38, %v1255_v39 }
 0x1ae   :  { %6795 = vmatpush1.bf16.msra.mxu0 %v8861_v44  ;;  %6959 = vmatpush1.bf16.msra.mxu1 %v8863_v45  ;;  %v8960_v44 = vcombine.high %v1247_v38, %v1255_v39  ;;  %v1262_v45 = vld [vmem:[#allocation8 + $0x1900] sm:$0xff]  ;;  %v1343_v39 = vld [vmem:[#allocation8 + $0x1b88] sm:$0xff] }
 0x1af   :  { %6796 = vmatprep.subr.bf16.mxu0 %v8878_v46  ;;  %6960 = vmatprep.subr.bf16.mxu1 %v8880_v9  ;;  %v1270_v46 = vld [vmem:[#allocation8 + $0x1940] sm:$0xff]  ;;  %v1263_v9 = vld [vmem:[#allocation8 + $0x1908] sm:$0xff] }
 0x1b0   :  { %v8973_v58 = vcombine.low %v1262_v45, %v1270_v46  ;;  %v8975_v63 = vcombine.low %v1263_v9, %v1271_v47  ;;  %v1350_v38 = vld [vmem:[#allocation8 + $0x1bc0] sm:$0xff] }
 0x1b2   :  { %6797 = vmatpush1.bf16.msra.mxu0 %v8877_v52  ;;  %6961 = vmatpush1.bf16.msra.mxu1 %v8879_v54  ;;  %v8974_v52 = vcombine.high %v1262_v45, %v1270_v46  ;;  %v8976_v54 = vcombine.high %v1263_v9, %v1271_v47  ;;  %v1358_v45 = vld [vmem:[#allocation8 + $0x1c00] sm:$0xff]  ;;  %v1359_v9 = vld [vmem:[#allocation8 + $0x1c08] sm:$0xff] }
 0x1b3   :  { %6798 = vmatprep.subr.bf16.mxu0 %v8894_v27  ;;  %6962 = vmatprep.subr.bf16.mxu1 %v8896_v55  ;;  %v1278_v27 = vld [vmem:[#allocation8 + $0x1980] sm:$0xff]  ;;  %v1367_v47 = vld [vmem:[#allocation8 + $0x1c48] sm:$0xff] }
 0x1b4   :  { %v1286_v55 = vld [vmem:[#allocation8 + $0x19c0] sm:$0xff] }
 0x1b5   :  { %v8990_v4 = vcombine.high %v1278_v27, %v1286_v55  ;;  %v8989_v13 = vcombine.low %v1278_v27, %v1286_v55  ;;  %v1366_v46 = vld [vmem:[#allocation8 + $0x1c40] sm:$0xff] }
 0x1b6   :  { %6799 = vmatpush1.bf16.msra.mxu0 %v8893_v5  ;;  %6963 = vmatpush1.bf16.msra.mxu1 %v8895_v6  ;;  %v8992_v5 = vcombine.high %v1279_v56, %v1287_v57  ;;  %v1294_v6 = vld [vmem:[#allocation8 + $0x1a00] sm:$0xff]  ;;  %v1375_v56 = vld [vmem:[#allocation8 + $0x1c88] sm:$0xff] }
 0x1b7   :  { %6800 = vmatprep.subr.bf16.mxu0 %v8910_v10  ;;  %6964 = vmatprep.subr.bf16.mxu1 %v8912_v11  ;;  %v1302_v10 = vld [vmem:[#allocation8 + $0x1a40] sm:$0xff]  ;;  %v1295_v11 = vld [vmem:[#allocation8 + $0x1a08] sm:$0xff] }
 0x1b8   :  { %v9006_v15 = vcombine.high %v1294_v6, %v1302_v10  ;;  %v9008_v18 = vcombine.high %v1295_v11, %v1303_v12  ;;  %v9007_v28 = vcombine.low %v1295_v11, %v1303_v12  ;;  %v1374_v27 = vld [vmem:[#allocation8 + $0x1c80] sm:$0xff]  ;;  %v1383_v57 = vld [vmem:[#allocation8 + $0x1cc8] sm:$0xff] }
 0x1b9   :  { %v1382_v55 = vld [vmem:[#allocation8 + $0x1cc0] sm:$0xff]  ;;  %v1391_v11 = vld [vmem:[#allocation8 + $0x1d08] sm:$0xff] }
 0x1ba   :  { %6801 = vmatpush1.bf16.msra.mxu0 %v8909_v21  ;;  %6965 = vmatpush1.bf16.msra.mxu1 %v8911_v22  ;;  %v1318_v21 = vld [vmem:[#allocation8 + $0x1ac0] sm:$0xff]  ;;  %v1311_v22 = vld [vmem:[#allocation8 + $0x1a88] sm:$0xff] }
 0x1bb   :  { %6802 = vmatprep.subr.bf16.mxu0 %v8926_v23  ;;  %6966 = vmatprep.subr.bf16.mxu1 %v8928_v24  ;;  %v1319_v23 = vld [vmem:[#allocation8 + $0x1ac8] sm:$0xff]  ;;  %v9005_v24 = vcombine.low %v1294_v6, %v1302_v10  ;;  %v9022_v29 = vcombine.high %v1310_v19, %v1318_v21  ;;  %v1390_v6 = vld [vmem:[#allocation8 + $0x1d00] sm:$0xff] }
 0x1bc   :  { %v9024_v30 = vcombine.high %v1311_v22, %v1319_v23  ;;  %v1398_v10 = vld [vmem:[#allocation8 + $0x1d40] sm:$0xff]  ;;  %v1399_v12 = vld [vmem:[#allocation8 + $0x1d48] sm:$0xff] }
 0x1be   :  { %6803 = vmatpush1.bf16.msra.mxu0 %v8925_v61  ;;  %6967 = vmatpush1.bf16.msra.mxu1 %v8927_v34  ;;  %v1335_v61 = vld [vmem:[#allocation8 + $0x1b48] sm:$0xff]  ;;  %v9021_v34 = vcombine.low %v1310_v19, %v1318_v21  ;;  %v1406_v19 = vld [vmem:[#allocation8 + $0x1d80] sm:$0xff] }
 0x1bf   :  { %6813 = vmatprep.subr.bf16.mxu0 %v8942_v25  ;;  %6977 = vmatprep.subr.bf16.mxu1 %v8944_v35  ;;  %v9023_v25 = vcombine.low %v1311_v22, %v1319_v23  ;;  %v9038_v35 = vcombine.high %v1326_v31, %v1334_v32  ;;  %v9040_v36 = vcombine.high %v1327_v33, %v1335_v61  ;;  %v1414_v21 = vld [vmem:[#allocation8 + $0x1dc0] sm:$0xff]  ;;  %v1407_v22 = vld [vmem:[#allocation8 + $0x1d88] sm:$0xff] }
 0x1c0   :  { %v1415_v23 = vld [vmem:[#allocation8 + $0x1dc8] sm:$0xff] }
 0x1c1   :  { %6805 = vmatmul.mubr.bf16.vlgmr.msra.gmra.mrb[4].mxu0 %v9688_v41  ;;  %6969 = vmatmul.mubr.bf16.vlgmr.msra.gmra.mrb[4].mxu1 %v9688_v41 }
 0x1c2   :  { %6814 = vmatpush1.bf16.msra.mxu0 %v8941_v42  ;;  %6978 = vmatpush1.bf16.msra.mxu1 %v8943_v7  ;;  %v9037_v42 = vcombine.low %v1326_v31, %v1334_v32  ;;  %v9039_v7 = vcombine.low %v1327_v33, %v1335_v61  ;;  %v1422_v31 = vld [vmem:[#allocation8 + $0x1e00] sm:$0xff]  ;;  %v1423_v33 = vld [vmem:[#allocation8 + $0x1e08] sm:$0xff] }
 0x1c3   :  { %6815 = vmatprep.subr.bf16.mxu0 %v8958_v43  ;;  %6979 = vmatprep.subr.bf16.mxu1 %v8960_v44  ;;  %v9054_v43 = vcombine.high %v1342_v37, %v1350_v38  ;;  %v9056_v44 = vcombine.high %v1343_v39, %v1351_v40  ;;  %v1430_v32 = vld [vmem:[#allocation8 + $0x1e40] sm:$0xff]  ;;  %v1431_v61 = vld [vmem:[#allocation8 + $0x1e48] sm:$0xff] }
 0x1c4   :  { %6845 = vmatprep.mubr.bf16.mxu0 %v9690_v48  ;;  %7009 = vmatprep.mubr.bf16.mxu1 %v9690_v48 }
 0x1c6   :  { %6816 = vmatpush1.bf16.msra.mxu0 %v8957_v49  ;;  %6980 = vmatpush1.bf16.msra.mxu1 %v8959_v50  ;;  %v9053_v49 = vcombine.low %v1342_v37, %v1350_v38  ;;  %v9055_v50 = vcombine.low %v1343_v39, %v1351_v40  ;;  %v1438_v37 = vld [vmem:[#allocation8 + $0x1e80] sm:$0xff]  ;;  %v1439_v39 = vld [vmem:[#allocation8 + $0x1e88] sm:$0xff] }
 0x1c7   :  { %6817 = vmatprep.subr.bf16.mxu0 %v8974_v52  ;;  %6981 = vmatprep.subr.bf16.mxu1 %v8976_v54  ;;  %v9070_v52 = vcombine.high %v1358_v45, %v1366_v46  ;;  %v9072_v54 = vcombine.high %v1359_v9, %v1367_v47  ;;  %v1446_v38 = vld [vmem:[#allocation8 + $0x1ec0] sm:$0xff]  ;;  %v1447_v40 = vld [vmem:[#allocation8 + $0x1ec8] sm:$0xff] }
 0x1ca   :  { %6818 = vmatpush1.bf16.msra.mxu0 %v8973_v58  ;;  %6982 = vmatpush1.bf16.msra.mxu1 %v8975_v63  ;;  %v9069_v58 = vcombine.low %v1358_v45, %v1366_v46  ;;  %v9071_v63 = vcombine.low %v1359_v9, %v1367_v47  ;;  %v9152_v45 = vcombine.high %v1439_v39, %v1447_v40  ;;  %v1454_v46 = vld [vmem:[#allocation8 + $0x1f00] sm:$0xff]  ;;  %v1455_v47 = vld [vmem:[#allocation8 + $0x1f08] sm:$0xff] }
 0x1cb   :  { %6819 = vmatprep.subr.bf16.mxu0 %v8990_v4  ;;  %6983 = vmatprep.subr.bf16.mxu1 %v8992_v5  ;;  %v9086_v4 = vcombine.high %v1374_v27, %v1382_v55  ;;  %v9088_v5 = vcombine.high %v1375_v56, %v1383_v57  ;;  %v1462_v9 = vld [vmem:[#allocation8 + $0x1f40] sm:$0xff] }
 0x1ce   :  { %6820 = vmatpush1.bf16.msra.mxu0 %v8989_v13  ;;  %6984 = vmatpush1.bf16.msra.mxu1 %v8991_v14  ;;  %v9085_v13 = vcombine.low %v1374_v27, %v1382_v55  ;;  %v9087_v14 = vcombine.low %v1375_v56, %v1383_v57  ;;  %v9166_v55 = vcombine.high %v1454_v46, %v1462_v9  ;;  %v1470_v57 = vld [vmem:[#allocation8 + $0x1f80] sm:$0xff] }
 0x1cf   :  { %6821 = vmatprep.subr.bf16.mxu0 %v9006_v15  ;;  %6985 = vmatprep.subr.bf16.mxu1 %v9008_v18  ;;  %v9102_v15 = vcombine.high %v1390_v6, %v1398_v10  ;;  %v9104_v18 = vcombine.high %v1391_v11, %v1399_v12 }
 0x1d2   :  { %6822 = vmatpush1.bf16.msra.mxu0 %v9005_v24  ;;  %6986 = vmatpush1.bf16.msra.mxu1 %v9007_v28  ;;  %v9101_v24 = vcombine.low %v1390_v6, %v1398_v10  ;;  %v9103_v28 = vcombine.low %v1391_v11, %v1399_v12 }
 0x1d3   :  { %6823 = vmatprep.subr.bf16.mxu0 %v9022_v29  ;;  %6987 = vmatprep.subr.bf16.mxu1 %v9024_v30  ;;  %v9118_v29 = vcombine.high %v1406_v19, %v1414_v21  ;;  %v9120_v30 = vcombine.high %v1407_v22, %v1415_v23 }
 0x1d6   :  { %6824 = vmatpush1.bf16.msra.mxu0 %v9021_v34  ;;  %6988 = vmatpush1.bf16.msra.mxu1 %v9023_v25  ;;  %v9117_v34 = vcombine.low %v1406_v19, %v1414_v21  ;;  %v9119_v25 = vcombine.low %v1407_v22, %v1415_v23 }
 0x1d7   :  { %6825 = vmatprep.subr.bf16.mxu0 %v9038_v35  ;;  %6989 = vmatprep.subr.bf16.mxu1 %v9040_v36  ;;  %v9134_v35 = vcombine.high %v1422_v31, %v1430_v32  ;;  %v9136_v36 = vcombine.high %v1423_v33, %v1431_v61 }
 0x1da   :  { %6826 = vmatpush1.bf16.msra.mxu0 %v9037_v42  ;;  %6990 = vmatpush1.bf16.msra.mxu1 %v9039_v7  ;;  %v9133_v42 = vcombine.low %v1422_v31, %v1430_v32  ;;  %v9135_v7 = vcombine.low %v1423_v33, %v1431_v61 }
 0x1db   :  { %6827 = vmatprep.subr.bf16.mxu0 %v9054_v43  ;;  %6991 = vmatprep.subr.bf16.mxu1 %v9056_v44  ;;  %v9697_v43 = vsub.s32 6, %v9615_v59  ;;  %v9150_v44 = vcombine.high %v1438_v37, %v1446_v38 }
 0x1de   :  { %6828 = vmatpush1.bf16.msra.mxu0 %v9053_v49  ;;  %6992 = vmatpush1.bf16.msra.mxu1 %v9055_v50  ;;  %v1463_v49 = vld [vmem:[#allocation8 + $0x1f48] sm:$0xff]  ;;  %v9149_v50 = vcombine.low %v1438_v37, %v1446_v38  ;;  %v505_v37 = vld [vmem:[#allocation8 + $0x158] sm:$0xff] }
 0x1df   :  { %6829 = vmatprep.subr.bf16.mxu0 %v9070_v52  ;;  %6993 = vmatprep.subr.bf16.mxu1 %v9072_v54  ;;  %v9151_v52 = vcombine.low %v1439_v39, %v1447_v40  ;;  %v9359_v54 = vld [vmem:[#allocation7] sm:$0xff]  ;;  %v9168_v56 = vcombine.high %v1455_v47, %v1463_v49  ;;  %v9167_v6 = vcombine.low %v1455_v47, %v1463_v49 }
 0x1e0   :  { %v145_v27 = vrot.slane %v9359_v54, %v9697_v43  ;;  %v536_v54 = vld [vmem:[#allocation8 + $0x250] sm:$0xff] }
 0x1e2   :  { %6830 = vmatpush1.bf16.msra.mxu0 %v9069_v58  ;;  %6994 = vmatpush1.bf16.msra.mxu1 %v9071_v63  ;;  %v1478_v58 = vld [vmem:[#allocation8 + $0x1fc0] sm:$0xff]  ;;  %v1471_v63 = vld [vmem:[#allocation8 + $0x1f88] sm:$0xff]  ;;  %v442_v10 = vadd.f32 %v9652_v0, %v145_v27  ;;  %v481_v0 = vld [vmem:[#allocation8 + $0x98] sm:$0xff] }
 0x1e3   :  { %6831 = vmatprep.subr.bf16.mxu0 %v9086_v4  ;;  %6995 = vmatprep.subr.bf16.mxu1 %v9088_v5  ;;  %v1479_v4 = vld [vmem:[#allocation8 + $0x1fc8] sm:$0xff]  ;;  %v9165_v5 = vcombine.low %v1454_v46, %v1462_v9  ;;  %v9182_v11 = vcombine.high %v1470_v57, %v1478_v58  ;;  %v9181_v19 = vcombine.low %v1470_v57, %v1478_v58  ;;  %v521_v46 = vld [vmem:[#allocation8 + $0x1d8] sm:$0xff] }
 0x1e4   :  { %v9184_v12 = vcombine.high %v1471_v63, %v1479_v4  ;;  %v9183_v21 = vcombine.low %v1471_v63, %v1479_v4  ;;  %v452_v22 = vmax.f32 %v442_v10, 0.0  ;;  %v529_v27 = vld [vmem:[#allocation8 + $0x218] sm:$0xff]  ;;  %v544_v4 = vld [vmem:[#allocation8 + $0x290] sm:$0xff] }
 0x1e5   :  { %v553_v10 = vld [vmem:[#allocation8 + $0x2d8] sm:$0xff] }
 0x1e6   :  { %6832 = vmatpush1.bf16.msra.mxu0 %v9085_v13  ;;  %6996 = vmatpush1.bf16.msra.mxu1 %v9087_v14  ;;  %v464_v13 = vld [vmem:[#allocation8 + $0x10] sm:$0xff]  ;;  %v9701_v32 = vpack.c.bf16 %v452_v22, %v452_v22 }
 0x1e7   :  { %6833 = vmatprep.subr.bf16.mxu0 %v9102_v15  ;;  %6997 = vmatprep.subr.bf16.mxu1 %v9104_v18  ;;  %v472_v14 = vld [vmem:[#allocation8 + $0x50] sm:$0xff]  ;;  %v465_v15 = vld [vmem:[#allocation8 + $0x18] sm:$0xff] }
 0x1e8   :  { %v473_v18 = vld [vmem:[#allocation8 + $0x58] sm:$0xff]  ;;  %v8178_v23 = vcombine.high %v464_v13, %v472_v14  ;;  %v8177_v31 = vcombine.low %v464_v13, %v472_v14 }
 0x1e9   :  { %v8179_v33 = vcombine.low %v465_v15, %v473_v18 }
 0x1ea   :  { %6834 = vmatpush1.bf16.msra.mxu0 %v9101_v24  ;;  %6998 = vmatpush1.bf16.msra.mxu1 %v9103_v28  ;;  %v8180_v24 = vcombine.high %v465_v15, %v473_v18  ;;  %v480_v28 = vld [vmem:[#allocation8 + $0x90] sm:$0xff] }
 0x1eb   :  { %6835 = vmatprep.subr.bf16.mxu0 %v9118_v29  ;;  %6999 = vmatprep.subr.bf16.mxu1 %v9120_v30  ;;  %v488_v29 = vld [vmem:[#allocation8 + $0xd0] sm:$0xff]  ;;  %v489_v30 = vld [vmem:[#allocation8 + $0xd8] sm:$0xff] }
 0x1ec   :  { %v8194_v61 = vcombine.high %v480_v28, %v488_v29  ;;  %v8193_v38 = vcombine.low %v480_v28, %v488_v29  ;;  %v8195_v39 = vcombine.low %v481_v0, %v489_v30  ;;  %v560_v15 = vld [vmem:[#allocation8 + $0x310] sm:$0xff] }
 0x1ed   :  { %v568_v18 = vld [vmem:[#allocation8 + $0x350] sm:$0xff] }
 0x1ee   :  { %6836 = vmatpush1.bf16.msra.mxu0 %v9117_v34  ;;  %7000 = vmatpush1.bf16.msra.mxu1 %v9119_v25  ;;  %v8196_v34 = vcombine.high %v481_v0, %v489_v30  ;;  %v496_v25 = vld [vmem:[#allocation8 + $0x110] sm:$0xff]  ;;  %v577_v30 = vld [vmem:[#allocation8 + $0x398] sm:$0xff] }
 0x1ef   :  { %6837 = vmatprep.subr.bf16.mxu0 %v9134_v35  ;;  %7001 = vmatprep.subr.bf16.mxu1 %v9136_v36  ;;  %v504_v35 = vld [vmem:[#allocation8 + $0x150] sm:$0xff]  ;;  %v497_v36 = vld [vmem:[#allocation8 + $0x118] sm:$0xff] }
 0x1f0   :  { %v8210_v40 = vcombine.high %v496_v25, %v504_v35  ;;  %v8209_v9 = vcombine.low %v496_v25, %v504_v35  ;;  %v8211_v47 = vcombine.low %v497_v36, %v505_v37  ;;  %v576_v29 = vld [vmem:[#allocation8 + $0x390] sm:$0xff] }
 0x1f1   :  { %v584_v0 = vld [vmem:[#allocation8 + $0x3d0] sm:$0xff] }
 0x1f2   :  { %6838 = vmatpush1.bf16.msra.mxu0 %v9133_v42  ;;  %7002 = vmatpush1.bf16.msra.mxu1 %v9135_v7  ;;  %v8212_v42 = vcombine.high %v497_v36, %v505_v37  ;;  %v512_v7 = vld [vmem:[#allocation8 + $0x190] sm:$0xff]  ;;  %v593_v37 = vld [vmem:[#allocation8 + $0x418] sm:$0xff] }
 0x1f3   :  { %6839 = vmatprep.subr.bf16.mxu0 %v9150_v44  ;;  %7003 = vmatprep.subr.bf16.mxu1 %v9152_v45  ;;  %v520_v44 = vld [vmem:[#allocation8 + $0x1d0] sm:$0xff]  ;;  %v513_v45 = vld [vmem:[#allocation8 + $0x198] sm:$0xff] }
 0x1f4   :  { %v8226_v49 = vcombine.high %v512_v7, %v520_v44  ;;  %v8227_v57 = vcombine.low %v513_v45, %v521_v46  ;;  %v592_v35 = vld [vmem:[#allocation8 + $0x410] sm:$0xff] }
 0x1f5   :  { %v600_v36 = vld [vmem:[#allocation8 + $0x450] sm:$0xff] }
 0x1f6   :  { %6840 = vmatpush1.bf16.msra.mxu0 %v9149_v50  ;;  %7004 = vmatpush1.bf16.msra.mxu1 %v9151_v52  ;;  %v8228_v50 = vcombine.high %v513_v45, %v521_v46  ;;  %v528_v52 = vld [vmem:[#allocation8 + $0x210] sm:$0xff]  ;;  %v609_v46 = vld [vmem:[#allocation8 + $0x498] sm:$0xff] }
 0x1f7   :  { %6841 = vmatprep.subr.bf16.mxu0 %v9166_v55  ;;  %7005 = vmatprep.subr.bf16.mxu1 %v9168_v56  ;;  %v537_v55 = vld [vmem:[#allocation8 + $0x258] sm:$0xff]  ;;  %v8225_v56 = vcombine.low %v512_v7, %v520_v44  ;;  %v8242_v58 = vcombine.high %v528_v52, %v536_v54  ;;  %v608_v44 = vld [vmem:[#allocation8 + $0x490] sm:$0xff] }
 0x1f8   :  { %v8244_v63 = vcombine.high %v529_v27, %v537_v55  ;;  %v616_v45 = vld [vmem:[#allocation8 + $0x4d0] sm:$0xff] }
 0x1fa   :  { %6842 = vmatpush1.bf16.msra.mxu0 %v9165_v5  ;;  %7006 = vmatpush1.bf16.msra.mxu1 %v9167_v6  ;;  %v552_v5 = vld [vmem:[#allocation8 + $0x2d0] sm:$0xff]  ;;  %v545_v6 = vld [vmem:[#allocation8 + $0x298] sm:$0xff] }
 0x1fb   :  { %6843 = vmatprep.subr.bf16.mxu0 %v9182_v11  ;;  %7007 = vmatprep.subr.bf16.mxu1 %v9184_v12  ;;  %v8241_v11 = vcombine.low %v528_v52, %v536_v54  ;;  %v8243_v12 = vcombine.low %v529_v27, %v537_v55  ;;  %v8258_v13 = vcombine.high %v544_v4, %v552_v5  ;;  %v624_v54 = vld [vmem:[#allocation8 + $0x510] sm:$0xff]  ;;  %v625_v55 = vld [vmem:[#allocation8 + $0x518] sm:$0xff] }
 0x1fc   :  { %v8260_v14 = vcombine.high %v545_v6, %v553_v10  ;;  %v8257_v22 = vcombine.low %v544_v4, %v552_v5  ;;  %v632_v27 = vld [vmem:[#allocation8 + $0x550] sm:$0xff] }
 0x1fd   :  { %v640_v5 = vld [vmem:[#allocation8 + $0x590] sm:$0xff] }
 0x1fe   :  { %6844 = vmatpush1.bf16.msra.mxu0 %v9181_v19  ;;  %7008 = vmatpush1.bf16.msra.mxu1 %v9183_v21  ;;  %v561_v19 = vld [vmem:[#allocation8 + $0x318] sm:$0xff] }
 0x1ff   :  { %7018 = vmatprep.subr.bf16.mxu0 %v8178_v23  ;;  %7182 = vmatprep.subr.bf16.mxu1 %v8180_v24  ;;  %v569_v21 = vld [vmem:[#allocation8 + $0x358] sm:$0xff]  ;;  %v8259_v23 = vcombine.low %v545_v6, %v553_v10  ;;  %v8274_v24 = vcombine.high %v560_v15, %v568_v18  ;;  %v648_v6 = vld [vmem:[#allocation8 + $0x5d0] sm:$0xff] }
 0x200   :  { %v8276_v28 = vcombine.high %v561_v19, %v569_v21  ;;  %v641_v10 = vld [vmem:[#allocation8 + $0x598] sm:$0xff] }
 0x201   :  { %6846 = vmatmul.mubr.bf16.vlgmr.msra.gmra.mrb[4].mxu0 %v9701_v32  ;;  %7010 = vmatmul.mubr.bf16.vlgmr.msra.gmra.mrb[4].mxu1 %v9701_v32 }
 0x202   :  { %7019 = vmatpush1.bf16.msra.mxu0 %v8177_v31  ;;  %7050 = vmatprep.mubr.bf16.mxu0 %v9636_v16  ;;  %v585_v31 = vld [vmem:[#allocation8 + $0x3d8] sm:$0xff] }
 0x203   :  { %7183 = vmatpush1.bf16.msra.mxu1 %v8179_v33  ;;  %7214 = vmatprep.mubr.bf16.mxu1 %v9636_v16  ;;  %v8273_v33 = vcombine.low %v560_v15, %v568_v18  ;;  %v8292_v25 = vcombine.high %v577_v30, %v585_v31  ;;  %v656_v18 = vld [vmem:[#allocation8 + $0x610] sm:$0xff] }
 0x204   :  { %7020 = vmatprep.subr.bf16.mxu0 %v8194_v61  ;;  %7184 = vmatprep.subr.bf16.mxu1 %v8196_v34  ;;  %v8275_v61 = vcombine.low %v561_v19, %v569_v21  ;;  %v8290_v34 = vcombine.high %v576_v29, %v584_v0  ;;  %v664_v19 = vld [vmem:[#allocation8 + $0x650] sm:$0xff]  ;;  %v657_v21 = vld [vmem:[#allocation8 + $0x618] sm:$0xff] }
 0x206   :  { %7021 = vmatpush1.bf16.msra.mxu0 %v8193_v38  ;;  %v601_v38 = vld [vmem:[#allocation8 + $0x458] sm:$0xff] }
 0x207   :  { %7185 = vmatpush1.bf16.msra.mxu1 %v8195_v39  ;;  %7022 = vmatprep.subr.bf16.mxu0 %v8210_v40  ;;  %v8289_v39 = vcombine.low %v576_v29, %v584_v0  ;;  %v8291_v40 = vcombine.low %v577_v30, %v585_v31  ;;  %v8308_v7 = vcombine.high %v593_v37, %v601_v38  ;;  %v672_v0 = vld [vmem:[#allocation8 + $0x690] sm:$0xff]  ;;  %v673_v31 = vld [vmem:[#allocation8 + $0x698] sm:$0xff] }
 0x208   :  { %7186 = vmatprep.subr.bf16.mxu1 %v8212_v42  ;;  %v8306_v42 = vcombine.high %v592_v35, %v600_v36  ;;  %v680_v30 = vld [vmem:[#allocation8 + $0x6d0] sm:$0xff] }
 0x20a   :  { %7023 = vmatpush1.bf16.msra.mxu0 %v8209_v9  ;;  %v617_v9 = vld [vmem:[#allocation8 + $0x4d8] sm:$0xff] }
 0x20b   :  { %7187 = vmatpush1.bf16.msra.mxu1 %v8211_v47  ;;  %7024 = vmatprep.subr.bf16.mxu0 %v8226_v49  ;;  %v8305_v47 = vcombine.low %v592_v35, %v600_v36  ;;  %v8307_v49 = vcombine.low %v593_v37, %v601_v38  ;;  %v8324_v52 = vcombine.high %v609_v46, %v617_v9  ;;  %v688_v36 = vld [vmem:[#allocation8 + $0x710] sm:$0xff]  ;;  %v689_v38 = vld [vmem:[#allocation8 + $0x718] sm:$0xff] }
 0x20c   :  { %7188 = vmatprep.subr.bf16.mxu1 %v8228_v50  ;;  %v8322_v50 = vcombine.high %v608_v44, %v616_v45  ;;  %v696_v37 = vld [vmem:[#allocation8 + $0x750] sm:$0xff] }
 0x20e   :  { %7025 = vmatpush1.bf16.msra.mxu0 %v8225_v56  ;;  %v633_v56 = vld [vmem:[#allocation8 + $0x558] sm:$0xff] }
 0x20f   :  { %7189 = vmatpush1.bf16.msra.mxu1 %v8227_v57  ;;  %7026 = vmatprep.subr.bf16.mxu0 %v8242_v58  ;;  %v8321_v57 = vcombine.low %v608_v44, %v616_v45  ;;  %v8323_v58 = vcombine.low %v609_v46, %v617_v9  ;;  %v8340_v4 = vcombine.high %v625_v55, %v633_v56  ;;  %v704_v45 = vld [vmem:[#allocation8 + $0x790] sm:$0xff]  ;;  %v705_v9 = vld [vmem:[#allocation8 + $0x798] sm:$0xff] }
 0x210   :  { %7190 = vmatprep.subr.bf16.mxu1 %v8244_v63  ;;  %v8338_v63 = vcombine.high %v624_v54, %v632_v27  ;;  %v712_v46 = vld [vmem:[#allocation8 + $0x7d0] sm:$0xff] }
 0x212   :  { %7027 = vmatpush1.bf16.msra.mxu0 %v8241_v11  ;;  %v649_v11 = vld [vmem:[#allocation8 + $0x5d8] sm:$0xff] }
 0x213   :  { %7191 = vmatpush1.bf16.msra.mxu1 %v8243_v12  ;;  %7028 = vmatprep.subr.bf16.mxu0 %v8258_v13  ;;  %v8337_v12 = vcombine.low %v624_v54, %v632_v27  ;;  %v8339_v13 = vcombine.low %v625_v55, %v633_v56  ;;  %v8356_v15 = vcombine.high %v641_v10, %v649_v11  ;;  %v720_v27 = vld [vmem:[#allocation8 + $0x810] sm:$0xff]  ;;  %v721_v56 = vld [vmem:[#allocation8 + $0x818] sm:$0xff] }
 0x214   :  { %7192 = vmatprep.subr.bf16.mxu1 %v8260_v14  ;;  %v8354_v14 = vcombine.high %v640_v5, %v648_v6  ;;  %v728_v55 = vld [vmem:[#allocation8 + $0x850] sm:$0xff] }
 0x216   :  { %7029 = vmatpush1.bf16.msra.mxu0 %v8257_v22  ;;  %v665_v22 = vld [vmem:[#allocation8 + $0x658] sm:$0xff] }
 0x217   :  { %7193 = vmatpush1.bf16.msra.mxu1 %v8259_v23  ;;  %7030 = vmatprep.subr.bf16.mxu0 %v8274_v24  ;;  %v8353_v23 = vcombine.low %v640_v5, %v648_v6  ;;  %v8355_v24 = vcombine.low %v641_v10, %v649_v11  ;;  %v8372_v29 = vcombine.high %v657_v21, %v665_v22  ;;  %v736_v6 = vld [vmem:[#allocation8 + $0x890] sm:$0xff] }
 0x218   :  { %7194 = vmatprep.subr.bf16.mxu1 %v8276_v28  ;;  %v8370_v28 = vcombine.high %v656_v18, %v664_v19  ;;  %v744_v10 = vld [vmem:[#allocation8 + $0x8d0] sm:$0xff]  ;;  %v8433_v11 = vcombine.low %v720_v27, %v728_v55 }
 0x21a   :  { %7031 = vmatpush1.bf16.msra.mxu0 %v8273_v33  ;;  %v681_v33 = vld [vmem:[#allocation8 + $0x6d8] sm:$0xff] }
 0x21b   :  { %7195 = vmatpush1.bf16.msra.mxu1 %v8275_v61  ;;  %7032 = vmatprep.subr.bf16.mxu0 %v8290_v34  ;;  %v8369_v61 = vcombine.low %v656_v18, %v664_v19  ;;  %v8371_v34 = vcombine.low %v657_v21, %v665_v22  ;;  %v8388_v35 = vcombine.high %v673_v31, %v681_v33  ;;  %v752_v18 = vld [vmem:[#allocation8 + $0x910] sm:$0xff]  ;;  %v753_v22 = vld [vmem:[#allocation8 + $0x918] sm:$0xff] }
 0x21c   :  { %7196 = vmatprep.subr.bf16.mxu1 %v8292_v25  ;;  %v8386_v25 = vcombine.high %v672_v0, %v680_v30  ;;  %v760_v19 = vld [vmem:[#allocation8 + $0x950] sm:$0xff] }
 0x21e   :  { %7033 = vmatpush1.bf16.msra.mxu0 %v8289_v39  ;;  %v697_v39 = vld [vmem:[#allocation8 + $0x758] sm:$0xff] }
 0x21f   :  { %7197 = vmatpush1.bf16.msra.mxu1 %v8291_v40  ;;  %7034 = vmatprep.subr.bf16.mxu0 %v8306_v42  ;;  %v8385_v40 = vcombine.low %v672_v0, %v680_v30  ;;  %v8387_v42 = vcombine.low %v673_v31, %v681_v33  ;;  %v8404_v44 = vcombine.high %v689_v38, %v697_v39  ;;  %v768_v30 = vld [vmem:[#allocation8 + $0x990] sm:$0xff]  ;;  %v769_v33 = vld [vmem:[#allocation8 + $0x998] sm:$0xff] }
 0x220   :  { %7198 = vmatprep.subr.bf16.mxu1 %v8308_v7  ;;  %v8402_v7 = vcombine.high %v688_v36, %v696_v37  ;;  %v776_v31 = vld [vmem:[#allocation8 + $0x9d0] sm:$0xff] }
 0x222   :  { %7035 = vmatpush1.bf16.msra.mxu0 %v8305_v47  ;;  %v713_v47 = vld [vmem:[#allocation8 + $0x7d8] sm:$0xff] }
 0x223   :  { %7199 = vmatpush1.bf16.msra.mxu1 %v8307_v49  ;;  %7036 = vmatprep.subr.bf16.mxu0 %v8322_v50  ;;  %v8401_v49 = vcombine.low %v688_v36, %v696_v37  ;;  %v8403_v50 = vcombine.low %v689_v38, %v697_v39  ;;  %v8420_v54 = vcombine.high %v705_v9, %v713_v47  ;;  %v784_v37 = vld [vmem:[#allocation8 + $0xa10] sm:$0xff]  ;;  %v785_v39 = vld [vmem:[#allocation8 + $0xa18] sm:$0xff] }
 0x224   :  { %7200 = vmatprep.subr.bf16.mxu1 %v8324_v52  ;;  %v8418_v52 = vcombine.high %v704_v45, %v712_v46  ;;  %v792_v38 = vld [vmem:[#allocation8 + $0xa50] sm:$0xff] }
 0x226   :  { %7037 = vmatpush1.bf16.msra.mxu0 %v8321_v57  ;;  %v729_v57 = vld [vmem:[#allocation8 + $0x858] sm:$0xff] }
 0x227   :  { %7201 = vmatpush1.bf16.msra.mxu1 %v8323_v58  ;;  %7038 = vmatprep.subr.bf16.mxu0 %v8338_v63  ;;  %v8417_v58 = vcombine.low %v704_v45, %v712_v46  ;;  %v8419_v63 = vcombine.low %v705_v9, %v713_v47  ;;  %v8436_v5 = vcombine.high %v721_v56, %v729_v57  ;;  %v800_v46 = vld [vmem:[#allocation8 + $0xa90] sm:$0xff]  ;;  %v801_v47 = vld [vmem:[#allocation8 + $0xa98] sm:$0xff] }
 0x228   :  { %7202 = vmatprep.subr.bf16.mxu1 %v8340_v4  ;;  %v8434_v4 = vcombine.high %v720_v27, %v728_v55  ;;  %v808_v9 = vld [vmem:[#allocation8 + $0xad0] sm:$0xff] }
 0x229   :  { %v816_v55 = vld [vmem:[#allocation8 + $0xb10] sm:$0xff] }
 0x22a   :  { %7039 = vmatpush1.bf16.msra.mxu0 %v8337_v12  ;;  %v737_v12 = vld [vmem:[#allocation8 + $0x898] sm:$0xff] }
 0x22b   :  { %7203 = vmatpush1.bf16.msra.mxu1 %v8339_v13  ;;  %7040 = vmatprep.subr.bf16.mxu0 %v8354_v14  ;;  %v745_v13 = vld [vmem:[#allocation8 + $0x8d8] sm:$0xff]  ;;  %v8435_v14 = vcombine.low %v721_v56, %v729_v57  ;;  %v824_v56 = vld [vmem:[#allocation8 + $0xb50] sm:$0xff] }
 0x22c   :  { %7204 = vmatprep.subr.bf16.mxu1 %v8356_v15  ;;  %v8450_v15 = vcombine.high %v736_v6, %v744_v10  ;;  %v8452_v21 = vcombine.high %v737_v12, %v745_v13  ;;  %v817_v57 = vld [vmem:[#allocation8 + $0xb18] sm:$0xff] }
 0x22e   :  { %7041 = vmatpush1.bf16.msra.mxu0 %v8353_v23  ;;  %v761_v23 = vld [vmem:[#allocation8 + $0x958] sm:$0xff] }
 0x22f   :  { %7205 = vmatpush1.bf16.msra.mxu1 %v8355_v24  ;;  %7042 = vmatprep.subr.bf16.mxu0 %v8370_v28  ;;  %v8449_v24 = vcombine.low %v736_v6, %v744_v10  ;;  %v8451_v28 = vcombine.low %v737_v12, %v745_v13  ;;  %v8468_v0 = vcombine.high %v753_v22, %v761_v23  ;;  %v832_v10 = vld [vmem:[#allocation8 + $0xb90] sm:$0xff]  ;;  %v833_v12 = vld [vmem:[#allocation8 + $0xb98] sm:$0xff] }
 0x230   :  { %7206 = vmatprep.subr.bf16.mxu1 %v8372_v29  ;;  %v8466_v29 = vcombine.high %v752_v18, %v760_v19  ;;  %v841_v13 = vld [vmem:[#allocation8 + $0xbd8] sm:$0xff] }
 0x232   :  { %7043 = vmatpush1.bf16.msra.mxu0 %v8369_v61  ;;  %v777_v61 = vld [vmem:[#allocation8 + $0x9d8] sm:$0xff] }
 0x233   :  { %7207 = vmatpush1.bf16.msra.mxu1 %v8371_v34  ;;  %7044 = vmatprep.subr.bf16.mxu0 %v8386_v25  ;;  %v8465_v34 = vcombine.low %v752_v18, %v760_v19  ;;  %v8467_v25 = vcombine.low %v753_v22, %v761_v23  ;;  %v8484_v36 = vcombine.high %v769_v33, %v777_v61  ;;  %v856_v22 = vld [vmem:[#allocation8 + $0xc50] sm:$0xff]  ;;  %v849_v23 = vld [vmem:[#allocation8 + $0xc18] sm:$0xff] }
 0x234   :  { %7208 = vmatprep.subr.bf16.mxu1 %v8388_v35  ;;  %v8482_v35 = vcombine.high %v768_v30, %v776_v31  ;;  %v8548_v19 = vcombine.high %v833_v12, %v841_v13 }
 0x236   :  { %7045 = vmatpush1.bf16.msra.mxu0 %v8385_v40  ;;  %v793_v40 = vld [vmem:[#allocation8 + $0xa58] sm:$0xff] }
 0x237   :  { %7209 = vmatpush1.bf16.msra.mxu1 %v8387_v42  ;;  %7046 = vmatprep.subr.bf16.mxu0 %v8402_v7  ;;  %v8481_v42 = vcombine.low %v768_v30, %v776_v31  ;;  %v8483_v7 = vcombine.low %v769_v33, %v777_v61  ;;  %v8500_v45 = vcombine.high %v785_v39, %v793_v40  ;;  %v864_v31 = vld [vmem:[#allocation8 + $0xc90] sm:$0xff]  ;;  %v865_v61 = vld [vmem:[#allocation8 + $0xc98] sm:$0xff] }
 0x238   :  { %7210 = vmatprep.subr.bf16.mxu1 %v8404_v44  ;;  %v8498_v44 = vcombine.high %v784_v37, %v792_v38  ;;  %v872_v33 = vld [vmem:[#allocation8 + $0xcd0] sm:$0xff] }
 0x23a   :  { %7047 = vmatpush1.bf16.msra.mxu0 %v8401_v49  ;;  %v809_v49 = vld [vmem:[#allocation8 + $0xad8] sm:$0xff] }
 0x23b   :  { %7211 = vmatpush1.bf16.msra.mxu1 %v8403_v50  ;;  %7048 = vmatprep.subr.bf16.mxu0 %v8418_v52  ;;  %v8497_v50 = vcombine.low %v784_v37, %v792_v38  ;;  %v8499_v52 = vcombine.low %v785_v39, %v793_v40  ;;  %v8516_v27 = vcombine.high %v801_v47, %v809_v49  ;;  %v880_v38 = vld [vmem:[#allocation8 + $0xd10] sm:$0xff]  ;;  %v881_v40 = vld [vmem:[#allocation8 + $0xd18] sm:$0xff] }
 0x23c   :  { %7212 = vmatprep.subr.bf16.mxu1 %v8420_v54  ;;  %v8514_v54 = vcombine.high %v800_v46, %v808_v9  ;;  %v888_v39 = vld [vmem:[#allocation8 + $0xd50] sm:$0xff] }
 0x23e   :  { %7049 = vmatpush1.bf16.msra.mxu0 %v8417_v58  ;;  %v825_v58 = vld [vmem:[#allocation8 + $0xb58] sm:$0xff] }
 0x23f   :  { %7213 = vmatpush1.bf16.msra.mxu1 %v8419_v63  ;;  %7059 = vmatprep.subr.bf16.mxu0 %v8434_v4  ;;  %v8513_v63 = vcombine.low %v800_v46, %v808_v9  ;;  %v8515_v4 = vcombine.low %v801_v47, %v809_v49  ;;  %v8532_v6 = vcombine.high %v817_v57, %v825_v58  ;;  %v896_v9 = vld [vmem:[#allocation8 + $0xd90] sm:$0xff]  ;;  %v897_v49 = vld [vmem:[#allocation8 + $0xd98] sm:$0xff] }
 0x240   :  { %7223 = vmatprep.subr.bf16.mxu1 %v8436_v5  ;;  %v8530_v5 = vcombine.high %v816_v55, %v824_v56  ;;  %v904_v47 = vld [vmem:[#allocation8 + $0xdd0] sm:$0xff] }
 0x241   :  { %7051 = vmatmul.mubr.bf16.vlgmr.msra.gmra.mrb[8].mxu0 %v9638_v17 }
 0x242   :  { %7215 = vmatmul.mubr.bf16.vlgmr.msra.gmra.mrb[8].mxu1 %v9638_v17  ;;  %7060 = vmatpush1.bf16.msra.mxu0 %v8433_v11  ;;  %v840_v11 = vld [vmem:[#allocation8 + $0xbd0] sm:$0xff] }
 0x243   :  { %7091 = vmatprep.mubr.bf16.mxu0 %v9646_v26  ;;  %7224 = vmatpush1.bf16.msra.mxu1 %v8435_v14  ;;  %v8529_v14 = vcombine.low %v816_v55, %v824_v56  ;;  %v8546_v18 = vcombine.high %v832_v10, %v840_v11  ;;  %v912_v56 = vld [vmem:[#allocation8 + $0xe10] sm:$0xff] }
 0x244   :  { %7255 = vmatprep.mubr.bf16.mxu1 %v9646_v26  ;;  %7061 = vmatprep.subr.bf16.mxu0 %v8450_v15  ;;  %v8531_v15 = vcombine.low %v817_v57, %v825_v58  ;;  %v920_v57 = vld [vmem:[#allocation8 + $0xe50] sm:$0xff]  ;;  %v913_v58 = vld [vmem:[#allocation8 + $0xe18] sm:$0xff] }
 0x245   :  { %7225 = vmatprep.subr.bf16.mxu1 %v8452_v21  ;;  %v848_v21 = vld [vmem:[#allocation8 + $0xc10] sm:$0xff] }
 0x246   :  { %7062 = vmatpush1.bf16.msra.mxu0 %v8449_v24  ;;  %v857_v24 = vld [vmem:[#allocation8 + $0xc58] sm:$0xff] }
 0x247   :  { %7226 = vmatpush1.bf16.msra.mxu1 %v8451_v28  ;;  %7063 = vmatprep.subr.bf16.mxu0 %v8466_v29  ;;  %v8545_v28 = vcombine.low %v832_v10, %v840_v11  ;;  %v8547_v29 = vcombine.low %v833_v12, %v841_v13  ;;  %v8564_v30 = vcombine.high %v849_v23, %v857_v24  ;;  %v928_v11 = vld [vmem:[#allocation8 + $0xe90] sm:$0xff]  ;;  %v929_v13 = vld [vmem:[#allocation8 + $0xe98] sm:$0xff] }
 0x248   :  { %7227 = vmatprep.subr.bf16.mxu1 %v8468_v0  ;;  %v8562_v0 = vcombine.high %v848_v21, %v856_v22  ;;  %v936_v12 = vld [vmem:[#allocation8 + $0xed0] sm:$0xff] }
 0x24a   :  { %7064 = vmatpush1.bf16.msra.mxu0 %v8465_v34  ;;  %v873_v34 = vld [vmem:[#allocation8 + $0xcd8] sm:$0xff] }
 0x24b   :  { %7228 = vmatpush1.bf16.msra.mxu1 %v8467_v25  ;;  %7065 = vmatprep.subr.bf16.mxu0 %v8482_v35  ;;  %v8561_v25 = vcombine.low %v848_v21, %v856_v22  ;;  %v8563_v35 = vcombine.low %v849_v23, %v857_v24  ;;  %v8580_v37 = vcombine.high %v865_v61, %v873_v34  ;;  %v944_v22 = vld [vmem:[#allocation8 + $0xf10] sm:$0xff]  ;;  %v945_v24 = vld [vmem:[#allocation8 + $0xf18] sm:$0xff] }
 0x24c   :  { %7229 = vmatprep.subr.bf16.mxu1 %v8484_v36  ;;  %v8578_v36 = vcombine.high %v864_v31, %v872_v33  ;;  %v952_v23 = vld [vmem:[#allocation8 + $0xf50] sm:$0xff] }
 0x24e   :  { %7066 = vmatpush1.bf16.msra.mxu0 %v8481_v42  ;;  %v889_v42 = vld [vmem:[#allocation8 + $0xd58] sm:$0xff] }
 0x24f   :  { %7230 = vmatpush1.bf16.msra.mxu1 %v8483_v7  ;;  %7067 = vmatprep.subr.bf16.mxu0 %v8498_v44  ;;  %v8577_v7 = vcombine.low %v864_v31, %v872_v33  ;;  %v8579_v44 = vcombine.low %v865_v61, %v873_v34  ;;  %v8596_v46 = vcombine.high %v881_v40, %v889_v42  ;;  %v960_v33 = vld [vmem:[#allocation8 + $0xf90] sm:$0xff]  ;;  %v961_v34 = vld [vmem:[#allocation8 + $0xf98] sm:$0xff] }
 0x250   :  { %7231 = vmatprep.subr.bf16.mxu1 %v8500_v45  ;;  %v8594_v45 = vcombine.high %v880_v38, %v888_v39  ;;  %v968_v61 = vld [vmem:[#allocation8 + $0xfd0] sm:$0xff] }
 0x252   :  { %7068 = vmatpush1.bf16.msra.mxu0 %v8497_v50  ;;  %v905_v50 = vld [vmem:[#allocation8 + $0xdd8] sm:$0xff] }
 0x253   :  { %7232 = vmatpush1.bf16.msra.mxu1 %v8499_v52  ;;  %7069 = vmatprep.subr.bf16.mxu0 %v8514_v54  ;;  %v8593_v52 = vcombine.low %v880_v38, %v888_v39  ;;  %v8595_v54 = vcombine.low %v881_v40, %v889_v42  ;;  %v8612_v55 = vcombine.high %v897_v49, %v905_v50  ;;  %v976_v39 = vld [vmem:[#allocation8 + $0x1010] sm:$0xff]  ;;  %v977_v42 = vld [vmem:[#allocation8 + $0x1018] sm:$0xff] }
 0x254   :  { %7233 = vmatprep.subr.bf16.mxu1 %v8516_v27  ;;  %v8610_v27 = vcombine.high %v896_v9, %v904_v47  ;;  %v984_v40 = vld [vmem:[#allocation8 + $0x1050] sm:$0xff] }
 0x256   :  { %7070 = vmatpush1.bf16.msra.mxu0 %v8513_v63  ;;  %v921_v63 = vld [vmem:[#allocation8 + $0xe58] sm:$0xff] }
 0x257   :  { %7234 = vmatpush1.bf16.msra.mxu1 %v8515_v4  ;;  %7071 = vmatprep.subr.bf16.mxu0 %v8530_v5  ;;  %v8609_v4 = vcombine.low %v896_v9, %v904_v47  ;;  %v8611_v5 = vcombine.low %v897_v49, %v905_v50  ;;  %v8628_v10 = vcombine.high %v913_v58, %v921_v63  ;;  %v992_v47 = vld [vmem:[#allocation8 + $0x1090] sm:$0xff] }
 0x258   :  { %7235 = vmatprep.subr.bf16.mxu1 %v8532_v6  ;;  %v8626_v6 = vcombine.high %v912_v56, %v920_v57  ;;  %v1000_v49 = vld [vmem:[#allocation8 + $0x10d0] sm:$0xff]  ;;  %v8689_v50 = vcombine.low %v976_v39, %v984_v40 }
 0x25a   :  { %7072 = vmatpush1.bf16.msra.mxu0 %v8529_v14  ;;  %v937_v14 = vld [vmem:[#allocation8 + $0xed8] sm:$0xff] }
 0x25b   :  { %7236 = vmatpush1.bf16.msra.mxu1 %v8531_v15  ;;  %7073 = vmatprep.subr.bf16.mxu0 %v8546_v18  ;;  %v8625_v15 = vcombine.low %v912_v56, %v920_v57  ;;  %v8627_v18 = vcombine.low %v913_v58, %v921_v63  ;;  %v8644_v21 = vcombine.high %v929_v13, %v937_v14  ;;  %v1008_v56 = vld [vmem:[#allocation8 + $0x1110] sm:$0xff]  ;;  %v1009_v63 = vld [vmem:[#allocation8 + $0x1118] sm:$0xff] }
 0x25c   :  { %7237 = vmatprep.subr.bf16.mxu1 %v8548_v19  ;;  %v8642_v19 = vcombine.high %v928_v11, %v936_v12  ;;  %v1016_v57 = vld [vmem:[#allocation8 + $0x1150] sm:$0xff] }
 0x25e   :  { %7074 = vmatpush1.bf16.msra.mxu0 %v8545_v28  ;;  %v953_v28 = vld [vmem:[#allocation8 + $0xf58] sm:$0xff] }
 0x25f   :  { %7238 = vmatpush1.bf16.msra.mxu1 %v8547_v29  ;;  %7075 = vmatprep.subr.bf16.mxu0 %v8562_v0  ;;  %v8641_v29 = vcombine.low %v928_v11, %v936_v12  ;;  %v8643_v0 = vcombine.low %v929_v13, %v937_v14  ;;  %v8660_v31 = vcombine.high %v945_v24, %v953_v28  ;;  %v1024_v12 = vld [vmem:[#allocation8 + $0x1190] sm:$0xff]  ;;  %v1025_v14 = vld [vmem:[#allocation8 + $0x1198] sm:$0xff] }
 0x260   :  { %7239 = vmatprep.subr.bf16.mxu1 %v8564_v30  ;;  %v8658_v30 = vcombine.high %v944_v22, %v952_v23  ;;  %v1032_v13 = vld [vmem:[#allocation8 + $0x11d0] sm:$0xff] }
 0x262   :  { %7076 = vmatpush1.bf16.msra.mxu0 %v8561_v25  ;;  %v969_v25 = vld [vmem:[#allocation8 + $0xfd8] sm:$0xff] }
 0x263   :  { %7240 = vmatpush1.bf16.msra.mxu1 %v8563_v35  ;;  %7077 = vmatprep.subr.bf16.mxu0 %v8578_v36  ;;  %v8657_v35 = vcombine.low %v944_v22, %v952_v23  ;;  %v8659_v36 = vcombine.low %v945_v24, %v953_v28  ;;  %v8676_v38 = vcombine.high %v961_v34, %v969_v25  ;;  %v1040_v23 = vld [vmem:[#allocation8 + $0x1210] sm:$0xff]  ;;  %v1041_v28 = vld [vmem:[#allocation8 + $0x1218] sm:$0xff] }
 0x264   :  { %7241 = vmatprep.subr.bf16.mxu1 %v8580_v37  ;;  %v8674_v37 = vcombine.high %v960_v33, %v968_v61  ;;  %v1048_v24 = vld [vmem:[#allocation8 + $0x1250] sm:$0xff] }
 0x266   :  { %7078 = vmatpush1.bf16.msra.mxu0 %v8577_v7  ;;  %v985_v7 = vld [vmem:[#allocation8 + $0x1058] sm:$0xff] }
 0x267   :  { %7242 = vmatpush1.bf16.msra.mxu1 %v8579_v44  ;;  %7079 = vmatprep.subr.bf16.mxu0 %v8594_v45  ;;  %v8673_v44 = vcombine.low %v960_v33, %v968_v61  ;;  %v8675_v45 = vcombine.low %v961_v34, %v969_v25  ;;  %v8692_v9 = vcombine.high %v977_v42, %v985_v7  ;;  %v1056_v61 = vld [vmem:[#allocation8 + $0x1290] sm:$0xff]  ;;  %v1057_v25 = vld [vmem:[#allocation8 + $0x1298] sm:$0xff] }
 0x268   :  { %7243 = vmatprep.subr.bf16.mxu1 %v8596_v46  ;;  %v8690_v46 = vcombine.high %v976_v39, %v984_v40  ;;  %v1064_v34 = vld [vmem:[#allocation8 + $0x12d0] sm:$0xff] }
 0x269   :  { %v1072_v40 = vld [vmem:[#allocation8 + $0x1310] sm:$0xff] }
 0x26a   :  { %7080 = vmatpush1.bf16.msra.mxu0 %v8593_v52  ;;  %v993_v52 = vld [vmem:[#allocation8 + $0x1098] sm:$0xff] }
 0x26b   :  { %7244 = vmatpush1.bf16.msra.mxu1 %v8595_v54  ;;  %7081 = vmatprep.subr.bf16.mxu0 %v8610_v27  ;;  %v1001_v54 = vld [vmem:[#allocation8 + $0x10d8] sm:$0xff]  ;;  %v8691_v27 = vcombine.low %v977_v42, %v985_v7  ;;  %v1080_v42 = vld [vmem:[#allocation8 + $0x1350] sm:$0xff] }
 0x26c   :  { %7245 = vmatprep.subr.bf16.mxu1 %v8612_v55  ;;  %v8706_v55 = vcombine.high %v992_v47, %v1000_v49  ;;  %v8708_v58 = vcombine.high %v993_v52, %v1001_v54  ;;  %v1073_v7 = vld [vmem:[#allocation8 + $0x1318] sm:$0xff] }
 0x26e   :  { %7082 = vmatpush1.bf16.msra.mxu0 %v8609_v4  ;;  %v1017_v4 = vld [vmem:[#allocation8 + $0x1158] sm:$0xff] }
 0x26f   :  { %7246 = vmatpush1.bf16.msra.mxu1 %v8611_v5  ;;  %7083 = vmatprep.subr.bf16.mxu0 %v8626_v6  ;;  %v8705_v5 = vcombine.low %v992_v47, %v1000_v49  ;;  %v8707_v6 = vcombine.low %v993_v52, %v1001_v54  ;;  %v8724_v11 = vcombine.high %v1009_v63, %v1017_v4  ;;  %v1088_v49 = vld [vmem:[#allocation8 + $0x1390] sm:$0xff]  ;;  %v1089_v52 = vld [vmem:[#allocation8 + $0x1398] sm:$0xff] }
 0x270   :  { %7247 = vmatprep.subr.bf16.mxu1 %v8628_v10  ;;  %v8722_v10 = vcombine.high %v1008_v56, %v1016_v57  ;;  %v1097_v54 = vld [vmem:[#allocation8 + $0x13d8] sm:$0xff] }
 0x272   :  { %7084 = vmatpush1.bf16.msra.mxu0 %v8625_v15  ;;  %v1033_v15 = vld [vmem:[#allocation8 + $0x11d8] sm:$0xff] }
 0x273   :  { %7248 = vmatpush1.bf16.msra.mxu1 %v8627_v18  ;;  %7085 = vmatprep.subr.bf16.mxu0 %v8642_v19  ;;  %v8721_v18 = vcombine.low %v1008_v56, %v1016_v57  ;;  %v8723_v19 = vcombine.low %v1009_v63, %v1017_v4  ;;  %v8740_v22 = vcombine.high %v1025_v14, %v1033_v15  ;;  %v1112_v63 = vld [vmem:[#allocation8 + $0x1450] sm:$0xff]  ;;  %v1105_v4 = vld [vmem:[#allocation8 + $0x1418] sm:$0xff] }
 0x274   :  { %7249 = vmatprep.subr.bf16.mxu1 %v8644_v21  ;;  %v8738_v21 = vcombine.high %v1024_v12, %v1032_v13  ;;  %v8804_v57 = vcombine.high %v1089_v52, %v1097_v54 }
 0x276   :  { %7086 = vmatpush1.bf16.msra.mxu0 %v8641_v29  ;;  %v1049_v29 = vld [vmem:[#allocation8 + $0x1258] sm:$0xff] }
 0x277   :  { %7250 = vmatpush1.bf16.msra.mxu1 %v8643_v0  ;;  %7087 = vmatprep.subr.bf16.mxu0 %v8658_v30  ;;  %v8737_v0 = vcombine.low %v1024_v12, %v1032_v13  ;;  %v8739_v30 = vcombine.low %v1025_v14, %v1033_v15  ;;  %v8756_v33 = vcombine.high %v1041_v28, %v1049_v29  ;;  %v1120_v13 = vld [vmem:[#allocation8 + $0x1490] sm:$0xff]  ;;  %v1121_v15 = vld [vmem:[#allocation8 + $0x1498] sm:$0xff] }
 0x278   :  { %7251 = vmatprep.subr.bf16.mxu1 %v8660_v31  ;;  %v8754_v31 = vcombine.high %v1040_v23, %v1048_v24  ;;  %v1128_v14 = vld [vmem:[#allocation8 + $0x14d0] sm:$0xff] }
 0x27a   :  { %7088 = vmatpush1.bf16.msra.mxu0 %v8657_v35  ;;  %v1065_v35 = vld [vmem:[#allocation8 + $0x12d8] sm:$0xff] }
 0x27b   :  { %7252 = vmatpush1.bf16.msra.mxu1 %v8659_v36  ;;  %7089 = vmatprep.subr.bf16.mxu0 %v8674_v37  ;;  %v8753_v36 = vcombine.low %v1040_v23, %v1048_v24  ;;  %v8755_v37 = vcombine.low %v1041_v28, %v1049_v29  ;;  %v8772_v39 = vcombine.high %v1057_v25, %v1065_v35  ;;  %v1136_v24 = vld [vmem:[#allocation8 + $0x1510] sm:$0xff]  ;;  %v1137_v29 = vld [vmem:[#allocation8 + $0x1518] sm:$0xff] }
 0x27c   :  { %7253 = vmatprep.subr.bf16.mxu1 %v8676_v38  ;;  %v8770_v38 = vcombine.high %v1056_v61, %v1064_v34  ;;  %v1144_v28 = vld [vmem:[#allocation8 + $0x1550] sm:$0xff] }
 0x27e   :  { %7090 = vmatpush1.bf16.msra.mxu0 %v8673_v44  ;;  %v1081_v44 = vld [vmem:[#allocation8 + $0x1358] sm:$0xff] }
 0x27f   :  { %7254 = vmatpush1.bf16.msra.mxu1 %v8675_v45  ;;  %7100 = vmatprep.subr.bf16.mxu0 %v8690_v46  ;;  %v8769_v45 = vcombine.low %v1056_v61, %v1064_v34  ;;  %v8771_v46 = vcombine.low %v1057_v25, %v1065_v35  ;;  %v8788_v47 = vcombine.high %v1073_v7, %v1081_v44  ;;  %v1152_v34 = vld [vmem:[#allocation8 + $0x1590] sm:$0xff]  ;;  %v1153_v35 = vld [vmem:[#allocation8 + $0x1598] sm:$0xff] }
 0x280   :  { %7264 = vmatprep.subr.bf16.mxu1 %v8692_v9  ;;  %v8786_v9 = vcombine.high %v1072_v40, %v1080_v42  ;;  %v1160_v25 = vld [vmem:[#allocation8 + $0x15d0] sm:$0xff] }
 0x281   :  { %7092 = vmatmul.mubr.bf16.vlgmr.msra.gmra.mrb[8].mxu0 %v9668_v53 }
 0x282   :  { %7256 = vmatmul.mubr.bf16.vlgmr.msra.gmra.mrb[8].mxu1 %v9668_v53  ;;  %7101 = vmatpush1.bf16.msra.mxu0 %v8689_v50  ;;  %v1096_v50 = vld [vmem:[#allocation8 + $0x13d0] sm:$0xff] }
 0x283   :  { %7132 = vmatprep.mubr.bf16.mxu0 %v9670_v3  ;;  %7265 = vmatpush1.bf16.msra.mxu1 %v8691_v27  ;;  %v8785_v27 = vcombine.low %v1072_v40, %v1080_v42  ;;  %v8802_v56 = vcombine.high %v1088_v49, %v1096_v50  ;;  %v1168_v42 = vld [vmem:[#allocation8 + $0x1610] sm:$0xff] }
 0x284   :  { %7296 = vmatprep.mubr.bf16.mxu1 %v9670_v3  ;;  %7102 = vmatprep.subr.bf16.mxu0 %v8706_v55  ;;  %v8787_v55 = vcombine.low %v1073_v7, %v1081_v44  ;;  %v1176_v7 = vld [vmem:[#allocation8 + $0x1650] sm:$0xff]  ;;  %v1169_v44 = vld [vmem:[#allocation8 + $0x1618] sm:$0xff] }
 0x285   :  { %7266 = vmatprep.subr.bf16.mxu1 %v8708_v58  ;;  %v1104_v58 = vld [vmem:[#allocation8 + $0x1410] sm:$0xff] }
 0x286   :  { %7103 = vmatpush1.bf16.msra.mxu0 %v8705_v5  ;;  %v1113_v5 = vld [vmem:[#allocation8 + $0x1458] sm:$0xff] }
 0x287   :  { %7267 = vmatpush1.bf16.msra.mxu1 %v8707_v6  ;;  %7104 = vmatprep.subr.bf16.mxu0 %v8722_v10  ;;  %v8801_v6 = vcombine.low %v1088_v49, %v1096_v50  ;;  %v8803_v10 = vcombine.low %v1089_v52, %v1097_v54  ;;  %v8820_v12 = vcombine.high %v1105_v4, %v1113_v5  ;;  %v1184_v50 = vld [vmem:[#allocation8 + $0x1690] sm:$0xff]  ;;  %v1185_v54 = vld [vmem:[#allocation8 + $0x1698] sm:$0xff] }
 0x288   :  { %7268 = vmatprep.subr.bf16.mxu1 %v8724_v11  ;;  %v8818_v11 = vcombine.high %v1104_v58, %v1112_v63  ;;  %v1192_v52 = vld [vmem:[#allocation8 + $0x16d0] sm:$0xff] }
 0x28a   :  { %7105 = vmatpush1.bf16.msra.mxu0 %v8721_v18  ;;  %v1129_v18 = vld [vmem:[#allocation8 + $0x14d8] sm:$0xff] }
 0x28b   :  { %7269 = vmatpush1.bf16.msra.mxu1 %v8723_v19  ;;  %7106 = vmatprep.subr.bf16.mxu0 %v8738_v21  ;;  %v8817_v19 = vcombine.low %v1104_v58, %v1112_v63  ;;  %v8819_v21 = vcombine.low %v1105_v4, %v1113_v5  ;;  %v8836_v23 = vcombine.high %v1121_v15, %v1129_v18  ;;  %v1200_v63 = vld [vmem:[#allocation8 + $0x1710] sm:$0xff]  ;;  %v1201_v5 = vld [vmem:[#allocation8 + $0x1718] sm:$0xff] }
 0x28c   :  { %7270 = vmatprep.subr.bf16.mxu1 %v8740_v22  ;;  %v8834_v22 = vcombine.high %v1120_v13, %v1128_v14  ;;  %v1208_v4 = vld [vmem:[#allocation8 + $0x1750] sm:$0xff] }
 0x28e   :  { %7107 = vmatpush1.bf16.msra.mxu0 %v8737_v0  ;;  %v1145_v0 = vld [vmem:[#allocation8 + $0x1558] sm:$0xff] }
 0x28f   :  { %7271 = vmatpush1.bf16.msra.mxu1 %v8739_v30  ;;  %7108 = vmatprep.subr.bf16.mxu0 %v8754_v31  ;;  %v8833_v30 = vcombine.low %v1120_v13, %v1128_v14  ;;  %v8835_v31 = vcombine.low %v1121_v15, %v1129_v18  ;;  %v8852_v61 = vcombine.high %v1137_v29, %v1145_v0  ;;  %v1216_v14 = vld [vmem:[#allocation8 + $0x1790] sm:$0xff]  ;;  %v1217_v18 = vld [vmem:[#allocation8 + $0x1798] sm:$0xff] }
 0x290   :  { %7272 = vmatprep.subr.bf16.mxu1 %v8756_v33  ;;  %v8850_v33 = vcombine.high %v1136_v24, %v1144_v28  ;;  %v1224_v15 = vld [vmem:[#allocation8 + $0x17d0] sm:$0xff] }
 0x292   :  { %7109 = vmatpush1.bf16.msra.mxu0 %v8753_v36  ;;  %v1161_v36 = vld [vmem:[#allocation8 + $0x15d8] sm:$0xff] }
 0x293   :  { %7273 = vmatpush1.bf16.msra.mxu1 %v8755_v37  ;;  %7110 = vmatprep.subr.bf16.mxu0 %v8770_v38  ;;  %v8849_v37 = vcombine.low %v1136_v24, %v1144_v28  ;;  %v8851_v38 = vcombine.low %v1137_v29, %v1145_v0  ;;  %v8868_v40 = vcombine.high %v1153_v35, %v1161_v36  ;;  %v1232_v28 = vld [vmem:[#allocation8 + $0x1810] sm:$0xff]  ;;  %v1233_v0 = vld [vmem:[#allocation8 + $0x1818] sm:$0xff] }
 0x294   :  { %7274 = vmatprep.subr.bf16.mxu1 %v8772_v39  ;;  %v8866_v39 = vcombine.high %v1152_v34, %v1160_v25  ;;  %v1240_v29 = vld [vmem:[#allocation8 + $0x1850] sm:$0xff] }
 0x296   :  { %7111 = vmatpush1.bf16.msra.mxu0 %v8769_v45  ;;  %v1177_v45 = vld [vmem:[#allocation8 + $0x1658] sm:$0xff] }
 0x297   :  { %7275 = vmatpush1.bf16.msra.mxu1 %v8771_v46  ;;  %7112 = vmatprep.subr.bf16.mxu0 %v8786_v9  ;;  %v8865_v46 = vcombine.low %v1152_v34, %v1160_v25  ;;  %v8867_v9 = vcombine.low %v1153_v35, %v1161_v36  ;;  %v8884_v49 = vcombine.high %v1169_v44, %v1177_v45  ;;  %v1248_v25 = vld [vmem:[#allocation8 + $0x1890] sm:$0xff] }
 0x298   :  { %7276 = vmatprep.subr.bf16.mxu1 %v8788_v47  ;;  %v8882_v47 = vcombine.high %v1168_v42, %v1176_v7  ;;  %v1256_v35 = vld [vmem:[#allocation8 + $0x18d0] sm:$0xff]  ;;  %v8945_v36 = vcombine.low %v1232_v28, %v1240_v29 }
 0x29a   :  { %7113 = vmatpush1.bf16.msra.mxu0 %v8785_v27  ;;  %v1193_v27 = vld [vmem:[#allocation8 + $0x16d8] sm:$0xff] }
 0x29b   :  { %7277 = vmatpush1.bf16.msra.mxu1 %v8787_v55  ;;  %7114 = vmatprep.subr.bf16.mxu0 %v8802_v56  ;;  %v8881_v55 = vcombine.low %v1168_v42, %v1176_v7  ;;  %v8883_v56 = vcombine.low %v1169_v44, %v1177_v45  ;;  %v8900_v58 = vcombine.high %v1185_v54, %v1193_v27  ;;  %v1264_v42 = vld [vmem:[#allocation8 + $0x1910] sm:$0xff]  ;;  %v1265_v45 = vld [vmem:[#allocation8 + $0x1918] sm:$0xff] }
 0x29c   :  { %7278 = vmatprep.subr.bf16.mxu1 %v8804_v57  ;;  %v8898_v57 = vcombine.high %v1184_v50, %v1192_v52  ;;  %v1272_v7 = vld [vmem:[#allocation8 + $0x1950] sm:$0xff] }
 0x29e   :  { %7115 = vmatpush1.bf16.msra.mxu0 %v8801_v6  ;;  %v1209_v6 = vld [vmem:[#allocation8 + $0x1758] sm:$0xff] }
 0x29f   :  { %7279 = vmatpush1.bf16.msra.mxu1 %v8803_v10  ;;  %7116 = vmatprep.subr.bf16.mxu0 %v8818_v11  ;;  %v8897_v10 = vcombine.low %v1184_v50, %v1192_v52  ;;  %v8899_v11 = vcombine.low %v1185_v54, %v1193_v27  ;;  %v8916_v13 = vcombine.high %v1201_v5, %v1209_v6  ;;  %v1280_v52 = vld [vmem:[#allocation8 + $0x1990] sm:$0xff]  ;;  %v1281_v27 = vld [vmem:[#allocation8 + $0x1998] sm:$0xff] }
 0x2a0   :  { %7280 = vmatprep.subr.bf16.mxu1 %v8820_v12  ;;  %v8914_v12 = vcombine.high %v1200_v63, %v1208_v4  ;;  %v1288_v54 = vld [vmem:[#allocation8 + $0x19d0] sm:$0xff] }
 0x2a2   :  { %7117 = vmatpush1.bf16.msra.mxu0 %v8817_v19  ;;  %v1225_v19 = vld [vmem:[#allocation8 + $0x17d8] sm:$0xff] }
 0x2a3   :  { %7281 = vmatpush1.bf16.msra.mxu1 %v8819_v21  ;;  %7118 = vmatprep.subr.bf16.mxu0 %v8834_v22  ;;  %v8913_v21 = vcombine.low %v1200_v63, %v1208_v4  ;;  %v8915_v22 = vcombine.low %v1201_v5, %v1209_v6  ;;  %v8932_v24 = vcombine.high %v1217_v18, %v1225_v19  ;;  %v1296_v4 = vld [vmem:[#allocation8 + $0x1a10] sm:$0xff]  ;;  %v1297_v6 = vld [vmem:[#allocation8 + $0x1a18] sm:$0xff] }
 0x2a4   :  { %7282 = vmatprep.subr.bf16.mxu1 %v8836_v23  ;;  %v8930_v23 = vcombine.high %v1216_v14, %v1224_v15  ;;  %v1304_v5 = vld [vmem:[#allocation8 + $0x1a50] sm:$0xff] }
 0x2a6   :  { %7119 = vmatpush1.bf16.msra.mxu0 %v8833_v30  ;;  %v1241_v30 = vld [vmem:[#allocation8 + $0x1858] sm:$0xff] }
 0x2a7   :  { %7283 = vmatpush1.bf16.msra.mxu1 %v8835_v31  ;;  %7120 = vmatprep.subr.bf16.mxu0 %v8850_v33  ;;  %v8929_v31 = vcombine.low %v1216_v14, %v1224_v15  ;;  %v8931_v33 = vcombine.low %v1217_v18, %v1225_v19  ;;  %v8948_v34 = vcombine.high %v1233_v0, %v1241_v30  ;;  %v1312_v15 = vld [vmem:[#allocation8 + $0x1a90] sm:$0xff]  ;;  %v1313_v19 = vld [vmem:[#allocation8 + $0x1a98] sm:$0xff] }
 0x2a8   :  { %7284 = vmatprep.subr.bf16.mxu1 %v8852_v61  ;;  %v8946_v61 = vcombine.high %v1232_v28, %v1240_v29  ;;  %v1320_v18 = vld [vmem:[#allocation8 + $0x1ad0] sm:$0xff]  ;;  %v9509_v29 = vmov 1966171168  }
 0x2a9   :  { %v9026_v28 = vcombine.high %v1312_v15, %v1320_v18 }
 0x2aa   :  { %7121 = vmatpush1.bf16.msra.mxu0 %v8849_v37  ;;  %v1249_v37 = vld [vmem:[#allocation8 + $0x1898] sm:$0xff] }
 0x2ab   :  { %7285 = vmatpush1.bf16.msra.mxu1 %v8851_v38  ;;  %7122 = vmatprep.subr.bf16.mxu0 %v8866_v39  ;;  %v1257_v38 = vld [vmem:[#allocation8 + $0x18d8] sm:$0xff]  ;;  %v8947_v39 = vcombine.low %v1233_v0, %v1241_v30  ;;  %v8055_v0 = vunpack.c.l.s4 %v9509_v29 }
 0x2ac   :  { %7286 = vmatprep.subr.bf16.mxu1 %v8868_v40  ;;  %v8962_v40 = vcombine.high %v1248_v25, %v1256_v35  ;;  %v8964_v44 = vcombine.high %v1249_v37, %v1257_v38 }
 0x2ae   :  { %7123 = vmatpush1.bf16.msra.mxu0 %v8865_v46  ;;  %v1273_v46 = vld [vmem:[#allocation8 + $0x1958] sm:$0xff] }
 0x2af   :  { %7287 = vmatpush1.bf16.msra.mxu1 %v8867_v9  ;;  %7124 = vmatprep.subr.bf16.mxu0 %v8882_v47  ;;  %v8961_v9 = vcombine.low %v1248_v25, %v1256_v35  ;;  %v8963_v47 = vcombine.low %v1249_v37, %v1257_v38  ;;  %v8980_v50 = vcombine.high %v1265_v45, %v1273_v46  ;;  %v1329_v25 = vld [vmem:[#allocation8 + $0x1b18] sm:$0xff] }
 0x2b0   :  { %7288 = vmatprep.subr.bf16.mxu1 %v8884_v49  ;;  %v8978_v49 = vcombine.high %v1264_v42, %v1272_v7  ;;  %v1337_v35 = vld [vmem:[#allocation8 + $0x1b58] sm:$0xff]  ;;  %v9025_v38 = vcombine.low %v1312_v15, %v1320_v18 }
 0x2b2   :  { %7125 = vmatpush1.bf16.msra.mxu0 %v8881_v55  ;;  %v1289_v55 = vld [vmem:[#allocation8 + $0x19d8] sm:$0xff] }
 0x2b3   :  { %7289 = vmatpush1.bf16.msra.mxu1 %v8883_v56  ;;  %7126 = vmatprep.subr.bf16.mxu0 %v8898_v57  ;;  %v8977_v56 = vcombine.low %v1264_v42, %v1272_v7  ;;  %v8979_v57 = vcombine.low %v1265_v45, %v1273_v46  ;;  %v8996_v63 = vcombine.high %v1281_v27, %v1289_v55  ;;  %v1344_v46 = vld [vmem:[#allocation8 + $0x1b90] sm:$0xff] }
 0x2b4   :  { %7290 = vmatprep.subr.bf16.mxu1 %v8900_v58  ;;  %v8994_v58 = vcombine.high %v1280_v52, %v1288_v54  ;;  %v9044_v45 = vcombine.high %v1329_v25, %v1337_v35 }
 0x2b6   :  { %7127 = vmatpush1.bf16.msra.mxu0 %v8897_v10  ;;  %v1305_v10 = vld [vmem:[#allocation8 + $0x1a58] sm:$0xff] }
 0x2b7   :  { %7291 = vmatpush1.bf16.msra.mxu1 %v8899_v11  ;;  %7128 = vmatprep.subr.bf16.mxu0 %v8914_v12  ;;  %v8993_v11 = vcombine.low %v1280_v52, %v1288_v54  ;;  %v8995_v12 = vcombine.low %v1281_v27, %v1289_v55  ;;  %v9012_v14 = vcombine.high %v1297_v6, %v1305_v10  ;;  %v1345_v54 = vld [vmem:[#allocation8 + $0x1b98] sm:$0xff] }
 0x2b8   :  { %7292 = vmatprep.subr.bf16.mxu1 %v8916_v13  ;;  %v9010_v13 = vcombine.high %v1296_v4, %v1304_v5  ;;  %v1353_v27 = vld [vmem:[#allocation8 + $0x1bd8] sm:$0xff] }
 0x2b9   :  { %v9060_v18 = vcombine.high %v1345_v54, %v1353_v27 }
 0x2ba   :  { %7129 = vmatpush1.bf16.msra.mxu0 %v8913_v21  ;;  %v1321_v21 = vld [vmem:[#allocation8 + $0x1ad8] sm:$0xff] }
 0x2bb   :  { %7293 = vmatpush1.bf16.msra.mxu1 %v8915_v22  ;;  %7130 = vmatprep.subr.bf16.mxu0 %v8930_v23  ;;  %v9009_v22 = vcombine.low %v1296_v4, %v1304_v5  ;;  %v1486_v23 = vld [vmem:[#allocation10] sm:$0xff]  ;;  %v9028_v30 = vcombine.high %v1313_v19, %v1321_v21 }
 0x2bc   :  { %7294 = vmatprep.subr.bf16.mxu1 %v8932_v24  ;;  %v9011_v24 = vcombine.low %v1297_v6, %v1305_v10  ;;  %v1505_v37 = vrot.slane %v1486_v23, %v9628_v1 }
 0x2be   :  { %7131 = vmatpush1.bf16.msra.mxu0 %v8929_v31  ;;  %v1328_v31 = vld [vmem:[#allocation8 + $0x1b10] sm:$0xff] }
 0x2bf   :  { %7295 = vmatpush1.bf16.msra.mxu1 %v8931_v33  ;;  %7141 = vmatprep.subr.bf16.mxu0 %v8946_v61  ;;  %v1336_v33 = vld [vmem:[#allocation8 + $0x1b50] sm:$0xff]  ;;  %v1493_v61 = vrot.slane %v1486_v23, %v9618_v60 }
 0x2c0   :  { %7305 = vmatprep.subr.bf16.mxu1 %v8948_v34  ;;  %v1501_v34 = vrot.slane %v1486_v23, %v9657_v8 }
 0x2c1   :  { %7133 = vmatmul.mubr.bf16.vlgmr.msra.gmra.mrb[8].mxu0 %v9688_v41 }
 0x2c2   :  { %7297 = vmatmul.mubr.bf16.vlgmr.msra.gmra.mrb[8].mxu1 %v9688_v41  ;;  %7142 = vmatpush1.bf16.msra.mxu0 %v8945_v36  ;;  %v1497_v36 = vrot.slane %v1486_v23, %v9623_v62  ;;  %v1369_v23 = vld [vmem:[#allocation8 + $0x1c58] sm:$0xff] }
 0x2c3   :  { %7173 = vmatprep.mubr.bf16.mxu0 %v9690_v48  ;;  %7306 = vmatpush1.bf16.msra.mxu1 %v8947_v39  ;;  %v9027_v39 = vcombine.low %v1313_v19, %v1321_v21  ;;  %v1360_v19 = vld [vmem:[#allocation8 + $0x1c10] sm:$0xff] }
 0x2c4   :  { %7337 = vmatprep.mubr.bf16.mxu1 %v9690_v48  ;;  %7143 = vmatprep.subr.bf16.mxu0 %v8962_v40  ;;  %v9042_v40 = vcombine.high %v1328_v31, %v1336_v33  ;;  %v1368_v21 = vld [vmem:[#allocation8 + $0x1c50] sm:$0xff] }
 0x2c5   :  { %7307 = vmatprep.subr.bf16.mxu1 %v8964_v44  ;;  %v8056_v44 = vunpack.c.0.s8 %v8055_v0  ;;  %v9059_v0 = vcombine.low %v1345_v54, %v1353_v27  ;;  %v1409_v54 = vld [vmem:[#allocation8 + $0x1d98] sm:$0xff] }
 0x2c6   :  { %7144 = vmatpush1.bf16.msra.mxu0 %v8961_v9  ;;  %v1352_v9 = vld [vmem:[#allocation8 + $0x1bd0] sm:$0xff]  ;;  %v1417_v27 = vld [vmem:[#allocation8 + $0x1dd8] sm:$0xff] }
 0x2c7   :  { %7308 = vmatpush1.bf16.msra.mxu1 %v8963_v47  ;;  %7145 = vmatprep.subr.bf16.mxu0 %v8978_v49  ;;  %v9057_v29 = vcombine.low %v1344_v46, %v1352_v9 }
 0x2c8   :  { %7309 = vmatprep.subr.bf16.mxu1 %v8980_v50 }
 0x2ca   :  { %7146 = vmatpush1.bf16.msra.mxu0 %v8977_v56 }
 0x2cb   :  { %7310 = vmatpush1.bf16.msra.mxu1 %v8979_v57  ;;  %7147 = vmatprep.subr.bf16.mxu0 %v8994_v58 }
 0x2cc   :  { %7311 = vmatprep.subr.bf16.mxu1 %v8996_v63  ;;  %v9041_v63 = vcombine.low %v1328_v31, %v1336_v33 }
 0x2ce   :  { %7148 = vmatpush1.bf16.msra.mxu0 %v8993_v11  ;;  %v9043_v11 = vcombine.low %v1329_v25, %v1337_v35  ;;  %v1377_v25 = vld [vmem:[#allocation8 + $0x1c98] sm:$0xff] }
 0x2cf   :  { %7312 = vmatpush1.bf16.msra.mxu1 %v8995_v12  ;;  %7149 = vmatprep.subr.bf16.mxu0 %v9010_v13  ;;  %v9058_v12 = vcombine.high %v1344_v46, %v1352_v9  ;;  %v1385_v35 = vld [vmem:[#allocation8 + $0x1cd8] sm:$0xff] }
 0x2d0   :  { %7313 = vmatprep.subr.bf16.mxu1 %v9012_v14  ;;  %v9724_v14 = vsub.s32 %v8056_v44, %v9615_v59  ;;  %v1393_v44 = vld [vmem:[#allocation8 + $0x1d18] sm:$0xff]  ;;  %v9091_v9 = vcombine.low %v1377_v25, %v1385_v35 }
 0x2d2   :  { %7150 = vmatpush1.bf16.msra.mxu0 %v9009_v22  ;;  %v1361_v22 = vld [vmem:[#allocation8 + $0x1c18] sm:$0xff] }
 0x2d3   :  { %7314 = vmatpush1.bf16.msra.mxu1 %v9011_v24  ;;  %7151 = vmatprep.subr.bf16.mxu0 %v9026_v28  ;;  %v9076_v33 = vcombine.high %v1361_v22, %v1369_v23 }
 0x2d4   :  { %v6847_v42 = vpop.f32.mrb[4].mxu0  ;;  %v7011_v7 = vpop.f32.mrb[4].mxu1  ;;  %7315 = vmatprep.subr.bf16.mxu1 %v9028_v30  ;;  %v9074_v30 = vcombine.high %v1360_v19, %v1368_v21 }
 0x2d5   :  { %v9237_v47 = vadd.f32 %v6847_v42, %v1493_v61  ;;  %v9239_v49 = vadd.f32 %v7011_v7, %v1501_v34  ;;  %v6849_v50 = vpop.f32.mrb[5].mxu0  ;;  %v7013_v52 = vpop.f32.mrb[5].mxu1  ;;  %v1376_v61 = vld [vmem:[#allocation8 + $0x1c90] sm:$0xff] }
 0x2d6   :  { %v9238_v55 = vadd.f32 %v6849_v50, %v1497_v36  ;;  %v9240_v56 = vadd.f32 %v7013_v52, %v1505_v37  ;;  %v6851_v57 = vpop.f32.mrb[6].mxu0  ;;  %v7015_v58 = vpop.f32.mrb[6].mxu1  ;;  %7152 = vmatpush1.bf16.msra.mxu0 %v9025_v38  ;;  %v1384_v34 = vld [vmem:[#allocation8 + $0x1cd0] sm:$0xff]  ;;  %v9073_v37 = vcombine.low %v1360_v19, %v1368_v21  ;;  %v9075_v38 = vcombine.low %v1361_v22, %v1369_v23  ;;  %v1441_v19 = vld [vmem:[#allocation8 + $0x1e98] sm:$0xff] }
 0x2d7   :  { %v8002_v4 = vmax.f32 %v9237_v47, 0.0  ;;  %v8004_v5 = vmax.f32 %v9239_v49, 0.0  ;;  %7316 = vmatpush1.bf16.msra.mxu1 %v9027_v39  ;;  %v6852_v6 = vpop.f32.mrb[7].mxu0  ;;  %v7016_v10 = vpop.f32.mrb[7].mxu1  ;;  %7153 = vmatprep.subr.bf16.mxu0 %v9042_v40  ;;  %v9090_v39 = vcombine.high %v1376_v61, %v1384_v34  ;;  %v9092_v40 = vcombine.high %v1377_v25, %v1385_v35  ;;  %v1392_v42 = vld [vmem:[#allocation8 + $0x1d10] sm:$0xff]  ;;  %v1449_v21 = vld [vmem:[#allocation8 + $0x1ed8] sm:$0xff] }
 0x2d8   :  { %v8003_v13 = vmax.f32 %v9238_v55, 0.0  ;;  %v8005_v15 = vmax.f32 %v9240_v56, 0.0  ;;  %7317 = vmatprep.subr.bf16.mxu1 %v9044_v45  ;;  %v1400_v7 = vld [vmem:[#allocation8 + $0x1d50] sm:$0xff]  ;;  %v1401_v45 = vld [vmem:[#allocation8 + $0x1d58] sm:$0xff]  ;;  %v9089_v46 = vcombine.low %v1376_v61, %v1384_v34  ;;  %v9124_v58 = vcombine.high %v1409_v54, %v1417_v27 }
 0x2d9   :  { %v9106_v47 = vcombine.high %v1392_v42, %v1400_v7  ;;  %v9108_v49 = vcombine.high %v1393_v44, %v1401_v45  ;;  %v1408_v50 = vld [vmem:[#allocation8 + $0x1d90] sm:$0xff]  ;;  %v9105_v55 = vcombine.low %v1392_v42, %v1400_v7  ;;  %v9107_v56 = vcombine.low %v1393_v44, %v1401_v45  ;;  %v1433_v6 = vld [vmem:[#allocation8 + $0x1e58] sm:$0xff]  ;;  %v466_v44 = vld [vmem:[#allocation8 + $0x20] sm:$0xff] }
 0x2da   :  { %v9197_v24 = vpack.c.bf16 %v8003_v13, %v8002_v4  ;;  %v9198_v28 = vpack.c.bf16 %v8005_v15, %v8004_v5  ;;  %7154 = vmatpush1.bf16.msra.mxu0 %v9041_v63  ;;  %v1416_v52 = vld [vmem:[#allocation8 + $0x1dd0] sm:$0xff]  ;;  %v1425_v5 = vld [vmem:[#allocation8 + $0x1e18] sm:$0xff]  ;;  %v474_v45 = vld [vmem:[#allocation8 + $0x60] sm:$0xff] }
 0x2db   :  { %7318 = vmatpush1.bf16.msra.mxu1 %v9043_v11  ;;  %7155 = vmatprep.subr.bf16.mxu0 %v9058_v12  ;;  %v9122_v57 = vcombine.high %v1408_v50, %v1416_v52  ;;  %v1424_v63 = vld [vmem:[#allocation8 + $0x1e10] sm:$0xff]  ;;  %v9121_v10 = vcombine.low %v1408_v50, %v1416_v52  ;;  %v9123_v11 = vcombine.low %v1409_v54, %v1417_v27  ;;  %v482_v54 = vld [vmem:[#allocation8 + $0xa0] sm:$0xff] }
 0x2dc   :  { %v8060_v31 = vrot.slane %v9197_v24, %v9724_v14  ;;  %v8067_v59 = vrot.slane %v9198_v28, %v9724_v14  ;;  %7319 = vmatprep.subr.bf16.mxu1 %v9060_v18  ;;  %v1432_v4 = vld [vmem:[#allocation8 + $0x1e50] sm:$0xff]  ;;  %v9140_v13 = vcombine.high %v1425_v5, %v1433_v6  ;;  %v9139_v23 = vcombine.low %v1425_v5, %v1433_v6  ;;  %v490_v27 = vld [vmem:[#allocation8 + $0xe0] sm:$0xff] }
 0x2dd   :  { %v9138_v12 = vcombine.high %v1424_v63, %v1432_v4  ;;  %v1440_v15 = vld [vmem:[#allocation8 + $0x1e90] sm:$0xff]  ;;  %v9137_v22 = vcombine.low %v1424_v63, %v1432_v4  ;;  %v9156_v28 = vcombine.high %v1441_v19, %v1449_v21  ;;  %v8182_v50 = vcombine.high %v466_v44, %v474_v45  ;;  %v498_v4 = vld [vmem:[#allocation8 + $0x120] sm:$0xff] }
 0x2de   :  { %v9728_v36 = vcombine.low %v8060_v31, %v8067_v59  ;;  %7156 = vmatpush1.bf16.msra.mxu0 %v9057_v29  ;;  %v1448_v18 = vld [vmem:[#allocation8 + $0x1ed0] sm:$0xff]  ;;  %v1465_v31 = vld [vmem:[#allocation8 + $0x1f58] sm:$0xff]  ;;  %v8198_v63 = vcombine.high %v482_v54, %v490_v27  ;;  %v506_v5 = vld [vmem:[#allocation8 + $0x160] sm:$0xff] }
 0x2df   :  { %7320 = vmatpush1.bf16.msra.mxu1 %v9059_v0  ;;  %7157 = vmatprep.subr.bf16.mxu0 %v9074_v30  ;;  %v9154_v24 = vcombine.high %v1440_v15, %v1448_v18  ;;  %v1456_v29 = vld [vmem:[#allocation8 + $0x1f10] sm:$0xff]  ;;  %v1457_v30 = vld [vmem:[#allocation8 + $0x1f18] sm:$0xff]  ;;  %v9153_v59 = vcombine.low %v1440_v15, %v1448_v18  ;;  %v8214_v15 = vcombine.high %v498_v4, %v506_v5 }
 0x2e0   :  { %7321 = vmatprep.subr.bf16.mxu1 %v9076_v33  ;;  %v1464_v0 = vld [vmem:[#allocation8 + $0x1f50] sm:$0xff]  ;;  %v9155_v33 = vcombine.low %v1441_v19, %v1449_v21  ;;  %v9172_v34 = vcombine.high %v1457_v30, %v1465_v31  ;;  %v514_v19 = vld [vmem:[#allocation8 + $0x1a0] sm:$0xff] }
 0x2e1   :  { %v9170_v61 = vcombine.high %v1456_v29, %v1464_v0  ;;  %v1472_v25 = vld [vmem:[#allocation8 + $0x1f90] sm:$0xff]  ;;  %v522_v21 = vld [vmem:[#allocation8 + $0x1e0] sm:$0xff] }
 0x2e2   :  { %7158 = vmatpush1.bf16.msra.mxu0 %v9073_v37  ;;  %v1480_v35 = vld [vmem:[#allocation8 + $0x1fd0] sm:$0xff]  ;;  %v1473_v37 = vld [vmem:[#allocation8 + $0x1f98] sm:$0xff] }
 0x2e3   :  { %7322 = vmatpush1.bf16.msra.mxu1 %v9075_v38  ;;  %7159 = vmatprep.subr.bf16.mxu0 %v9090_v39  ;;  %v1481_v38 = vld [vmem:[#allocation8 + $0x1fd8] sm:$0xff]  ;;  %v9169_v39 = vcombine.low %v1456_v29, %v1464_v0  ;;  %v9186_v42 = vcombine.high %v1472_v25, %v1480_v35  ;;  %v8230_v29 = vcombine.high %v514_v19, %v522_v21 }
 0x2e4   :  { %7323 = vmatprep.subr.bf16.mxu1 %v9092_v40  ;;  %v9171_v40 = vcombine.low %v1457_v30, %v1465_v31  ;;  %v9188_v7 = vcombine.high %v1473_v37, %v1481_v38  ;;  %v530_v30 = vld [vmem:[#allocation8 + $0x220] sm:$0xff] }
 0x2e5   :  { %v538_v31 = vld [vmem:[#allocation8 + $0x260] sm:$0xff] }
 0x2e6   :  { %7160 = vmatpush1.bf16.msra.mxu0 %v9089_v46  ;;  %v467_v46 = vld [vmem:[#allocation8 + $0x28] sm:$0xff] }
 0x2e7   :  { %7324 = vmatpush1.bf16.msra.mxu1 %v9091_v9  ;;  %7161 = vmatprep.subr.bf16.mxu0 %v9106_v47  ;;  %v475_v9 = vld [vmem:[#allocation8 + $0x68] sm:$0xff]  ;;  %v9185_v47 = vcombine.low %v1472_v25, %v1480_v35  ;;  %v8246_v25 = vcombine.high %v530_v30, %v538_v31 }
 0x2e8   :  { %7325 = vmatprep.subr.bf16.mxu1 %v9108_v49  ;;  %v9187_v49 = vcombine.low %v1473_v37, %v1481_v38  ;;  %v8184_v52 = vcombine.high %v467_v46, %v475_v9  ;;  %v546_v37 = vld [vmem:[#allocation8 + $0x2a0] sm:$0xff] }
 0x2e9   :  { %v554_v38 = vld [vmem:[#allocation8 + $0x2e0] sm:$0xff] }
 0x2ea   :  { %7162 = vmatpush1.bf16.msra.mxu0 %v9105_v55  ;;  %v8181_v55 = vcombine.low %v466_v44, %v474_v45  ;;  %v8262_v44 = vcombine.high %v546_v37, %v554_v38 }
 0x2eb   :  { %7326 = vmatpush1.bf16.msra.mxu1 %v9107_v56  ;;  %7163 = vmatprep.subr.bf16.mxu0 %v9122_v57  ;;  %v483_v56 = vld [vmem:[#allocation8 + $0xa8] sm:$0xff] }
 0x2ec   :  { %7327 = vmatprep.subr.bf16.mxu1 %v9124_v58  ;;  %v491_v57 = vld [vmem:[#allocation8 + $0xe8] sm:$0xff]  ;;  %v8183_v58 = vcombine.low %v467_v46, %v475_v9  ;;  %v562_v46 = vld [vmem:[#allocation8 + $0x320] sm:$0xff] }
 0x2ed   :  { %v8200_v6 = vcombine.high %v483_v56, %v491_v57  ;;  %v570_v9 = vld [vmem:[#allocation8 + $0x360] sm:$0xff] }
 0x2ee   :  { %7164 = vmatpush1.bf16.msra.mxu0 %v9121_v10  ;;  %v499_v10 = vld [vmem:[#allocation8 + $0x128] sm:$0xff] }
 0x2ef   :  { %7328 = vmatpush1.bf16.msra.mxu1 %v9123_v11  ;;  %7165 = vmatprep.subr.bf16.mxu0 %v9138_v12  ;;  %v507_v11 = vld [vmem:[#allocation8 + $0x168] sm:$0xff]  ;;  %v8197_v12 = vcombine.low %v482_v54, %v490_v27  ;;  %v8278_v54 = vcombine.high %v562_v46, %v570_v9 }
 0x2f0   :  { %7329 = vmatprep.subr.bf16.mxu1 %v9140_v13  ;;  %v8199_v13 = vcombine.low %v483_v56, %v491_v57  ;;  %v8216_v18 = vcombine.high %v499_v10, %v507_v11  ;;  %v586_v56 = vld [vmem:[#allocation8 + $0x3e0] sm:$0xff]  ;;  %v579_v57 = vld [vmem:[#allocation8 + $0x3a8] sm:$0xff] }
 0x2f2   :  { %7166 = vmatpush1.bf16.msra.mxu0 %v9137_v22  ;;  %v515_v22 = vld [vmem:[#allocation8 + $0x1a8] sm:$0xff] }
 0x2f3   :  { %7330 = vmatpush1.bf16.msra.mxu1 %v9139_v23  ;;  %7167 = vmatprep.subr.bf16.mxu0 %v9154_v24  ;;  %v523_v23 = vld [vmem:[#allocation8 + $0x1e8] sm:$0xff]  ;;  %v8213_v24 = vcombine.low %v498_v4, %v506_v5 }
 0x2f4   :  { %7331 = vmatprep.subr.bf16.mxu1 %v9156_v28  ;;  %v8215_v28 = vcombine.low %v499_v10, %v507_v11  ;;  %v8232_v0 = vcombine.high %v515_v22, %v523_v23  ;;  %v594_v10 = vld [vmem:[#allocation8 + $0x420] sm:$0xff] }
 0x2f5   :  { %v602_v11 = vld [vmem:[#allocation8 + $0x460] sm:$0xff] }
 0x2f6   :  { %7168 = vmatpush1.bf16.msra.mxu0 %v9153_v59  ;;  %v531_v59 = vld [vmem:[#allocation8 + $0x228] sm:$0xff] }
 0x2f7   :  { %7332 = vmatpush1.bf16.msra.mxu1 %v9155_v33  ;;  %7169 = vmatprep.subr.bf16.mxu0 %v9170_v61  ;;  %v539_v33 = vld [vmem:[#allocation8 + $0x268] sm:$0xff]  ;;  %v8229_v61 = vcombine.low %v514_v19, %v522_v21  ;;  %v8310_v19 = vcombine.high %v594_v10, %v602_v11 }
 0x2f8   :  { %7333 = vmatprep.subr.bf16.mxu1 %v9172_v34  ;;  %v8231_v34 = vcombine.low %v515_v22, %v523_v23  ;;  %v8248_v35 = vcombine.high %v531_v59, %v539_v33  ;;  %v610_v22 = vld [vmem:[#allocation8 + $0x4a0] sm:$0xff] }
 0x2f9   :  { %v618_v23 = vld [vmem:[#allocation8 + $0x4e0] sm:$0xff] }
 0x2fa   :  { %7170 = vmatpush1.bf16.msra.mxu0 %v9169_v39  ;;  %v547_v39 = vld [vmem:[#allocation8 + $0x2a8] sm:$0xff] }
 0x2fb   :  { %7334 = vmatpush1.bf16.msra.mxu1 %v9171_v40  ;;  %7171 = vmatprep.subr.bf16.mxu0 %v9186_v42  ;;  %v555_v40 = vld [vmem:[#allocation8 + $0x2e8] sm:$0xff]  ;;  %v8245_v42 = vcombine.low %v530_v30, %v538_v31  ;;  %v8326_v30 = vcombine.high %v610_v22, %v618_v23 }
 0x2fc   :  { %7335 = vmatprep.subr.bf16.mxu1 %v9188_v7  ;;  %v8247_v7 = vcombine.low %v531_v59, %v539_v33  ;;  %v8264_v45 = vcombine.high %v547_v39, %v555_v40  ;;  %v626_v59 = vld [vmem:[#allocation8 + $0x520] sm:$0xff] }
 0x2fd   :  { %v634_v33 = vld [vmem:[#allocation8 + $0x560] sm:$0xff] }
 0x2fe   :  { %7172 = vmatpush1.bf16.msra.mxu0 %v9185_v47  ;;  %v563_v47 = vld [vmem:[#allocation8 + $0x328] sm:$0xff] }
 0x2ff   :  { %7336 = vmatpush1.bf16.msra.mxu1 %v9187_v49  ;;  %7346 = vmatprep.subr.bf16.mxu0 %v8182_v50  ;;  %v571_v49 = vld [vmem:[#allocation8 + $0x368] sm:$0xff]  ;;  %v8261_v50 = vcombine.low %v546_v37, %v554_v38  ;;  %v8342_v37 = vcombine.high %v626_v59, %v634_v33 }
 0x300   :  { %7510 = vmatprep.subr.bf16.mxu1 %v8184_v52  ;;  %v8263_v52 = vcombine.low %v547_v39, %v555_v40  ;;  %v8280_v27 = vcombine.high %v563_v47, %v571_v49  ;;  %v8279_v4 = vcombine.low %v563_v47, %v571_v49  ;;  %v642_v39 = vld [vmem:[#allocation8 + $0x5a0] sm:$0xff] }
 0x301   :  { %7174 = vmatmul.mubr.bf16.vlgmr.msra.gmra.mrb[8].mxu0 %v9701_v32  ;;  %v650_v40 = vld [vmem:[#allocation8 + $0x5e0] sm:$0xff] }
 0x302   :  { %7338 = vmatmul.mubr.bf16.vlgmr.msra.gmra.mrb[8].mxu1 %v9701_v32  ;;  %7347 = vmatpush1.bf16.msra.mxu0 %v8181_v55  ;;  %v578_v55 = vld [vmem:[#allocation8 + $0x3a0] sm:$0xff] }
 0x303   :  { %7378 = vmatprep.mubr.bf16.mxu0 %v9636_v16  ;;  %7511 = vmatpush1.bf16.msra.mxu1 %v8183_v58  ;;  %v587_v58 = vld [vmem:[#allocation8 + $0x3e8] sm:$0xff]  ;;  %v8294_v5 = vcombine.high %v578_v55, %v586_v56  ;;  %v658_v47 = vld [vmem:[#allocation8 + $0x620] sm:$0xff] }
 0x304   :  { %7542 = vmatprep.mubr.bf16.mxu1 %v9636_v16  ;;  %7348 = vmatprep.subr.bf16.mxu0 %v8198_v63  ;;  %v8277_v63 = vcombine.low %v562_v46, %v570_v9  ;;  %v8358_v46 = vcombine.high %v642_v39, %v650_v40  ;;  %v666_v49 = vld [vmem:[#allocation8 + $0x660] sm:$0xff] }
 0x305   :  { %7512 = vmatprep.subr.bf16.mxu1 %v8200_v6  ;;  %v8296_v6 = vcombine.high %v579_v57, %v587_v58 }
 0x306   :  { %7349 = vmatpush1.bf16.msra.mxu0 %v8197_v12  ;;  %v595_v12 = vld [vmem:[#allocation8 + $0x428] sm:$0xff] }
 0x307   :  { %7513 = vmatpush1.bf16.msra.mxu1 %v8199_v13  ;;  %7350 = vmatprep.subr.bf16.mxu0 %v8214_v15  ;;  %v603_v13 = vld [vmem:[#allocation8 + $0x468] sm:$0xff]  ;;  %v8293_v15 = vcombine.low %v578_v55, %v586_v56  ;;  %v8374_v55 = vcombine.high %v658_v47, %v666_v49 }
 0x308   :  { %7514 = vmatprep.subr.bf16.mxu1 %v8216_v18  ;;  %v8295_v18 = vcombine.low %v579_v57, %v587_v58  ;;  %v8312_v21 = vcombine.high %v595_v12, %v603_v13  ;;  %v674_v57 = vld [vmem:[#allocation8 + $0x6a0] sm:$0xff] }
 0x309   :  { %v682_v58 = vld [vmem:[#allocation8 + $0x6e0] sm:$0xff] }
 0x30a   :  { %7351 = vmatpush1.bf16.msra.mxu0 %v8213_v24  ;;  %v611_v24 = vld [vmem:[#allocation8 + $0x4a8] sm:$0xff] }
 0x30b   :  { %7515 = vmatpush1.bf16.msra.mxu1 %v8215_v28  ;;  %7352 = vmatprep.subr.bf16.mxu0 %v8230_v29  ;;  %v619_v28 = vld [vmem:[#allocation8 + $0x4e8] sm:$0xff]  ;;  %v8309_v29 = vcombine.low %v594_v10, %v602_v11  ;;  %v8390_v10 = vcombine.high %v674_v57, %v682_v58 }
 0x30c   :  { %7516 = vmatprep.subr.bf16.mxu1 %v8232_v0  ;;  %v8311_v0 = vcombine.low %v595_v12, %v603_v13  ;;  %v8328_v31 = vcombine.high %v611_v24, %v619_v28  ;;  %v690_v12 = vld [vmem:[#allocation8 + $0x720] sm:$0xff] }
 0x30d   :  { %v698_v13 = vld [vmem:[#allocation8 + $0x760] sm:$0xff] }
 0x30e   :  { %7353 = vmatpush1.bf16.msra.mxu0 %v8229_v61  ;;  %v627_v61 = vld [vmem:[#allocation8 + $0x528] sm:$0xff] }
 0x30f   :  { %7517 = vmatpush1.bf16.msra.mxu1 %v8231_v34  ;;  %7354 = vmatprep.subr.bf16.mxu0 %v8246_v25  ;;  %v635_v34 = vld [vmem:[#allocation8 + $0x568] sm:$0xff]  ;;  %v8325_v25 = vcombine.low %v610_v22, %v618_v23  ;;  %v8406_v22 = vcombine.high %v690_v12, %v698_v13 }
 0x310   :  { %7518 = vmatprep.subr.bf16.mxu1 %v8248_v35  ;;  %v8327_v35 = vcombine.low %v611_v24, %v619_v28  ;;  %v8344_v38 = vcombine.high %v627_v61, %v635_v34  ;;  %v706_v24 = vld [vmem:[#allocation8 + $0x7a0] sm:$0xff] }
 0x311   :  { %v714_v28 = vld [vmem:[#allocation8 + $0x7e0] sm:$0xff] }
 0x312   :  { %7355 = vmatpush1.bf16.msra.mxu0 %v8245_v42  ;;  %v643_v42 = vld [vmem:[#allocation8 + $0x5a8] sm:$0xff] }
 0x313   :  { %7519 = vmatpush1.bf16.msra.mxu1 %v8247_v7  ;;  %7356 = vmatprep.subr.bf16.mxu0 %v8262_v44  ;;  %v651_v7 = vld [vmem:[#allocation8 + $0x5e8] sm:$0xff]  ;;  %v8341_v44 = vcombine.low %v626_v59, %v634_v33  ;;  %v8422_v59 = vcombine.high %v706_v24, %v714_v28 }
 0x314   :  { %7520 = vmatprep.subr.bf16.mxu1 %v8264_v45  ;;  %v8343_v45 = vcombine.low %v627_v61, %v635_v34  ;;  %v8360_v9 = vcombine.high %v643_v42, %v651_v7  ;;  %v722_v61 = vld [vmem:[#allocation8 + $0x820] sm:$0xff] }
 0x315   :  { %v730_v34 = vld [vmem:[#allocation8 + $0x860] sm:$0xff] }
 0x316   :  { %7357 = vmatpush1.bf16.msra.mxu0 %v8261_v50  ;;  %v659_v50 = vld [vmem:[#allocation8 + $0x628] sm:$0xff] }
 0x317   :  { %7521 = vmatpush1.bf16.msra.mxu1 %v8263_v52  ;;  %7358 = vmatprep.subr.bf16.mxu0 %v8278_v54  ;;  %v667_v52 = vld [vmem:[#allocation8 + $0x668] sm:$0xff]  ;;  %v8357_v54 = vcombine.low %v642_v39, %v650_v40  ;;  %v8438_v39 = vcombine.high %v722_v61, %v730_v34 }
 0x318   :  { %7522 = vmatprep.subr.bf16.mxu1 %v8280_v27  ;;  %v8359_v27 = vcombine.low %v643_v42, %v651_v7  ;;  %v8376_v56 = vcombine.high %v659_v50, %v667_v52  ;;  %v738_v42 = vld [vmem:[#allocation8 + $0x8a0] sm:$0xff] }
 0x319   :  { %v746_v7 = vld [vmem:[#allocation8 + $0x8e0] sm:$0xff] }
 0x31a   :  { %7359 = vmatpush1.bf16.msra.mxu0 %v8277_v63  ;;  %v675_v63 = vld [vmem:[#allocation8 + $0x6a8] sm:$0xff] }
 0x31b   :  { %7523 = vmatpush1.bf16.msra.mxu1 %v8279_v4  ;;  %7360 = vmatprep.subr.bf16.mxu0 %v8294_v5  ;;  %v683_v4 = vld [vmem:[#allocation8 + $0x6e8] sm:$0xff]  ;;  %v8373_v5 = vcombine.low %v658_v47, %v666_v49  ;;  %v8454_v47 = vcombine.high %v738_v42, %v746_v7  ;;  %v754_v49 = vld [vmem:[#allocation8 + $0x920] sm:$0xff] }
 0x31c   :  { %7524 = vmatprep.subr.bf16.mxu1 %v8296_v6  ;;  %v8375_v6 = vcombine.low %v659_v50, %v667_v52  ;;  %v8392_v11 = vcombine.high %v675_v63, %v683_v4  ;;  %v762_v50 = vld [vmem:[#allocation8 + $0x960] sm:$0xff] }
 0x31e   :  { %7361 = vmatpush1.bf16.msra.mxu0 %v8293_v15  ;;  %v691_v15 = vld [vmem:[#allocation8 + $0x728] sm:$0xff] }
 0x31f   :  { %7525 = vmatpush1.bf16.msra.mxu1 %v8295_v18  ;;  %7362 = vmatprep.subr.bf16.mxu0 %v8310_v19  ;;  %v699_v18 = vld [vmem:[#allocation8 + $0x768] sm:$0xff]  ;;  %v8389_v19 = vcombine.low %v674_v57, %v682_v58  ;;  %v8470_v57 = vcombine.high %v754_v49, %v762_v50 }
 0x320   :  { %7526 = vmatprep.subr.bf16.mxu1 %v8312_v21  ;;  %v8391_v21 = vcombine.low %v675_v63, %v683_v4  ;;  %v8408_v23 = vcombine.high %v691_v15, %v699_v18  ;;  %v770_v63 = vld [vmem:[#allocation8 + $0x9a0] sm:$0xff] }
 0x321   :  { %v778_v4 = vld [vmem:[#allocation8 + $0x9e0] sm:$0xff] }
 0x322   :  { %7363 = vmatpush1.bf16.msra.mxu0 %v8309_v29  ;;  %v707_v29 = vld [vmem:[#allocation8 + $0x7a8] sm:$0xff] }
 0x323   :  { %7527 = vmatpush1.bf16.msra.mxu1 %v8311_v0  ;;  %7364 = vmatprep.subr.bf16.mxu0 %v8326_v30  ;;  %v715_v0 = vld [vmem:[#allocation8 + $0x7e8] sm:$0xff]  ;;  %v8405_v30 = vcombine.low %v690_v12, %v698_v13  ;;  %v8486_v12 = vcombine.high %v770_v63, %v778_v4 }
 0x324   :  { %7528 = vmatprep.subr.bf16.mxu1 %v8328_v31  ;;  %v8407_v31 = vcombine.low %v691_v15, %v699_v18  ;;  %v8424_v33 = vcombine.high %v707_v29, %v715_v0  ;;  %v786_v15 = vld [vmem:[#allocation8 + $0xa20] sm:$0xff] }
 0x325   :  { %v794_v18 = vld [vmem:[#allocation8 + $0xa60] sm:$0xff] }
 0x326   :  { %7365 = vmatpush1.bf16.msra.mxu0 %v8325_v25  ;;  %v723_v25 = vld [vmem:[#allocation8 + $0x828] sm:$0xff] }
 0x327   :  { %7529 = vmatpush1.bf16.msra.mxu1 %v8327_v35  ;;  %7366 = vmatprep.subr.bf16.mxu0 %v8342_v37  ;;  %v731_v35 = vld [vmem:[#allocation8 + $0x868] sm:$0xff]  ;;  %v8421_v37 = vcombine.low %v706_v24, %v714_v28  ;;  %v8502_v24 = vcombine.high %v786_v15, %v794_v18 }
 0x328   :  { %7530 = vmatprep.subr.bf16.mxu1 %v8344_v38  ;;  %v8423_v38 = vcombine.low %v707_v29, %v715_v0  ;;  %v8440_v40 = vcombine.high %v723_v25, %v731_v35  ;;  %v802_v29 = vld [vmem:[#allocation8 + $0xaa0] sm:$0xff] }
 0x329   :  { %v810_v0 = vld [vmem:[#allocation8 + $0xae0] sm:$0xff] }
 0x32a   :  { %7367 = vmatpush1.bf16.msra.mxu0 %v8341_v44  ;;  %v8437_v44 = vcombine.low %v722_v61, %v730_v34  ;;  %v8518_v61 = vcombine.high %v802_v29, %v810_v0 }
 0x32b   :  { %7531 = vmatpush1.bf16.msra.mxu1 %v8343_v45  ;;  %7368 = vmatprep.subr.bf16.mxu0 %v8358_v46  ;;  %v739_v45 = vld [vmem:[#allocation8 + $0x8a8] sm:$0xff] }
 0x32c   :  { %7532 = vmatprep.subr.bf16.mxu1 %v8360_v9  ;;  %v747_v46 = vld [vmem:[#allocation8 + $0x8e8] sm:$0xff]  ;;  %v8439_v9 = vcombine.low %v723_v25, %v731_v35  ;;  %v818_v25 = vld [vmem:[#allocation8 + $0xb20] sm:$0xff] }
 0x32d   :  { %v8456_v52 = vcombine.high %v739_v45, %v747_v46  ;;  %v826_v35 = vld [vmem:[#allocation8 + $0xb60] sm:$0xff] }
 0x32e   :  { %7369 = vmatpush1.bf16.msra.mxu0 %v8357_v54  ;;  %v755_v54 = vld [vmem:[#allocation8 + $0x928] sm:$0xff] }
 0x32f   :  { %7533 = vmatpush1.bf16.msra.mxu1 %v8359_v27  ;;  %7370 = vmatprep.subr.bf16.mxu0 %v8374_v55  ;;  %v763_v27 = vld [vmem:[#allocation8 + $0x968] sm:$0xff]  ;;  %v8453_v55 = vcombine.low %v738_v42, %v746_v7  ;;  %v8534_v42 = vcombine.high %v818_v25, %v826_v35 }
 0x330   :  { %7534 = vmatprep.subr.bf16.mxu1 %v8376_v56  ;;  %v8455_v56 = vcombine.low %v739_v45, %v747_v46  ;;  %v8472_v58 = vcombine.high %v755_v54, %v763_v27  ;;  %v842_v45 = vld [vmem:[#allocation8 + $0xbe0] sm:$0xff]  ;;  %v835_v46 = vld [vmem:[#allocation8 + $0xba8] sm:$0xff] }
 0x332   :  { %7371 = vmatpush1.bf16.msra.mxu0 %v8373_v5  ;;  %v771_v5 = vld [vmem:[#allocation8 + $0x9a8] sm:$0xff] }
 0x333   :  { %7535 = vmatpush1.bf16.msra.mxu1 %v8375_v6  ;;  %7372 = vmatprep.subr.bf16.mxu0 %v8390_v10  ;;  %v779_v6 = vld [vmem:[#allocation8 + $0x9e8] sm:$0xff]  ;;  %v8469_v10 = vcombine.low %v754_v49, %v762_v50 }
 0x334   :  { %7536 = vmatprep.subr.bf16.mxu1 %v8392_v11  ;;  %v8471_v11 = vcombine.low %v755_v54, %v763_v27  ;;  %v8488_v13 = vcombine.high %v771_v5, %v779_v6  ;;  %v850_v54 = vld [vmem:[#allocation8 + $0xc20] sm:$0xff] }
 0x335   :  { %v858_v27 = vld [vmem:[#allocation8 + $0xc60] sm:$0xff] }
 0x336   :  { %7373 = vmatpush1.bf16.msra.mxu0 %v8389_v19  ;;  %v787_v19 = vld [vmem:[#allocation8 + $0xa28] sm:$0xff] }
 0x337   :  { %7537 = vmatpush1.bf16.msra.mxu1 %v8391_v21  ;;  %7374 = vmatprep.subr.bf16.mxu0 %v8406_v22  ;;  %v795_v21 = vld [vmem:[#allocation8 + $0xa68] sm:$0xff]  ;;  %v8485_v22 = vcombine.low %v770_v63, %v778_v4  ;;  %v8566_v63 = vcombine.high %v850_v54, %v858_v27 }
 0x338   :  { %7538 = vmatprep.subr.bf16.mxu1 %v8408_v23  ;;  %v8487_v23 = vcombine.low %v771_v5, %v779_v6  ;;  %v8504_v28 = vcombine.high %v787_v19, %v795_v21  ;;  %v866_v5 = vld [vmem:[#allocation8 + $0xca0] sm:$0xff] }
 0x339   :  { %v874_v6 = vld [vmem:[#allocation8 + $0xce0] sm:$0xff] }
 0x33a   :  { %7375 = vmatpush1.bf16.msra.mxu0 %v8405_v30  ;;  %v803_v30 = vld [vmem:[#allocation8 + $0xaa8] sm:$0xff] }
 0x33b   :  { %7539 = vmatpush1.bf16.msra.mxu1 %v8407_v31  ;;  %7376 = vmatprep.subr.bf16.mxu0 %v8422_v59  ;;  %v811_v31 = vld [vmem:[#allocation8 + $0xae8] sm:$0xff]  ;;  %v8501_v59 = vcombine.low %v786_v15, %v794_v18  ;;  %v8582_v15 = vcombine.high %v866_v5, %v874_v6 }
 0x33c   :  { %7540 = vmatprep.subr.bf16.mxu1 %v8424_v33  ;;  %v8503_v33 = vcombine.low %v787_v19, %v795_v21  ;;  %v8520_v34 = vcombine.high %v803_v30, %v811_v31  ;;  %v882_v19 = vld [vmem:[#allocation8 + $0xd20] sm:$0xff] }
 0x33d   :  { %v890_v21 = vld [vmem:[#allocation8 + $0xd60] sm:$0xff] }
 0x33e   :  { %7377 = vmatpush1.bf16.msra.mxu0 %v8421_v37  ;;  %v819_v37 = vld [vmem:[#allocation8 + $0xb28] sm:$0xff] }
 0x33f   :  { %7541 = vmatpush1.bf16.msra.mxu1 %v8423_v38  ;;  %7387 = vmatprep.subr.bf16.mxu0 %v8438_v39  ;;  %v827_v38 = vld [vmem:[#allocation8 + $0xb68] sm:$0xff]  ;;  %v8517_v39 = vcombine.low %v802_v29, %v810_v0  ;;  %v8598_v29 = vcombine.high %v882_v19, %v890_v21 }
 0x340   :  { %7551 = vmatprep.subr.bf16.mxu1 %v8440_v40  ;;  %v8519_v40 = vcombine.low %v803_v30, %v811_v31  ;;  %v8536_v7 = vcombine.high %v819_v37, %v827_v38  ;;  %v8535_v49 = vcombine.low %v819_v37, %v827_v38  ;;  %v898_v30 = vld [vmem:[#allocation8 + $0xda0] sm:$0xff] }
 0x341   :  { %7379 = vmatmul.mubr.bf16.vlgmr.msra.gmra.mrb[12].mxu0 %v9638_v17  ;;  %v906_v31 = vld [vmem:[#allocation8 + $0xde0] sm:$0xff] }
 0x342   :  { %7543 = vmatmul.mubr.bf16.vlgmr.msra.gmra.mrb[12].mxu1 %v9638_v17  ;;  %7388 = vmatpush1.bf16.msra.mxu0 %v8437_v44  ;;  %v834_v44 = vld [vmem:[#allocation8 + $0xba0] sm:$0xff] }
 0x343   :  { %7419 = vmatprep.mubr.bf16.mxu0 %v9646_v26  ;;  %7552 = vmatpush1.bf16.msra.mxu1 %v8439_v9  ;;  %v843_v9 = vld [vmem:[#allocation8 + $0xbe8] sm:$0xff]  ;;  %v8550_v50 = vcombine.high %v834_v44, %v842_v45  ;;  %v914_v37 = vld [vmem:[#allocation8 + $0xe20] sm:$0xff] }
 0x344   :  { %7583 = vmatprep.mubr.bf16.mxu1 %v9646_v26  ;;  %7389 = vmatprep.subr.bf16.mxu0 %v8454_v47  ;;  %v8533_v47 = vcombine.low %v818_v25, %v826_v35  ;;  %v8614_v25 = vcombine.high %v898_v30, %v906_v31  ;;  %v922_v38 = vld [vmem:[#allocation8 + $0xe60] sm:$0xff] }
 0x345   :  { %7553 = vmatprep.subr.bf16.mxu1 %v8456_v52  ;;  %v8552_v52 = vcombine.high %v835_v46, %v843_v9 }
 0x346   :  { %7390 = vmatpush1.bf16.msra.mxu0 %v8453_v55  ;;  %v851_v55 = vld [vmem:[#allocation8 + $0xc28] sm:$0xff] }
 0x347   :  { %7554 = vmatpush1.bf16.msra.mxu1 %v8455_v56  ;;  %7391 = vmatprep.subr.bf16.mxu0 %v8470_v57  ;;  %v859_v56 = vld [vmem:[#allocation8 + $0xc68] sm:$0xff]  ;;  %v8549_v57 = vcombine.low %v834_v44, %v842_v45  ;;  %v8630_v44 = vcombine.high %v914_v37, %v922_v38 }
 0x348   :  { %7555 = vmatprep.subr.bf16.mxu1 %v8472_v58  ;;  %v8551_v58 = vcombine.low %v835_v46, %v843_v9  ;;  %v8568_v4 = vcombine.high %v851_v55, %v859_v56  ;;  %v930_v46 = vld [vmem:[#allocation8 + $0xea0] sm:$0xff] }
 0x349   :  { %v938_v9 = vld [vmem:[#allocation8 + $0xee0] sm:$0xff] }
 0x34a   :  { %7392 = vmatpush1.bf16.msra.mxu0 %v8469_v10  ;;  %v867_v10 = vld [vmem:[#allocation8 + $0xca8] sm:$0xff] }
 0x34b   :  { %7556 = vmatpush1.bf16.msra.mxu1 %v8471_v11  ;;  %7393 = vmatprep.subr.bf16.mxu0 %v8486_v12  ;;  %v875_v11 = vld [vmem:[#allocation8 + $0xce8] sm:$0xff]  ;;  %v8565_v12 = vcombine.low %v850_v54, %v858_v27  ;;  %v8646_v54 = vcombine.high %v930_v46, %v938_v9 }
 0x34c   :  { %7557 = vmatprep.subr.bf16.mxu1 %v8488_v13  ;;  %v8567_v13 = vcombine.low %v851_v55, %v859_v56  ;;  %v8584_v18 = vcombine.high %v867_v10, %v875_v11  ;;  %v946_v55 = vld [vmem:[#allocation8 + $0xf20] sm:$0xff] }
 0x34d   :  { %v954_v56 = vld [vmem:[#allocation8 + $0xf60] sm:$0xff] }
 0x34e   :  { %7394 = vmatpush1.bf16.msra.mxu0 %v8485_v22  ;;  %v883_v22 = vld [vmem:[#allocation8 + $0xd28] sm:$0xff] }
 0x34f   :  { %7558 = vmatpush1.bf16.msra.mxu1 %v8487_v23  ;;  %7395 = vmatprep.subr.bf16.mxu0 %v8502_v24  ;;  %v891_v23 = vld [vmem:[#allocation8 + $0xd68] sm:$0xff]  ;;  %v8581_v24 = vcombine.low %v866_v5, %v874_v6  ;;  %v8662_v5 = vcombine.high %v946_v55, %v954_v56 }
 0x350   :  { %7559 = vmatprep.subr.bf16.mxu1 %v8504_v28  ;;  %v8583_v28 = vcombine.low %v867_v10, %v875_v11  ;;  %v8600_v0 = vcombine.high %v883_v22, %v891_v23  ;;  %v962_v10 = vld [vmem:[#allocation8 + $0xfa0] sm:$0xff] }
 0x351   :  { %v970_v11 = vld [vmem:[#allocation8 + $0xfe0] sm:$0xff] }
 0x352   :  { %7396 = vmatpush1.bf16.msra.mxu0 %v8501_v59  ;;  %v899_v59 = vld [vmem:[#allocation8 + $0xda8] sm:$0xff] }
 0x353   :  { %7560 = vmatpush1.bf16.msra.mxu1 %v8503_v33  ;;  %7397 = vmatprep.subr.bf16.mxu0 %v8518_v61  ;;  %v907_v33 = vld [vmem:[#allocation8 + $0xde8] sm:$0xff]  ;;  %v8597_v61 = vcombine.low %v882_v19, %v890_v21  ;;  %v8678_v19 = vcombine.high %v962_v10, %v970_v11 }
 0x354   :  { %7561 = vmatprep.subr.bf16.mxu1 %v8520_v34  ;;  %v8599_v34 = vcombine.low %v883_v22, %v891_v23  ;;  %v8616_v35 = vcombine.high %v899_v59, %v907_v33  ;;  %v978_v22 = vld [vmem:[#allocation8 + $0x1020] sm:$0xff] }
 0x355   :  { %v986_v23 = vld [vmem:[#allocation8 + $0x1060] sm:$0xff] }
 0x356   :  { %7398 = vmatpush1.bf16.msra.mxu0 %v8517_v39  ;;  %v915_v39 = vld [vmem:[#allocation8 + $0xe28] sm:$0xff] }
 0x357   :  { %7562 = vmatpush1.bf16.msra.mxu1 %v8519_v40  ;;  %7399 = vmatprep.subr.bf16.mxu0 %v8534_v42  ;;  %v923_v40 = vld [vmem:[#allocation8 + $0xe68] sm:$0xff]  ;;  %v8613_v42 = vcombine.low %v898_v30, %v906_v31  ;;  %v8694_v30 = vcombine.high %v978_v22, %v986_v23 }
 0x358   :  { %7563 = vmatprep.subr.bf16.mxu1 %v8536_v7  ;;  %v8615_v7 = vcombine.low %v899_v59, %v907_v33  ;;  %v8632_v45 = vcombine.high %v915_v39, %v923_v40  ;;  %v994_v59 = vld [vmem:[#allocation8 + $0x10a0] sm:$0xff] }
 0x359   :  { %v1002_v33 = vld [vmem:[#allocation8 + $0x10e0] sm:$0xff] }
 0x35a   :  { %7400 = vmatpush1.bf16.msra.mxu0 %v8533_v47  ;;  %v931_v47 = vld [vmem:[#allocation8 + $0xea8] sm:$0xff] }
 0x35b   :  { %7564 = vmatpush1.bf16.msra.mxu1 %v8535_v49  ;;  %7401 = vmatprep.subr.bf16.mxu0 %v8550_v50  ;;  %v939_v49 = vld [vmem:[#allocation8 + $0xee8] sm:$0xff]  ;;  %v8629_v50 = vcombine.low %v914_v37, %v922_v38  ;;  %v8710_v37 = vcombine.high %v994_v59, %v1002_v33  ;;  %v1010_v38 = vld [vmem:[#allocation8 + $0x1120] sm:$0xff] }
 0x35c   :  { %7565 = vmatprep.subr.bf16.mxu1 %v8552_v52  ;;  %v8631_v52 = vcombine.low %v915_v39, %v923_v40  ;;  %v8648_v27 = vcombine.high %v931_v47, %v939_v49  ;;  %v1018_v39 = vld [vmem:[#allocation8 + $0x1160] sm:$0xff] }
 0x35e   :  { %7402 = vmatpush1.bf16.msra.mxu0 %v8549_v57  ;;  %v947_v57 = vld [vmem:[#allocation8 + $0xf28] sm:$0xff] }
 0x35f   :  { %7566 = vmatpush1.bf16.msra.mxu1 %v8551_v58  ;;  %7403 = vmatprep.subr.bf16.mxu0 %v8566_v63  ;;  %v955_v58 = vld [vmem:[#allocation8 + $0xf68] sm:$0xff]  ;;  %v8645_v63 = vcombine.low %v930_v46, %v938_v9  ;;  %v8726_v46 = vcombine.high %v1010_v38, %v1018_v39 }
 0x360   :  { %7567 = vmatprep.subr.bf16.mxu1 %v8568_v4  ;;  %v8647_v4 = vcombine.low %v931_v47, %v939_v49  ;;  %v8664_v6 = vcombine.high %v947_v57, %v955_v58  ;;  %v1026_v47 = vld [vmem:[#allocation8 + $0x11a0] sm:$0xff] }
 0x361   :  { %v1034_v49 = vld [vmem:[#allocation8 + $0x11e0] sm:$0xff] }
 0x362   :  { %7404 = vmatpush1.bf16.msra.mxu0 %v8565_v12  ;;  %v963_v12 = vld [vmem:[#allocation8 + $0xfa8] sm:$0xff] }
 0x363   :  { %7568 = vmatpush1.bf16.msra.mxu1 %v8567_v13  ;;  %7405 = vmatprep.subr.bf16.mxu0 %v8582_v15  ;;  %v971_v13 = vld [vmem:[#allocation8 + $0xfe8] sm:$0xff]  ;;  %v8661_v15 = vcombine.low %v946_v55, %v954_v56  ;;  %v8742_v55 = vcombine.high %v1026_v47, %v1034_v49 }
 0x364   :  { %7569 = vmatprep.subr.bf16.mxu1 %v8584_v18  ;;  %v8663_v18 = vcombine.low %v947_v57, %v955_v58  ;;  %v8680_v21 = vcombine.high %v963_v12, %v971_v13  ;;  %v1042_v57 = vld [vmem:[#allocation8 + $0x1220] sm:$0xff] }
 0x365   :  { %v1050_v58 = vld [vmem:[#allocation8 + $0x1260] sm:$0xff] }
 0x366   :  { %7406 = vmatpush1.bf16.msra.mxu0 %v8581_v24  ;;  %v979_v24 = vld [vmem:[#allocation8 + $0x1028] sm:$0xff] }
 0x367   :  { %7570 = vmatpush1.bf16.msra.mxu1 %v8583_v28  ;;  %7407 = vmatprep.subr.bf16.mxu0 %v8598_v29  ;;  %v987_v28 = vld [vmem:[#allocation8 + $0x1068] sm:$0xff]  ;;  %v8677_v29 = vcombine.low %v962_v10, %v970_v11  ;;  %v8758_v10 = vcombine.high %v1042_v57, %v1050_v58 }
 0x368   :  { %7571 = vmatprep.subr.bf16.mxu1 %v8600_v0  ;;  %v8679_v0 = vcombine.low %v963_v12, %v971_v13  ;;  %v8696_v31 = vcombine.high %v979_v24, %v987_v28  ;;  %v1058_v12 = vld [vmem:[#allocation8 + $0x12a0] sm:$0xff] }
 0x369   :  { %v1066_v13 = vld [vmem:[#allocation8 + $0x12e0] sm:$0xff] }
 0x36a   :  { %7408 = vmatpush1.bf16.msra.mxu0 %v8597_v61  ;;  %v8693_v61 = vcombine.low %v978_v22, %v986_v23  ;;  %v8774_v22 = vcombine.high %v1058_v12, %v1066_v13 }
 0x36b   :  { %7572 = vmatpush1.bf16.msra.mxu1 %v8599_v34  ;;  %7409 = vmatprep.subr.bf16.mxu0 %v8614_v25  ;;  %v995_v34 = vld [vmem:[#allocation8 + $0x10a8] sm:$0xff] }
 0x36c   :  { %7573 = vmatprep.subr.bf16.mxu1 %v8616_v35  ;;  %v1003_v25 = vld [vmem:[#allocation8 + $0x10e8] sm:$0xff]  ;;  %v8695_v35 = vcombine.low %v979_v24, %v987_v28  ;;  %v1074_v24 = vld [vmem:[#allocation8 + $0x1320] sm:$0xff] }
 0x36d   :  { %v8712_v40 = vcombine.high %v995_v34, %v1003_v25  ;;  %v1082_v28 = vld [vmem:[#allocation8 + $0x1360] sm:$0xff] }
 0x36e   :  { %7410 = vmatpush1.bf16.msra.mxu0 %v8613_v42  ;;  %v1011_v42 = vld [vmem:[#allocation8 + $0x1128] sm:$0xff] }
 0x36f   :  { %7574 = vmatpush1.bf16.msra.mxu1 %v8615_v7  ;;  %7411 = vmatprep.subr.bf16.mxu0 %v8630_v44  ;;  %v1019_v7 = vld [vmem:[#allocation8 + $0x1168] sm:$0xff]  ;;  %v8709_v44 = vcombine.low %v994_v59, %v1002_v33  ;;  %v8790_v59 = vcombine.high %v1074_v24, %v1082_v28 }
 0x370   :  { %7575 = vmatprep.subr.bf16.mxu1 %v8632_v45  ;;  %v8711_v45 = vcombine.low %v995_v34, %v1003_v25  ;;  %v8728_v9 = vcombine.high %v1011_v42, %v1019_v7  ;;  %v1098_v34 = vld [vmem:[#allocation8 + $0x13e0] sm:$0xff]  ;;  %v1091_v25 = vld [vmem:[#allocation8 + $0x13a8] sm:$0xff] }
 0x372   :  { %7412 = vmatpush1.bf16.msra.mxu0 %v8629_v50  ;;  %v1027_v50 = vld [vmem:[#allocation8 + $0x11a8] sm:$0xff] }
 0x373   :  { %7576 = vmatpush1.bf16.msra.mxu1 %v8631_v52  ;;  %7413 = vmatprep.subr.bf16.mxu0 %v8646_v54  ;;  %v1035_v52 = vld [vmem:[#allocation8 + $0x11e8] sm:$0xff]  ;;  %v8725_v54 = vcombine.low %v1010_v38, %v1018_v39 }
 0x374   :  { %7577 = vmatprep.subr.bf16.mxu1 %v8648_v27  ;;  %v8727_v27 = vcombine.low %v1011_v42, %v1019_v7  ;;  %v8744_v56 = vcombine.high %v1027_v50, %v1035_v52  ;;  %v1106_v42 = vld [vmem:[#allocation8 + $0x1420] sm:$0xff] }
 0x375   :  { %v1114_v7 = vld [vmem:[#allocation8 + $0x1460] sm:$0xff] }
 0x376   :  { %7414 = vmatpush1.bf16.msra.mxu0 %v8645_v63  ;;  %v1043_v63 = vld [vmem:[#allocation8 + $0x1228] sm:$0xff] }
 0x377   :  { %7578 = vmatpush1.bf16.msra.mxu1 %v8647_v4  ;;  %7415 = vmatprep.subr.bf16.mxu0 %v8662_v5  ;;  %v1051_v4 = vld [vmem:[#allocation8 + $0x1268] sm:$0xff]  ;;  %v8741_v5 = vcombine.low %v1026_v47, %v1034_v49  ;;  %v8822_v47 = vcombine.high %v1106_v42, %v1114_v7 }
 0x378   :  { %7579 = vmatprep.subr.bf16.mxu1 %v8664_v6  ;;  %v8743_v6 = vcombine.low %v1027_v50, %v1035_v52  ;;  %v8760_v11 = vcombine.high %v1043_v63, %v1051_v4  ;;  %v1122_v50 = vld [vmem:[#allocation8 + $0x14a0] sm:$0xff] }
 0x379   :  { %v1130_v52 = vld [vmem:[#allocation8 + $0x14e0] sm:$0xff] }
 0x37a   :  { %7416 = vmatpush1.bf16.msra.mxu0 %v8661_v15  ;;  %v1059_v15 = vld [vmem:[#allocation8 + $0x12a8] sm:$0xff] }
 0x37b   :  { %7580 = vmatpush1.bf16.msra.mxu1 %v8663_v18  ;;  %7417 = vmatprep.subr.bf16.mxu0 %v8678_v19  ;;  %v1067_v18 = vld [vmem:[#allocation8 + $0x12e8] sm:$0xff]  ;;  %v8757_v19 = vcombine.low %v1042_v57, %v1050_v58  ;;  %v8838_v57 = vcombine.high %v1122_v50, %v1130_v52 }
 0x37c   :  { %7581 = vmatprep.subr.bf16.mxu1 %v8680_v21  ;;  %v8759_v21 = vcombine.low %v1043_v63, %v1051_v4  ;;  %v8776_v23 = vcombine.high %v1059_v15, %v1067_v18  ;;  %v1138_v63 = vld [vmem:[#allocation8 + $0x1520] sm:$0xff] }
 0x37d   :  { %v1146_v4 = vld [vmem:[#allocation8 + $0x1560] sm:$0xff] }
 0x37e   :  { %7418 = vmatpush1.bf16.msra.mxu0 %v8677_v29  ;;  %v1075_v29 = vld [vmem:[#allocation8 + $0x1328] sm:$0xff] }
 0x37f   :  { %7582 = vmatpush1.bf16.msra.mxu1 %v8679_v0  ;;  %7428 = vmatprep.subr.bf16.mxu0 %v8694_v30  ;;  %v1083_v0 = vld [vmem:[#allocation8 + $0x1368] sm:$0xff]  ;;  %v8773_v30 = vcombine.low %v1058_v12, %v1066_v13  ;;  %v8854_v12 = vcombine.high %v1138_v63, %v1146_v4 }
 0x380   :  { %7592 = vmatprep.subr.bf16.mxu1 %v8696_v31  ;;  %v8775_v31 = vcombine.low %v1059_v15, %v1067_v18  ;;  %v8792_v33 = vcombine.high %v1075_v29, %v1083_v0  ;;  %v8791_v38 = vcombine.low %v1075_v29, %v1083_v0  ;;  %v1154_v15 = vld [vmem:[#allocation8 + $0x15a0] sm:$0xff] }
 0x381   :  { %7420 = vmatmul.mubr.bf16.vlgmr.msra.gmra.mrb[12].mxu0 %v9668_v53  ;;  %v1162_v18 = vld [vmem:[#allocation8 + $0x15e0] sm:$0xff] }
 0x382   :  { %7584 = vmatmul.mubr.bf16.vlgmr.msra.gmra.mrb[12].mxu1 %v9668_v53  ;;  %7429 = vmatpush1.bf16.msra.mxu0 %v8693_v61  ;;  %v1090_v61 = vld [vmem:[#allocation8 + $0x13a0] sm:$0xff] }
 0x383   :  { %7460 = vmatprep.mubr.bf16.mxu0 %v9670_v3  ;;  %7593 = vmatpush1.bf16.msra.mxu1 %v8695_v35  ;;  %v1099_v35 = vld [vmem:[#allocation8 + $0x13e8] sm:$0xff]  ;;  %v8806_v39 = vcombine.high %v1090_v61, %v1098_v34  ;;  %v1170_v29 = vld [vmem:[#allocation8 + $0x1620] sm:$0xff] }
 0x384   :  { %7624 = vmatprep.mubr.bf16.mxu1 %v9670_v3  ;;  %7430 = vmatprep.subr.bf16.mxu0 %v8710_v37  ;;  %v8789_v37 = vcombine.low %v1074_v24, %v1082_v28  ;;  %v8870_v24 = vcombine.high %v1154_v15, %v1162_v18  ;;  %v1178_v0 = vld [vmem:[#allocation8 + $0x1660] sm:$0xff] }
 0x385   :  { %7594 = vmatprep.subr.bf16.mxu1 %v8712_v40  ;;  %v8808_v40 = vcombine.high %v1091_v25, %v1099_v35 }
 0x386   :  { %7431 = vmatpush1.bf16.msra.mxu0 %v8709_v44  ;;  %v1107_v44 = vld [vmem:[#allocation8 + $0x1428] sm:$0xff] }
 0x387   :  { %7595 = vmatpush1.bf16.msra.mxu1 %v8711_v45  ;;  %7432 = vmatprep.subr.bf16.mxu0 %v8726_v46  ;;  %v1115_v45 = vld [vmem:[#allocation8 + $0x1468] sm:$0xff]  ;;  %v8805_v46 = vcombine.low %v1090_v61, %v1098_v34  ;;  %v8886_v61 = vcombine.high %v1170_v29, %v1178_v0 }
 0x388   :  { %7596 = vmatprep.subr.bf16.mxu1 %v8728_v9  ;;  %v8807_v9 = vcombine.low %v1091_v25, %v1099_v35  ;;  %v8824_v49 = vcombine.high %v1107_v44, %v1115_v45  ;;  %v1186_v25 = vld [vmem:[#allocation8 + $0x16a0] sm:$0xff] }
 0x389   :  { %v1194_v35 = vld [vmem:[#allocation8 + $0x16e0] sm:$0xff] }
 0x38a   :  { %7433 = vmatpush1.bf16.msra.mxu0 %v8725_v54  ;;  %v1123_v54 = vld [vmem:[#allocation8 + $0x14a8] sm:$0xff] }
 0x38b   :  { %7597 = vmatpush1.bf16.msra.mxu1 %v8727_v27  ;;  %7434 = vmatprep.subr.bf16.mxu0 %v8742_v55  ;;  %v1131_v27 = vld [vmem:[#allocation8 + $0x14e8] sm:$0xff]  ;;  %v8821_v55 = vcombine.low %v1106_v42, %v1114_v7  ;;  %v8902_v42 = vcombine.high %v1186_v25, %v1194_v35 }
 0x38c   :  { %7598 = vmatprep.subr.bf16.mxu1 %v8744_v56  ;;  %v8823_v56 = vcombine.low %v1107_v44, %v1115_v45  ;;  %v8840_v58 = vcombine.high %v1123_v54, %v1131_v27  ;;  %v1202_v44 = vld [vmem:[#allocation8 + $0x1720] sm:$0xff] }
 0x38d   :  { %v1210_v45 = vld [vmem:[#allocation8 + $0x1760] sm:$0xff] }
 0x38e   :  { %7435 = vmatpush1.bf16.msra.mxu0 %v8741_v5  ;;  %v1139_v5 = vld [vmem:[#allocation8 + $0x1528] sm:$0xff] }
 0x38f   :  { %7599 = vmatpush1.bf16.msra.mxu1 %v8743_v6  ;;  %7436 = vmatprep.subr.bf16.mxu0 %v8758_v10  ;;  %v1147_v6 = vld [vmem:[#allocation8 + $0x1568] sm:$0xff]  ;;  %v8837_v10 = vcombine.low %v1122_v50, %v1130_v52  ;;  %v8918_v50 = vcombine.high %v1202_v44, %v1210_v45 }
 0x390   :  { %7600 = vmatprep.subr.bf16.mxu1 %v8760_v11  ;;  %v8839_v11 = vcombine.low %v1123_v54, %v1131_v27  ;;  %v8856_v13 = vcombine.high %v1139_v5, %v1147_v6  ;;  %v1218_v54 = vld [vmem:[#allocation8 + $0x17a0] sm:$0xff] }
 0x391   :  { %v1226_v27 = vld [vmem:[#allocation8 + $0x17e0] sm:$0xff] }
 0x392   :  { %7437 = vmatpush1.bf16.msra.mxu0 %v8757_v19  ;;  %v1155_v19 = vld [vmem:[#allocation8 + $0x15a8] sm:$0xff] }
 0x393   :  { %7601 = vmatpush1.bf16.msra.mxu1 %v8759_v21  ;;  %7438 = vmatprep.subr.bf16.mxu0 %v8774_v22  ;;  %v1163_v21 = vld [vmem:[#allocation8 + $0x15e8] sm:$0xff]  ;;  %v8853_v22 = vcombine.low %v1138_v63, %v1146_v4  ;;  %v8934_v63 = vcombine.high %v1218_v54, %v1226_v27 }
 0x394   :  { %7602 = vmatprep.subr.bf16.mxu1 %v8776_v23  ;;  %v8855_v23 = vcombine.low %v1139_v5, %v1147_v6  ;;  %v8872_v28 = vcombine.high %v1155_v19, %v1163_v21  ;;  %v1234_v5 = vld [vmem:[#allocation8 + $0x1820] sm:$0xff] }
 0x395   :  { %v1242_v6 = vld [vmem:[#allocation8 + $0x1860] sm:$0xff] }
 0x396   :  { %7439 = vmatpush1.bf16.msra.mxu0 %v8773_v30  ;;  %v1171_v30 = vld [vmem:[#allocation8 + $0x1628] sm:$0xff] }
 0x397   :  { %7603 = vmatpush1.bf16.msra.mxu1 %v8775_v31  ;;  %7440 = vmatprep.subr.bf16.mxu0 %v8790_v59  ;;  %v1179_v31 = vld [vmem:[#allocation8 + $0x1668] sm:$0xff]  ;;  %v8869_v59 = vcombine.low %v1154_v15, %v1162_v18  ;;  %v8950_v15 = vcombine.high %v1234_v5, %v1242_v6 }
 0x398   :  { %7604 = vmatprep.subr.bf16.mxu1 %v8792_v33  ;;  %v8871_v33 = vcombine.low %v1155_v19, %v1163_v21  ;;  %v8888_v34 = vcombine.high %v1171_v30, %v1179_v31  ;;  %v1250_v19 = vld [vmem:[#allocation8 + $0x18a0] sm:$0xff] }
 0x399   :  { %v1258_v21 = vld [vmem:[#allocation8 + $0x18e0] sm:$0xff] }
 0x39a   :  { %7441 = vmatpush1.bf16.msra.mxu0 %v8789_v37  ;;  %v1187_v37 = vld [vmem:[#allocation8 + $0x16a8] sm:$0xff] }
 0x39b   :  { %7605 = vmatpush1.bf16.msra.mxu1 %v8791_v38  ;;  %7442 = vmatprep.subr.bf16.mxu0 %v8806_v39  ;;  %v1195_v38 = vld [vmem:[#allocation8 + $0x16e8] sm:$0xff]  ;;  %v8885_v39 = vcombine.low %v1170_v29, %v1178_v0  ;;  %v8966_v29 = vcombine.high %v1250_v19, %v1258_v21  ;;  %v1266_v0 = vld [vmem:[#allocation8 + $0x1920] sm:$0xff] }
 0x39c   :  { %7606 = vmatprep.subr.bf16.mxu1 %v8808_v40  ;;  %v8887_v40 = vcombine.low %v1171_v30, %v1179_v31  ;;  %v8904_v7 = vcombine.high %v1187_v37, %v1195_v38  ;;  %v1274_v30 = vld [vmem:[#allocation8 + $0x1960] sm:$0xff] }
 0x39e   :  { %7443 = vmatpush1.bf16.msra.mxu0 %v8805_v46  ;;  %v1203_v46 = vld [vmem:[#allocation8 + $0x1728] sm:$0xff] }
 0x39f   :  { %7607 = vmatpush1.bf16.msra.mxu1 %v8807_v9  ;;  %7444 = vmatprep.subr.bf16.mxu0 %v8822_v47  ;;  %v1211_v9 = vld [vmem:[#allocation8 + $0x1768] sm:$0xff]  ;;  %v8901_v47 = vcombine.low %v1186_v25, %v1194_v35  ;;  %v8982_v25 = vcombine.high %v1266_v0, %v1274_v30 }
 0x3a0   :  { %7608 = vmatprep.subr.bf16.mxu1 %v8824_v49  ;;  %v8903_v49 = vcombine.low %v1187_v37, %v1195_v38  ;;  %v8920_v52 = vcombine.high %v1203_v46, %v1211_v9  ;;  %v1282_v37 = vld [vmem:[#allocation8 + $0x19a0] sm:$0xff] }
 0x3a1   :  { %v1290_v38 = vld [vmem:[#allocation8 + $0x19e0] sm:$0xff] }
 0x3a2   :  { %7445 = vmatpush1.bf16.msra.mxu0 %v8821_v55  ;;  %v1219_v55 = vld [vmem:[#allocation8 + $0x17a8] sm:$0xff] }
 0x3a3   :  { %7609 = vmatpush1.bf16.msra.mxu1 %v8823_v56  ;;  %7446 = vmatprep.subr.bf16.mxu0 %v8838_v57  ;;  %v1227_v56 = vld [vmem:[#allocation8 + $0x17e8] sm:$0xff]  ;;  %v8917_v57 = vcombine.low %v1202_v44, %v1210_v45  ;;  %v8998_v44 = vcombine.high %v1282_v37, %v1290_v38 }
 0x3a4   :  { %7610 = vmatprep.subr.bf16.mxu1 %v8840_v58  ;;  %v8919_v58 = vcombine.low %v1203_v46, %v1211_v9  ;;  %v8936_v4 = vcombine.high %v1219_v55, %v1227_v56  ;;  %v1298_v46 = vld [vmem:[#allocation8 + $0x1a20] sm:$0xff] }
 0x3a5   :  { %v1306_v9 = vld [vmem:[#allocation8 + $0x1a60] sm:$0xff] }
 0x3a6   :  { %7447 = vmatpush1.bf16.msra.mxu0 %v8837_v10  ;;  %v1235_v10 = vld [vmem:[#allocation8 + $0x1828] sm:$0xff] }
 0x3a7   :  { %7611 = vmatpush1.bf16.msra.mxu1 %v8839_v11  ;;  %7448 = vmatprep.subr.bf16.mxu0 %v8854_v12  ;;  %v1243_v11 = vld [vmem:[#allocation8 + $0x1868] sm:$0xff]  ;;  %v8933_v12 = vcombine.low %v1218_v54, %v1226_v27  ;;  %v9014_v54 = vcombine.high %v1298_v46, %v1306_v9 }
 0x3a8   :  { %7612 = vmatprep.subr.bf16.mxu1 %v8856_v13  ;;  %v8935_v13 = vcombine.low %v1219_v55, %v1227_v56  ;;  %v8952_v18 = vcombine.high %v1235_v10, %v1243_v11  ;;  %v1314_v55 = vld [vmem:[#allocation8 + $0x1aa0] sm:$0xff] }
 0x3a9   :  { %v1322_v56 = vld [vmem:[#allocation8 + $0x1ae0] sm:$0xff] }
 0x3aa   :  { %7449 = vmatpush1.bf16.msra.mxu0 %v8853_v22  ;;  %v8949_v22 = vcombine.low %v1234_v5, %v1242_v6  ;;  %v9030_v5 = vcombine.high %v1314_v55, %v1322_v56 }
 0x3ab   :  { %7613 = vmatpush1.bf16.msra.mxu1 %v8855_v23  ;;  %7450 = vmatprep.subr.bf16.mxu0 %v8870_v24  ;;  %v1251_v23 = vld [vmem:[#allocation8 + $0x18a8] sm:$0xff] }
 0x3ac   :  { %7614 = vmatprep.subr.bf16.mxu1 %v8872_v28  ;;  %v1259_v24 = vld [vmem:[#allocation8 + $0x18e8] sm:$0xff]  ;;  %v8951_v28 = vcombine.low %v1235_v10, %v1243_v11  ;;  %v1330_v10 = vld [vmem:[#allocation8 + $0x1b20] sm:$0xff] }
 0x3ad   :  { %v8968_v31 = vcombine.high %v1251_v23, %v1259_v24  ;;  %v1338_v11 = vld [vmem:[#allocation8 + $0x1b60] sm:$0xff] }
 0x3ae   :  { %7451 = vmatpush1.bf16.msra.mxu0 %v8869_v59  ;;  %v1267_v59 = vld [vmem:[#allocation8 + $0x1928] sm:$0xff] }
 0x3af   :  { %7615 = vmatpush1.bf16.msra.mxu1 %v8871_v33  ;;  %7452 = vmatprep.subr.bf16.mxu0 %v8886_v61  ;;  %v1275_v33 = vld [vmem:[#allocation8 + $0x1968] sm:$0xff]  ;;  %v8965_v61 = vcombine.low %v1250_v19, %v1258_v21 }
 0x3b0   :  { %7616 = vmatprep.subr.bf16.mxu1 %v8888_v34  ;;  %v8967_v34 = vcombine.low %v1251_v23, %v1259_v24  ;;  %v8984_v35 = vcombine.high %v1267_v59, %v1275_v33 }
 0x3b2   :  { %7453 = vmatpush1.bf16.msra.mxu0 %v8885_v39  ;;  %v1283_v39 = vld [vmem:[#allocation8 + $0x19a8] sm:$0xff] }
 0x3b3   :  { %7617 = vmatpush1.bf16.msra.mxu1 %v8887_v40  ;;  %7454 = vmatprep.subr.bf16.mxu0 %v8902_v42  ;;  %v1291_v40 = vld [vmem:[#allocation8 + $0x19e8] sm:$0xff]  ;;  %v8981_v42 = vcombine.low %v1266_v0, %v1274_v30  ;;  %v1346_v30 = vld [vmem:[#allocation8 + $0x1ba0] sm:$0xff] }
 0x3b4   :  { %7618 = vmatprep.subr.bf16.mxu1 %v8904_v7  ;;  %v8983_v7 = vcombine.low %v1267_v59, %v1275_v33  ;;  %v9000_v45 = vcombine.high %v1283_v39, %v1291_v40 }
 0x3b6   :  { %7455 = vmatpush1.bf16.msra.mxu0 %v8901_v47  ;;  %v1299_v47 = vld [vmem:[#allocation8 + $0x1a28] sm:$0xff] }
 0x3b7   :  { %7619 = vmatpush1.bf16.msra.mxu1 %v8903_v49  ;;  %7456 = vmatprep.subr.bf16.mxu0 %v8918_v50  ;;  %v1307_v49 = vld [vmem:[#allocation8 + $0x1a68] sm:$0xff]  ;;  %v8997_v50 = vcombine.low %v1282_v37, %v1290_v38 }
 0x3b8   :  { %7620 = vmatprep.subr.bf16.mxu1 %v8920_v52  ;;  %v8999_v52 = vcombine.low %v1283_v39, %v1291_v40  ;;  %v9016_v27 = vcombine.high %v1299_v47, %v1307_v49  ;;  %v9045_v40 = vcombine.low %v1330_v10, %v1338_v11 }
 0x3ba   :  { %7457 = vmatpush1.bf16.msra.mxu0 %v8917_v57  ;;  %v1315_v57 = vld [vmem:[#allocation8 + $0x1aa8] sm:$0xff] }
 0x3bb   :  { %7621 = vmatpush1.bf16.msra.mxu1 %v8919_v58  ;;  %7458 = vmatprep.subr.bf16.mxu0 %v8934_v63  ;;  %v1323_v58 = vld [vmem:[#allocation8 + $0x1ae8] sm:$0xff]  ;;  %v9013_v63 = vcombine.low %v1298_v46, %v1306_v9 }
 0x3bc   :  { %7622 = vmatprep.subr.bf16.mxu1 %v8936_v4  ;;  %v9015_v4 = vcombine.low %v1299_v47, %v1307_v49  ;;  %v9032_v6 = vcombine.high %v1315_v57, %v1323_v58  ;;  %v9031_v24 = vcombine.low %v1315_v57, %v1323_v58  ;;  %v1371_v57 = vld [vmem:[#allocation8 + $0x1c68] sm:$0xff] }
 0x3be   :  { %7459 = vmatpush1.bf16.msra.mxu0 %v8933_v12  ;;  %v9360_v12 = vld [vmem:[#allocation10] sm:$0xff] }
 0x3bf   :  { %7623 = vmatpush1.bf16.msra.mxu1 %v8935_v13  ;;  %7469 = vmatprep.subr.bf16.mxu0 %v8950_v15  ;;  %v1509_v13 = vrot.slane %v9360_v12, %v9677_v51  ;;  %v1331_v15 = vld [vmem:[#allocation8 + $0x1b28] sm:$0xff]  ;;  %v1517_v19 = vrot.slane %v9360_v12, %v9697_v43  ;;  %v1513_v21 = vrot.slane %v9360_v12, %v9660_v20 }
 0x3c0   :  { %7633 = vmatprep.subr.bf16.mxu1 %v8952_v18  ;;  %v1339_v18 = vld [vmem:[#allocation8 + $0x1b68] sm:$0xff]  ;;  %v1521_v23 = vrot.slane %v9360_v12, %v9680_v2  ;;  %v1378_v12 = vld [vmem:[#allocation8 + $0x1ca0] sm:$0xff] }
 0x3c1   :  { %7461 = vmatmul.mubr.bf16.vlgmr.msra.gmra.mrb[12].mxu0 %v9688_v41  ;;  %v9048_v0 = vcombine.high %v1331_v15, %v1339_v18  ;;  %v9047_v46 = vcombine.low %v1331_v15, %v1339_v18  ;;  %v1379_v18 = vld [vmem:[#allocation8 + $0x1ca8] sm:$0xff] }
 0x3c2   :  { %7625 = vmatmul.mubr.bf16.vlgmr.msra.gmra.mrb[12].mxu1 %v9688_v41  ;;  %7470 = vmatpush1.bf16.msra.mxu0 %v8949_v22  ;;  %v9029_v22 = vcombine.low %v1314_v55, %v1322_v56  ;;  %v1363_v56 = vld [vmem:[#allocation8 + $0x1c28] sm:$0xff] }
 0x3c3   :  { %7501 = vmatprep.mubr.bf16.mxu0 %v9690_v48  ;;  %7634 = vmatpush1.bf16.msra.mxu1 %v8951_v28  ;;  %v9046_v28 = vcombine.high %v1330_v10, %v1338_v11  ;;  %v9080_v11 = vcombine.high %v1363_v56, %v1371_v57 }
 0x3c4   :  { %7665 = vmatprep.mubr.bf16.mxu1 %v9690_v48  ;;  %7471 = vmatprep.subr.bf16.mxu0 %v8966_v29 }
 0x3c5   :  { %7635 = vmatprep.subr.bf16.mxu1 %v8968_v31  ;;  %v1354_v31 = vld [vmem:[#allocation8 + $0x1be0] sm:$0xff] }
 0x3c6   :  { %7472 = vmatpush1.bf16.msra.mxu0 %v8965_v61  ;;  %v9062_v9 = vcombine.high %v1346_v30, %v1354_v31 }
 0x3c7   :  { %7636 = vmatpush1.bf16.msra.mxu1 %v8967_v34  ;;  %7473 = vmatprep.subr.bf16.mxu0 %v8982_v25  ;;  %v1347_v34 = vld [vmem:[#allocation8 + $0x1ba8] sm:$0xff] }
 0x3c8   :  { %7637 = vmatprep.subr.bf16.mxu1 %v8984_v35  ;;  %v1355_v25 = vld [vmem:[#allocation8 + $0x1be8] sm:$0xff] }
 0x3ca   :  { %7474 = vmatpush1.bf16.msra.mxu0 %v8981_v42 }
 0x3cb   :  { %7638 = vmatpush1.bf16.msra.mxu1 %v8983_v7  ;;  %7475 = vmatprep.subr.bf16.mxu0 %v8998_v44 }
 0x3cc   :  { %7639 = vmatprep.subr.bf16.mxu1 %v9000_v45 }
 0x3ce   :  { %7476 = vmatpush1.bf16.msra.mxu0 %v8997_v50 }
 0x3cf   :  { %7640 = vmatpush1.bf16.msra.mxu1 %v8999_v52  ;;  %7477 = vmatprep.subr.bf16.mxu0 %v9014_v54  ;;  %v9064_v52 = vcombine.high %v1347_v34, %v1355_v25  ;;  %v1362_v54 = vld [vmem:[#allocation8 + $0x1c20] sm:$0xff] }
 0x3d0   :  { %7641 = vmatprep.subr.bf16.mxu1 %v9016_v27  ;;  %v1370_v27 = vld [vmem:[#allocation8 + $0x1c60] sm:$0xff] }
 0x3d2   :  { %7478 = vmatpush1.bf16.msra.mxu0 %v9013_v63  ;;  %v9061_v63 = vcombine.low %v1346_v30, %v1354_v31  ;;  %v1395_v30 = vld [vmem:[#allocation8 + $0x1d28] sm:$0xff] }
 0x3d3   :  { %7642 = vmatpush1.bf16.msra.mxu1 %v9015_v4  ;;  %7479 = vmatprep.subr.bf16.mxu0 %v9030_v5  ;;  %v9063_v5 = vcombine.low %v1347_v34, %v1355_v25  ;;  %v1403_v31 = vld [vmem:[#allocation8 + $0x1d68] sm:$0xff] }
 0x3d4   :  { %v7175_v29 = vpop.f32.mrb[8].mxu0  ;;  %7643 = vmatprep.subr.bf16.mxu1 %v9032_v6  ;;  %v9078_v6 = vcombine.high %v1362_v54, %v1370_v27 }
 0x3d5   :  { %v9241_v59 = vadd.f32 %v7175_v29, %v1509_v13  ;;  %v7339_v33 = vpop.f32.mrb[8].mxu1  ;;  %v7177_v61 = vpop.f32.mrb[9].mxu0  ;;  %v1386_v13 = vld [vmem:[#allocation8 + $0x1ce0] sm:$0xff] }
 0x3d6   :  { %v9243_v35 = vadd.f32 %v7339_v33, %v1517_v19  ;;  %v9242_v37 = vadd.f32 %v7177_v61, %v1513_v21  ;;  %v7341_v38 = vpop.f32.mrb[9].mxu1  ;;  %v7179_v39 = vpop.f32.mrb[10].mxu0  ;;  %7480 = vmatpush1.bf16.msra.mxu0 %v9029_v22  ;;  %v1387_v19 = vld [vmem:[#allocation8 + $0x1ce8] sm:$0xff]  ;;  %v9077_v21 = vcombine.low %v1362_v54, %v1370_v27  ;;  %v1394_v29 = vld [vmem:[#allocation8 + $0x1d20] sm:$0xff]  ;;  %v9093_v61 = vcombine.low %v1378_v12, %v1386_v13 }
 0x3d7   :  { %v8006_v42 = vmax.f32 %v9241_v59, 0.0  ;;  %v9244_v7 = vadd.f32 %v7341_v38, %v1521_v23  ;;  %v7343_v44 = vpop.f32.mrb[10].mxu1  ;;  %7644 = vmatpush1.bf16.msra.mxu1 %v9031_v24  ;;  %v7180_v45 = vpop.f32.mrb[11].mxu0  ;;  %7481 = vmatprep.subr.bf16.mxu0 %v9046_v28  ;;  %v9079_v23 = vcombine.low %v1363_v56, %v1371_v57  ;;  %v9094_v24 = vcombine.high %v1378_v12, %v1386_v13  ;;  %v1410_v38 = vld [vmem:[#allocation8 + $0x1da0] sm:$0xff]  ;;  %v1443_v57 = vld [vmem:[#allocation8 + $0x1ea8] sm:$0xff] }
 0x3d8   :  { %v8008_v47 = vmax.f32 %v9243_v35, 0.0  ;;  %v8007_v49 = vmax.f32 %v9242_v37, 0.0  ;;  %v7344_v50 = vpop.f32.mrb[11].mxu1  ;;  %7645 = vmatprep.subr.bf16.mxu1 %v9048_v0  ;;  %v9096_v28 = vcombine.high %v1379_v18, %v1387_v19  ;;  %v1402_v0 = vld [vmem:[#allocation8 + $0x1d60] sm:$0xff]  ;;  %v8090_v59 = vrot.slane %v9728_v36, %v9724_v14  ;;  %v1459_v12 = vld [vmem:[#allocation8 + $0x1f28] sm:$0xff] }
 0x3d9   :  { %v8009_v55 = vmax.f32 %v9244_v7, 0.0  ;;  %v9095_v34 = vcombine.low %v1379_v18, %v1387_v19  ;;  %v9110_v25 = vcombine.high %v1394_v29, %v1402_v0  ;;  %v9112_v37 = vcombine.high %v1395_v30, %v1403_v31  ;;  %v1418_v39 = vld [vmem:[#allocation8 + $0x1de0] sm:$0xff]  ;;  %v1467_v13 = vld [vmem:[#allocation8 + $0x1f68] sm:$0xff] }
 0x3da   :  { %v9199_v58 = vpack.c.bf16 %v8007_v49, %v8006_v42  ;;  %7482 = vmatpush1.bf16.msra.mxu0 %v9045_v40  ;;  %v1411_v40 = vld [vmem:[#allocation8 + $0x1da8] sm:$0xff]  ;;  %v9109_v7 = vcombine.low %v1394_v29, %v1402_v0  ;;  %v9111_v36 = vcombine.low %v1395_v30, %v1403_v31  ;;  %v9126_v44 = vcombine.high %v1410_v38, %v1418_v39  ;;  %v1450_v56 = vld [vmem:[#allocation8 + $0x1ee0] sm:$0xff] }
 0x3db   :  { %v9200_v4 = vpack.c.bf16 %v8009_v55, %v8008_v47  ;;  %7646 = vmatpush1.bf16.msra.mxu1 %v9047_v46  ;;  %7483 = vmatprep.subr.bf16.mxu0 %v9062_v9  ;;  %v1419_v42 = vld [vmem:[#allocation8 + $0x1de8] sm:$0xff]  ;;  %v1426_v46 = vld [vmem:[#allocation8 + $0x1e20] sm:$0xff]  ;;  %v9125_v50 = vcombine.low %v1410_v38, %v1418_v39  ;;  %v9175_v0 = vcombine.low %v1459_v12, %v1467_v13  ;;  %v484_v39 = vld [vmem:[#allocation8 + $0xb0] sm:$0xff] }
 0x3dc   :  { %v8074_v10 = vrot.slane %v9199_v58, %v9724_v14  ;;  %7647 = vmatprep.subr.bf16.mxu1 %v9064_v52  ;;  %v9128_v45 = vcombine.high %v1411_v40, %v1419_v42  ;;  %v1434_v9 = vld [vmem:[#allocation8 + $0x1e60] sm:$0xff]  ;;  %v1427_v47 = vld [vmem:[#allocation8 + $0x1e28] sm:$0xff]  ;;  %v9127_v52 = vcombine.low %v1411_v40, %v1419_v42  ;;  %v492_v40 = vld [vmem:[#allocation8 + $0xf0] sm:$0xff] }
 0x3dd   :  { %v8081_v15 = vrot.slane %v9200_v4, %v9724_v14  ;;  %v1435_v49 = vld [vmem:[#allocation8 + $0x1e68] sm:$0xff]  ;;  %v9142_v54 = vcombine.high %v1426_v46, %v1434_v9  ;;  %v1442_v55 = vld [vmem:[#allocation8 + $0x1ea0] sm:$0xff] }
 0x3de   :  { %7484 = vmatpush1.bf16.msra.mxu0 %v9061_v63  ;;  %v9144_v27 = vcombine.high %v1427_v47, %v1435_v49  ;;  %v1451_v58 = vld [vmem:[#allocation8 + $0x1ee8] sm:$0xff]  ;;  %v9141_v63 = vcombine.low %v1426_v46, %v1434_v9  ;;  %v9143_v4 = vcombine.low %v1427_v47, %v1435_v49  ;;  %v500_v46 = vld [vmem:[#allocation8 + $0x130] sm:$0xff]  ;;  %v501_v49 = vld [vmem:[#allocation8 + $0x138] sm:$0xff] }
 0x3df   :  { %v8083_v22 = vcombine.low %v8074_v10, %v8081_v15  ;;  %7648 = vmatpush1.bf16.msra.mxu1 %v9063_v5  ;;  %7485 = vmatprep.subr.bf16.mxu0 %v9078_v6  ;;  %v9158_v5 = vcombine.high %v1442_v55, %v1450_v56  ;;  %v9160_v6 = vcombine.high %v1443_v57, %v1451_v58  ;;  %v1458_v10 = vld [vmem:[#allocation8 + $0x1f20] sm:$0xff]  ;;  %v508_v9 = vld [vmem:[#allocation8 + $0x170] sm:$0xff] }
 0x3e0   :  { %7649 = vmatprep.subr.bf16.mxu1 %v9080_v11  ;;  %v1466_v11 = vld [vmem:[#allocation8 + $0x1f60] sm:$0xff]  ;;  %v9157_v15 = vcombine.low %v1442_v55, %v1450_v56  ;;  %v9159_v18 = vcombine.low %v1443_v57, %v1451_v58  ;;  %v516_v56 = vld [vmem:[#allocation8 + $0x1b0] sm:$0xff]  ;;  %v517_v58 = vld [vmem:[#allocation8 + $0x1b8] sm:$0xff] }
 0x3e1   :  { %v8097_v33 = vrot.slane %v8083_v22, %v9724_v14  ;;  %v9174_v19 = vcombine.high %v1458_v10, %v1466_v11  ;;  %v1474_v22 = vld [vmem:[#allocation8 + $0x1fa0] sm:$0xff]  ;;  %v9173_v29 = vcombine.low %v1458_v10, %v1466_v11  ;;  %v524_v57 = vld [vmem:[#allocation8 + $0x1f0] sm:$0xff] }
 0x3e2   :  { %7486 = vmatpush1.bf16.msra.mxu0 %v9077_v21  ;;  %v9176_v21 = vcombine.high %v1459_v12, %v1467_v13  ;;  %v532_v11 = vld [vmem:[#allocation8 + $0x230] sm:$0xff]  ;;  %v533_v13 = vld [vmem:[#allocation8 + $0x238] sm:$0xff] }
 0x3e3   :  { %7650 = vmatpush1.bf16.msra.mxu1 %v9079_v23  ;;  %7487 = vmatprep.subr.bf16.mxu0 %v9094_v24  ;;  %v8098_v35 = vcombine.low %v8090_v59, %v8097_v33  ;;  %v1482_v23 = vld [vmem:[#allocation8 + $0x1fe0] sm:$0xff]  ;;  %v1475_v24 = vld [vmem:[#allocation8 + $0x1fa8] sm:$0xff]  ;;  %v468_v59 = vld [vmem:[#allocation8 + $0x30] sm:$0xff] }
 0x3e4   :  { %7651 = vmatprep.subr.bf16.mxu1 %v9096_v28  ;;  %v1483_v28 = vld [vmem:[#allocation8 + $0x1fe8] sm:$0xff]  ;;  %v9190_v30 = vcombine.high %v1474_v22, %v1482_v23  ;;  %v476_v33 = vld [vmem:[#allocation8 + $0x70] sm:$0xff] }
 0x3e5   :  { %8150 = vst [vmem:[#allocation11] sm:$0xff] %v8098_v35  ;;  %v9192_v31 = vcombine.high %v1475_v24, %v1483_v28  ;;  %v9191_v35 = vcombine.low %v1475_v24, %v1483_v28  ;;  %v8185_v42 = vcombine.low %v468_v59, %v476_v33  ;;  %v540_v12 = vld [vmem:[#allocation8 + $0x270] sm:$0xff]  ;;  %v549_v24 = vld [vmem:[#allocation8 + $0x2b8] sm:$0xff] }
 0x3e6   :  { %7488 = vmatpush1.bf16.msra.mxu0 %v9093_v61  ;;  %v469_v61 = vld [vmem:[#allocation8 + $0x38] sm:$0xff] }
 0x3e7   :  { %7652 = vmatpush1.bf16.msra.mxu1 %v9095_v34  ;;  %7489 = vmatprep.subr.bf16.mxu0 %v9110_v25  ;;  %v477_v34 = vld [vmem:[#allocation8 + $0x78] sm:$0xff]  ;;  %v9189_v25 = vcombine.low %v1474_v22, %v1482_v23  ;;  %v548_v22 = vld [vmem:[#allocation8 + $0x2b0] sm:$0xff] }
 0x3e8   :  { %7653 = vmatprep.subr.bf16.mxu1 %v9112_v37  ;;  %v8186_v37 = vcombine.high %v468_v59, %v476_v33  ;;  %v8188_v38 = vcombine.high %v469_v61, %v477_v34  ;;  %v556_v23 = vld [vmem:[#allocation8 + $0x2f0] sm:$0xff]  ;;  %v557_v28 = vld [vmem:[#allocation8 + $0x2f8] sm:$0xff] }
 0x3e9   :  { %v564_v59 = vld [vmem:[#allocation8 + $0x330] sm:$0xff] }
 0x3ea   :  { %7490 = vmatpush1.bf16.msra.mxu0 %v9109_v7  ;;  %v485_v7 = vld [vmem:[#allocation8 + $0xb8] sm:$0xff]  ;;  %v572_v33 = vld [vmem:[#allocation8 + $0x370] sm:$0xff] }
 0x3eb   :  { %7654 = vmatpush1.bf16.msra.mxu1 %v9111_v36  ;;  %7491 = vmatprep.subr.bf16.mxu0 %v9126_v44  ;;  %v493_v36 = vld [vmem:[#allocation8 + $0xf8] sm:$0xff]  ;;  %v8187_v44 = vcombine.low %v469_v61, %v477_v34 }
 0x3ec   :  { %7655 = vmatprep.subr.bf16.mxu1 %v9128_v45  ;;  %v8202_v45 = vcombine.high %v484_v39, %v492_v40  ;;  %v8204_v47 = vcombine.high %v485_v7, %v493_v36  ;;  %v565_v61 = vld [vmem:[#allocation8 + $0x338] sm:$0xff] }
 0x3ed   :  { %v573_v34 = vld [vmem:[#allocation8 + $0x378] sm:$0xff] }
 0x3ee   :  { %7492 = vmatpush1.bf16.msra.mxu0 %v9125_v50  ;;  %v509_v50 = vld [vmem:[#allocation8 + $0x178] sm:$0xff] }
 0x3ef   :  { %7656 = vmatpush1.bf16.msra.mxu1 %v9127_v52  ;;  %7493 = vmatprep.subr.bf16.mxu0 %v9142_v54  ;;  %v8201_v52 = vcombine.low %v484_v39, %v492_v40  ;;  %v8203_v54 = vcombine.low %v485_v7, %v493_v36  ;;  %v8220_v55 = vcombine.high %v501_v49, %v509_v50  ;;  %v580_v39 = vld [vmem:[#allocation8 + $0x3b0] sm:$0xff]  ;;  %v589_v7 = vld [vmem:[#allocation8 + $0x3f8] sm:$0xff] }
 0x3f0   :  { %7657 = vmatprep.subr.bf16.mxu1 %v9144_v27  ;;  %v8218_v27 = vcombine.high %v500_v46, %v508_v9  ;;  %v588_v40 = vld [vmem:[#allocation8 + $0x3f0] sm:$0xff]  ;;  %v8281_v36 = vcombine.low %v564_v59, %v572_v33 }
 0x3f2   :  { %7494 = vmatpush1.bf16.msra.mxu0 %v9141_v63  ;;  %v525_v63 = vld [vmem:[#allocation8 + $0x1f8] sm:$0xff] }
 0x3f3   :  { %7658 = vmatpush1.bf16.msra.mxu1 %v9143_v4  ;;  %7495 = vmatprep.subr.bf16.mxu0 %v9158_v5  ;;  %v8217_v4 = vcombine.low %v500_v46, %v508_v9  ;;  %v8219_v5 = vcombine.low %v501_v49, %v509_v50  ;;  %v8236_v10 = vcombine.high %v517_v58, %v525_v63  ;;  %v596_v9 = vld [vmem:[#allocation8 + $0x430] sm:$0xff]  ;;  %v597_v49 = vld [vmem:[#allocation8 + $0x438] sm:$0xff] }
 0x3f4   :  { %7659 = vmatprep.subr.bf16.mxu1 %v9160_v6  ;;  %v8234_v6 = vcombine.high %v516_v56, %v524_v57  ;;  %v605_v50 = vld [vmem:[#allocation8 + $0x478] sm:$0xff] }
 0x3f6   :  { %7496 = vmatpush1.bf16.msra.mxu0 %v9157_v15  ;;  %v541_v15 = vld [vmem:[#allocation8 + $0x278] sm:$0xff] }
 0x3f7   :  { %7660 = vmatpush1.bf16.msra.mxu1 %v9159_v18  ;;  %7497 = vmatprep.subr.bf16.mxu0 %v9174_v19  ;;  %v8235_v18 = vcombine.low %v517_v58, %v525_v63  ;;  %v8250_v19 = vcombine.high %v532_v11, %v540_v12  ;;  %v613_v58 = vld [vmem:[#allocation8 + $0x4b8] sm:$0xff] }
 0x3f8   :  { %7661 = vmatprep.subr.bf16.mxu1 %v9176_v21  ;;  %v8252_v21 = vcombine.high %v533_v13, %v541_v15  ;;  %v621_v63 = vld [vmem:[#allocation8 + $0x4f8] sm:$0xff] }
 0x3fa   :  { %7498 = vmatpush1.bf16.msra.mxu0 %v9173_v29  ;;  %v8249_v29 = vcombine.low %v532_v11, %v540_v12  ;;  %v628_v11 = vld [vmem:[#allocation8 + $0x530] sm:$0xff] }
 0x3fb   :  { %7662 = vmatpush1.bf16.msra.mxu1 %v9175_v0  ;;  %7499 = vmatprep.subr.bf16.mxu0 %v9190_v30  ;;  %v8251_v0 = vcombine.low %v533_v13, %v541_v15  ;;  %v8266_v30 = vcombine.high %v548_v22, %v556_v23  ;;  %v636_v12 = vld [vmem:[#allocation8 + $0x570] sm:$0xff]  ;;  %v629_v13 = vld [vmem:[#allocation8 + $0x538] sm:$0xff] }
 0x3fc   :  { %7663 = vmatprep.subr.bf16.mxu1 %v9192_v31  ;;  %v8268_v31 = vcombine.high %v549_v24, %v557_v28  ;;  %v637_v15 = vld [vmem:[#allocation8 + $0x578] sm:$0xff] }
 0x3fe   :  { %7500 = vmatpush1.bf16.msra.mxu0 %v9189_v25  ;;  %v8265_v25 = vcombine.low %v548_v22, %v556_v23  ;;  %v644_v22 = vld [vmem:[#allocation8 + $0x5b0] sm:$0xff] }
 0x3ff   :  { %7664 = vmatpush1.bf16.msra.mxu1 %v9191_v35  ;;  %7674 = vmatprep.subr.bf16.mxu0 %v8186_v37  ;;  %v8267_v35 = vcombine.low %v549_v24, %v557_v28  ;;  %v8282_v37 = vcombine.high %v564_v59, %v572_v33  ;;  %v652_v23 = vld [vmem:[#allocation8 + $0x5f0] sm:$0xff]  ;;  %v645_v24 = vld [vmem:[#allocation8 + $0x5b8] sm:$0xff] }
 0x400   :  { %7838 = vmatprep.subr.bf16.mxu1 %v8188_v38  ;;  %v8284_v38 = vcombine.high %v565_v61, %v573_v34  ;;  %v653_v28 = vld [vmem:[#allocation8 + $0x5f8] sm:$0xff]  ;;  %v660_v59 = vld [vmem:[#allocation8 + $0x630] sm:$0xff] }
 0x401   :  { %7502 = vmatmul.mubr.bf16.vlgmr.msra.gmra.mrb[12].mxu0 %v9701_v32  ;;  %v668_v33 = vld [vmem:[#allocation8 + $0x670] sm:$0xff] }
 0x402   :  { %7666 = vmatmul.mubr.bf16.vlgmr.msra.gmra.mrb[12].mxu1 %v9701_v32  ;;  %7675 = vmatpush1.bf16.msra.mxu0 %v8185_v42  ;;  %v581_v42 = vld [vmem:[#allocation8 + $0x3b8] sm:$0xff] }
 0x403   :  { %7706 = vmatprep.mubr.bf16.mxu0 %v9636_v16  ;;  %7839 = vmatpush1.bf16.msra.mxu1 %v8187_v44  ;;  %v8283_v44 = vcombine.low %v565_v61, %v573_v34  ;;  %v8300_v46 = vcombine.high %v581_v42, %v589_v7  ;;  %v661_v61 = vld [vmem:[#allocation8 + $0x638] sm:$0xff] }
 0x404   :  { %7870 = vmatprep.mubr.bf16.mxu1 %v9636_v16  ;;  %7676 = vmatprep.subr.bf16.mxu0 %v8202_v45  ;;  %v8233_v16 = vcombine.low %v516_v56, %v524_v57  ;;  %v8298_v45 = vcombine.high %v580_v39, %v588_v40  ;;  %v612_v56 = vld [vmem:[#allocation8 + $0x4b0] sm:$0xff]  ;;  %v669_v34 = vld [vmem:[#allocation8 + $0x678] sm:$0xff] }
 0x405   :  { %7840 = vmatprep.subr.bf16.mxu1 %v8204_v47  ;;  %v604_v47 = vld [vmem:[#allocation8 + $0x470] sm:$0xff] }
 0x406   :  { %7677 = vmatpush1.bf16.msra.mxu0 %v8201_v52  ;;  %v8297_v52 = vcombine.low %v580_v39, %v588_v40  ;;  %v620_v57 = vld [vmem:[#allocation8 + $0x4f0] sm:$0xff] }
 0x407   :  { %7841 = vmatpush1.bf16.msra.mxu1 %v8203_v54  ;;  %7678 = vmatprep.subr.bf16.mxu0 %v8218_v27  ;;  %v8299_v54 = vcombine.low %v581_v42, %v589_v7  ;;  %v8314_v27 = vcombine.high %v596_v9, %v604_v47  ;;  %v676_v39 = vld [vmem:[#allocation8 + $0x6b0] sm:$0xff]  ;;  %v677_v42 = vld [vmem:[#allocation8 + $0x6b8] sm:$0xff] }
 0x408   :  { %7842 = vmatprep.subr.bf16.mxu1 %v8220_v55  ;;  %v8316_v55 = vcombine.high %v597_v49, %v605_v50  ;;  %v684_v40 = vld [vmem:[#allocation8 + $0x6f0] sm:$0xff]  ;;  %v685_v7 = vld [vmem:[#allocation8 + $0x6f8] sm:$0xff] }
 0x40a   :  { %7679 = vmatpush1.bf16.msra.mxu0 %v8217_v4  ;;  %v8313_v4 = vcombine.low %v596_v9, %v604_v47  ;;  %v692_v9 = vld [vmem:[#allocation8 + $0x730] sm:$0xff] }
 0x40b   :  { %7843 = vmatpush1.bf16.msra.mxu1 %v8219_v5  ;;  %7680 = vmatprep.subr.bf16.mxu0 %v8234_v6  ;;  %v8315_v5 = vcombine.low %v597_v49, %v605_v50  ;;  %v8330_v6 = vcombine.high %v612_v56, %v620_v57  ;;  %v700_v47 = vld [vmem:[#allocation8 + $0x770] sm:$0xff]  ;;  %v693_v49 = vld [vmem:[#allocation8 + $0x738] sm:$0xff] }
 0x40c   :  { %7844 = vmatprep.subr.bf16.mxu1 %v8236_v10  ;;  %v8332_v10 = vcombine.high %v613_v58, %v621_v63  ;;  %v701_v50 = vld [vmem:[#allocation8 + $0x778] sm:$0xff] }
 0x40e   :  { %7681 = vmatpush1.bf16.msra.mxu0 %v8233_v16  ;;  %v8329_v16 = vcombine.low %v612_v56, %v620_v57  ;;  %v708_v56 = vld [vmem:[#allocation8 + $0x7b0] sm:$0xff] }
 0x40f   :  { %7845 = vmatpush1.bf16.msra.mxu1 %v8235_v18  ;;  %7682 = vmatprep.subr.bf16.mxu0 %v8250_v19  ;;  %v8331_v18 = vcombine.low %v613_v58, %v621_v63  ;;  %v8346_v19 = vcombine.high %v628_v11, %v636_v12  ;;  %v716_v57 = vld [vmem:[#allocation8 + $0x7f0] sm:$0xff]  ;;  %v709_v58 = vld [vmem:[#allocation8 + $0x7b8] sm:$0xff] }
 0x410   :  { %7846 = vmatprep.subr.bf16.mxu1 %v8252_v21  ;;  %v8348_v21 = vcombine.high %v629_v13, %v637_v15  ;;  %v717_v63 = vld [vmem:[#allocation8 + $0x7f8] sm:$0xff] }
 0x412   :  { %7683 = vmatpush1.bf16.msra.mxu0 %v8249_v29  ;;  %v8345_v29 = vcombine.low %v628_v11, %v636_v12  ;;  %v724_v11 = vld [vmem:[#allocation8 + $0x830] sm:$0xff] }
 0x413   :  { %7847 = vmatpush1.bf16.msra.mxu1 %v8251_v0  ;;  %7684 = vmatprep.subr.bf16.mxu0 %v8266_v30  ;;  %v8347_v0 = vcombine.low %v629_v13, %v637_v15  ;;  %v8362_v30 = vcombine.high %v644_v22, %v652_v23  ;;  %v732_v12 = vld [vmem:[#allocation8 + $0x870] sm:$0xff]  ;;  %v725_v13 = vld [vmem:[#allocation8 + $0x838] sm:$0xff] }
 0x414   :  { %7848 = vmatprep.subr.bf16.mxu1 %v8268_v31  ;;  %v8364_v31 = vcombine.high %v645_v24, %v653_v28  ;;  %v733_v15 = vld [vmem:[#allocation8 + $0x878] sm:$0xff] }
 0x416   :  { %7685 = vmatpush1.bf16.msra.mxu0 %v8265_v25  ;;  %v8361_v25 = vcombine.low %v644_v22, %v652_v23  ;;  %v740_v22 = vld [vmem:[#allocation8 + $0x8b0] sm:$0xff] }
 0x417   :  { %7849 = vmatpush1.bf16.msra.mxu1 %v8267_v35  ;;  %7686 = vmatprep.subr.bf16.mxu0 %v8282_v37  ;;  %v8363_v35 = vcombine.low %v645_v24, %v653_v28  ;;  %v8378_v37 = vcombine.high %v660_v59, %v668_v33  ;;  %v748_v23 = vld [vmem:[#allocation8 + $0x8f0] sm:$0xff]  ;;  %v8441_v24 = vcombine.low %v724_v11, %v732_v12  ;;  %v741_v28 = vld [vmem:[#allocation8 + $0x8b8] sm:$0xff] }
 0x418   :  { %7850 = vmatprep.subr.bf16.mxu1 %v8284_v38  ;;  %v8380_v38 = vcombine.high %v661_v61, %v669_v34 }
 0x41a   :  { %7687 = vmatpush1.bf16.msra.mxu0 %v8281_v36  ;;  %v8377_v36 = vcombine.low %v660_v59, %v668_v33  ;;  %v764_v59 = vld [vmem:[#allocation8 + $0x970] sm:$0xff] }
 0x41b   :  { %7851 = vmatpush1.bf16.msra.mxu1 %v8283_v44  ;;  %7688 = vmatprep.subr.bf16.mxu0 %v8298_v45  ;;  %v8379_v44 = vcombine.low %v661_v61, %v669_v34  ;;  %v8394_v45 = vcombine.high %v676_v39, %v684_v40  ;;  %v757_v61 = vld [vmem:[#allocation8 + $0x938] sm:$0xff] }
 0x41c   :  { %7852 = vmatprep.subr.bf16.mxu1 %v8300_v46  ;;  %v8396_v46 = vcombine.high %v677_v42, %v685_v7  ;;  %v765_v34 = vld [vmem:[#allocation8 + $0x978] sm:$0xff] }
 0x41e   :  { %7689 = vmatpush1.bf16.msra.mxu0 %v8297_v52  ;;  %v8393_v52 = vcombine.low %v676_v39, %v684_v40  ;;  %v772_v39 = vld [vmem:[#allocation8 + $0x9b0] sm:$0xff] }
 0x41f   :  { %7853 = vmatpush1.bf16.msra.mxu1 %v8299_v54  ;;  %7690 = vmatprep.subr.bf16.mxu0 %v8314_v27  ;;  %v8395_v54 = vcombine.low %v677_v42, %v685_v7  ;;  %v8410_v27 = vcombine.high %v692_v9, %v700_v47  ;;  %v780_v40 = vld [vmem:[#allocation8 + $0x9f0] sm:$0xff]  ;;  %v773_v42 = vld [vmem:[#allocation8 + $0x9b8] sm:$0xff] }
 0x420   :  { %7854 = vmatprep.subr.bf16.mxu1 %v8316_v55  ;;  %v8412_v55 = vcombine.high %v693_v49, %v701_v50  ;;  %v781_v7 = vld [vmem:[#allocation8 + $0x9f8] sm:$0xff] }
 0x422   :  { %7691 = vmatpush1.bf16.msra.mxu0 %v8313_v4  ;;  %v8409_v4 = vcombine.low %v692_v9, %v700_v47  ;;  %v796_v9 = vld [vmem:[#allocation8 + $0xa70] sm:$0xff]  ;;  %v789_v47 = vld [vmem:[#allocation8 + $0xa38] sm:$0xff] }
 0x423   :  { %7855 = vmatpush1.bf16.msra.mxu1 %v8315_v5  ;;  %7692 = vmatprep.subr.bf16.mxu0 %v8330_v6  ;;  %v8411_v5 = vcombine.low %v693_v49, %v701_v50  ;;  %v8426_v6 = vcombine.high %v708_v56, %v716_v57  ;;  %v797_v49 = vld [vmem:[#allocation8 + $0xa78] sm:$0xff]  ;;  %v8491_v50 = vcombine.low %v773_v42, %v781_v7 }
 0x424   :  { %7856 = vmatprep.subr.bf16.mxu1 %v8332_v10  ;;  %v8428_v10 = vcombine.high %v709_v58, %v717_v63 }
 0x426   :  { %7693 = vmatpush1.bf16.msra.mxu0 %v8329_v16  ;;  %v8425_v16 = vcombine.low %v708_v56, %v716_v57  ;;  %v805_v56 = vld [vmem:[#allocation8 + $0xab8] sm:$0xff] }
 0x427   :  { %7857 = vmatpush1.bf16.msra.mxu1 %v8331_v18  ;;  %7694 = vmatprep.subr.bf16.mxu0 %v8346_v19  ;;  %v8427_v18 = vcombine.low %v709_v58, %v717_v63  ;;  %v8442_v19 = vcombine.high %v724_v11, %v732_v12  ;;  %v813_v57 = vld [vmem:[#allocation8 + $0xaf8] sm:$0xff]  ;;  %v8507_v63 = vcombine.low %v789_v47, %v797_v49 }
 0x428   :  { %7858 = vmatprep.subr.bf16.mxu1 %v8348_v21  ;;  %v8444_v21 = vcombine.high %v725_v13, %v733_v15  ;;  %v821_v11 = vld [vmem:[#allocation8 + $0xb38] sm:$0xff] }
 0x429   :  { %v829_v12 = vld [vmem:[#allocation8 + $0xb78] sm:$0xff] }
 0x42a   :  { %7695 = vmatpush1.bf16.msra.mxu0 %v8345_v29  ;;  %v749_v29 = vld [vmem:[#allocation8 + $0x8f8] sm:$0xff] }
 0x42b   :  { %7859 = vmatpush1.bf16.msra.mxu1 %v8347_v0  ;;  %7696 = vmatprep.subr.bf16.mxu0 %v8362_v30  ;;  %v8443_v0 = vcombine.low %v725_v13, %v733_v15  ;;  %v8458_v30 = vcombine.high %v740_v22, %v748_v23  ;;  %v8460_v33 = vcombine.high %v741_v28, %v749_v29 }
 0x42c   :  { %7860 = vmatprep.subr.bf16.mxu1 %v8364_v31  ;;  %v756_v31 = vld [vmem:[#allocation8 + $0x930] sm:$0xff]  ;;  %v8523_v15 = vcombine.low %v805_v56, %v813_v57 }
 0x42e   :  { %7697 = vmatpush1.bf16.msra.mxu0 %v8361_v25  ;;  %v8457_v25 = vcombine.low %v740_v22, %v748_v23  ;;  %v837_v22 = vld [vmem:[#allocation8 + $0xbb8] sm:$0xff] }
 0x42f   :  { %7861 = vmatpush1.bf16.msra.mxu1 %v8363_v35  ;;  %7698 = vmatprep.subr.bf16.mxu0 %v8378_v37  ;;  %v8459_v35 = vcombine.low %v741_v28, %v749_v29  ;;  %v8474_v37 = vcombine.high %v756_v31, %v764_v59  ;;  %v845_v23 = vld [vmem:[#allocation8 + $0xbf8] sm:$0xff]  ;;  %v8539_v28 = vcombine.low %v821_v11, %v829_v12 }
 0x430   :  { %7862 = vmatprep.subr.bf16.mxu1 %v8380_v38  ;;  %v8476_v38 = vcombine.high %v757_v61, %v765_v34 }
 0x432   :  { %7699 = vmatpush1.bf16.msra.mxu0 %v8377_v36  ;;  %v8473_v36 = vcombine.low %v756_v31, %v764_v59  ;;  %v860_v31 = vld [vmem:[#allocation8 + $0xc70] sm:$0xff]  ;;  %v853_v59 = vld [vmem:[#allocation8 + $0xc38] sm:$0xff] }
 0x433   :  { %7863 = vmatpush1.bf16.msra.mxu1 %v8379_v44  ;;  %7700 = vmatprep.subr.bf16.mxu0 %v8394_v45  ;;  %v8490_v44 = vcombine.high %v772_v39, %v780_v40  ;;  %v8492_v45 = vcombine.high %v773_v42, %v781_v7 }
 0x434   :  { %7864 = vmatprep.subr.bf16.mxu1 %v8396_v46  ;;  %v788_v46 = vld [vmem:[#allocation8 + $0xa30] sm:$0xff] }
 0x435   :  { %v8505_v58 = vcombine.low %v788_v46, %v796_v9 }
 0x436   :  { %7701 = vmatpush1.bf16.msra.mxu0 %v8393_v52  ;;  %v8506_v52 = vcombine.high %v788_v46, %v796_v9  ;;  %v885_v46 = vld [vmem:[#allocation8 + $0xd38] sm:$0xff] }
 0x437   :  { %7865 = vmatpush1.bf16.msra.mxu1 %v8395_v54  ;;  %7702 = vmatprep.subr.bf16.mxu0 %v8410_v27  ;;  %v8508_v54 = vcombine.high %v789_v47, %v797_v49  ;;  %v804_v27 = vld [vmem:[#allocation8 + $0xab0] sm:$0xff]  ;;  %v893_v9 = vld [vmem:[#allocation8 + $0xd78] sm:$0xff] }
 0x438   :  { %7866 = vmatprep.subr.bf16.mxu1 %v8412_v55  ;;  %v812_v55 = vld [vmem:[#allocation8 + $0xaf0] sm:$0xff] }
 0x439   :  { %v8521_v13 = vcombine.low %v804_v27, %v812_v55 }
 0x43a   :  { %7703 = vmatpush1.bf16.msra.mxu0 %v8409_v4  ;;  %v8522_v4 = vcombine.high %v804_v27, %v812_v55  ;;  %v901_v27 = vld [vmem:[#allocation8 + $0xdb8] sm:$0xff] }
 0x43b   :  { %7867 = vmatpush1.bf16.msra.mxu1 %v8411_v5  ;;  %7704 = vmatprep.subr.bf16.mxu0 %v8426_v6  ;;  %v8524_v5 = vcombine.high %v805_v56, %v813_v57  ;;  %v820_v6 = vld [vmem:[#allocation8 + $0xb30] sm:$0xff]  ;;  %v909_v55 = vld [vmem:[#allocation8 + $0xdf8] sm:$0xff]  ;;  %v8603_v57 = vcombine.low %v885_v46, %v893_v9 }
 0x43c   :  { %7868 = vmatprep.subr.bf16.mxu1 %v8428_v10  ;;  %v828_v10 = vld [vmem:[#allocation8 + $0xb70] sm:$0xff] }
 0x43e   :  { %7705 = vmatpush1.bf16.msra.mxu0 %v8425_v16  ;;  %v8538_v16 = vcombine.high %v820_v6, %v828_v10 }
 0x43f   :  { %7869 = vmatpush1.bf16.msra.mxu1 %v8427_v18  ;;  %7715 = vmatprep.subr.bf16.mxu0 %v8442_v19  ;;  %v8540_v18 = vcombine.high %v821_v11, %v829_v12  ;;  %v836_v19 = vld [vmem:[#allocation8 + $0xbb0] sm:$0xff]  ;;  %v8619_v12 = vcombine.low %v901_v27, %v909_v55 }
 0x440   :  { %7879 = vmatprep.subr.bf16.mxu1 %v8444_v21  ;;  %v844_v21 = vld [vmem:[#allocation8 + $0xbf0] sm:$0xff] }
 0x441   :  { %7707 = vmatmul.mubr.bf16.vlgmr.msra.gmra.mrb[16].mxu0 %v9638_v17  ;;  %v8554_v29 = vcombine.high %v836_v19, %v844_v21 }
 0x442   :  { %7871 = vmatmul.mubr.bf16.vlgmr.msra.gmra.mrb[16].mxu1 %v9638_v17  ;;  %7716 = vmatpush1.bf16.msra.mxu0 %v8441_v24  ;;  %v8475_v17 = vcombine.low %v757_v61, %v765_v34  ;;  %v8537_v24 = vcombine.low %v820_v6, %v828_v10  ;;  %v8553_v61 = vcombine.low %v836_v19, %v844_v21  ;;  %v917_v6 = vld [vmem:[#allocation8 + $0xe38] sm:$0xff] }
 0x443   :  { %7747 = vmatprep.mubr.bf16.mxu0 %v9646_v26  ;;  %7880 = vmatpush1.bf16.msra.mxu1 %v8443_v0  ;;  %v8556_v0 = vcombine.high %v837_v22, %v845_v23  ;;  %v8555_v34 = vcombine.low %v837_v22, %v845_v23  ;;  %v925_v10 = vld [vmem:[#allocation8 + $0xe78] sm:$0xff] }
 0x444   :  { %7911 = vmatprep.mubr.bf16.mxu1 %v9646_v26  ;;  %7717 = vmatprep.subr.bf16.mxu0 %v8458_v30  ;;  %v8489_v26 = vcombine.low %v772_v39, %v780_v40  ;;  %v852_v30 = vld [vmem:[#allocation8 + $0xc30] sm:$0xff]  ;;  %v869_v39 = vld [vmem:[#allocation8 + $0xcb8] sm:$0xff]  ;;  %v8635_v23 = vcombine.low %v917_v6, %v925_v10 }
 0x445   :  { %7881 = vmatprep.subr.bf16.mxu1 %v8460_v33  ;;  %v861_v33 = vld [vmem:[#allocation8 + $0xc78] sm:$0xff]  ;;  %v8569_v42 = vcombine.low %v852_v30, %v860_v31 }
 0x446   :  { %7718 = vmatpush1.bf16.msra.mxu0 %v8457_v25  ;;  %v8570_v25 = vcombine.high %v852_v30, %v860_v31  ;;  %v877_v40 = vld [vmem:[#allocation8 + $0xcf8] sm:$0xff]  ;;  %v8571_v7 = vcombine.low %v853_v59, %v861_v33 }
 0x447   :  { %7882 = vmatpush1.bf16.msra.mxu1 %v8459_v35  ;;  %7719 = vmatprep.subr.bf16.mxu0 %v8474_v37  ;;  %v8572_v35 = vcombine.high %v853_v59, %v861_v33  ;;  %v868_v37 = vld [vmem:[#allocation8 + $0xcb0] sm:$0xff]  ;;  %v8587_v49 = vcombine.low %v869_v39, %v877_v40  ;;  %v933_v19 = vld [vmem:[#allocation8 + $0xeb8] sm:$0xff] }
 0x448   :  { %7883 = vmatprep.subr.bf16.mxu1 %v8476_v38  ;;  %v876_v38 = vld [vmem:[#allocation8 + $0xcf0] sm:$0xff]  ;;  %v941_v21 = vld [vmem:[#allocation8 + $0xef8] sm:$0xff] }
 0x449   :  { %v8585_v47 = vcombine.low %v868_v37, %v876_v38  ;;  %v949_v30 = vld [vmem:[#allocation8 + $0xf38] sm:$0xff]  ;;  %v8651_v33 = vcombine.low %v933_v19, %v941_v21 }
 0x44a   :  { %7720 = vmatpush1.bf16.msra.mxu0 %v8473_v36  ;;  %v8586_v36 = vcombine.high %v868_v37, %v876_v38  ;;  %v957_v31 = vld [vmem:[#allocation8 + $0xf78] sm:$0xff] }
 0x44b   :  { %7884 = vmatpush1.bf16.msra.mxu1 %v8475_v17  ;;  %7721 = vmatprep.subr.bf16.mxu0 %v8490_v44  ;;  %v8588_v17 = vcombine.high %v869_v39, %v877_v40  ;;  %v884_v44 = vld [vmem:[#allocation8 + $0xd30] sm:$0xff]  ;;  %v965_v37 = vld [vmem:[#allocation8 + $0xfb8] sm:$0xff]  ;;  %v8667_v40 = vcombine.low %v949_v30, %v957_v31 }
 0x44c   :  { %7885 = vmatprep.subr.bf16.mxu1 %v8492_v45  ;;  %v892_v45 = vld [vmem:[#allocation8 + $0xd70] sm:$0xff]  ;;  %v973_v38 = vld [vmem:[#allocation8 + $0xff8] sm:$0xff] }
 0x44d   :  { %v8601_v56 = vcombine.low %v884_v44, %v892_v45 }
 0x44e   :  { %7722 = vmatpush1.bf16.msra.mxu0 %v8489_v26  ;;  %v8602_v26 = vcombine.high %v884_v44, %v892_v45  ;;  %v981_v44 = vld [vmem:[#allocation8 + $0x1038] sm:$0xff] }
 0x44f   :  { %7886 = vmatpush1.bf16.msra.mxu1 %v8491_v50  ;;  %7723 = vmatprep.subr.bf16.mxu0 %v8506_v52  ;;  %v8604_v50 = vcombine.high %v885_v46, %v893_v9  ;;  %v900_v52 = vld [vmem:[#allocation8 + $0xdb0] sm:$0xff]  ;;  %v989_v45 = vld [vmem:[#allocation8 + $0x1078] sm:$0xff]  ;;  %v8683_v9 = vcombine.low %v965_v37, %v973_v38 }
 0x450   :  { %7887 = vmatprep.subr.bf16.mxu1 %v8508_v54  ;;  %v908_v54 = vld [vmem:[#allocation8 + $0xdf0] sm:$0xff] }
 0x451   :  { %v8617_v11 = vcombine.low %v900_v52, %v908_v54 }
 0x452   :  { %7724 = vmatpush1.bf16.msra.mxu0 %v8505_v58  ;;  %v8618_v58 = vcombine.high %v900_v52, %v908_v54  ;;  %v997_v54 = vld [vmem:[#allocation8 + $0x10b8] sm:$0xff] }
 0x453   :  { %7888 = vmatpush1.bf16.msra.mxu1 %v8507_v63  ;;  %7725 = vmatprep.subr.bf16.mxu0 %v8522_v4  ;;  %v8620_v63 = vcombine.high %v901_v27, %v909_v55  ;;  %v916_v4 = vld [vmem:[#allocation8 + $0xe30] sm:$0xff]  ;;  %v1005_v27 = vld [vmem:[#allocation8 + $0x10f8] sm:$0xff]  ;;  %v8699_v55 = vcombine.low %v981_v44, %v989_v45 }
 0x454   :  { %7889 = vmatprep.subr.bf16.mxu1 %v8524_v5  ;;  %v924_v5 = vld [vmem:[#allocation8 + $0xe70] sm:$0xff] }
 0x455   :  { %v8633_v22 = vcombine.low %v916_v4, %v924_v5 }
 0x456   :  { %7726 = vmatpush1.bf16.msra.mxu0 %v8521_v13  ;;  %v8634_v13 = vcombine.high %v916_v4, %v924_v5  ;;  %v1013_v4 = vld [vmem:[#allocation8 + $0x1138] sm:$0xff] }
 0x457   :  { %7890 = vmatpush1.bf16.msra.mxu1 %v8523_v15  ;;  %7727 = vmatprep.subr.bf16.mxu0 %v8538_v16  ;;  %v8636_v15 = vcombine.high %v917_v6, %v925_v10  ;;  %v932_v16 = vld [vmem:[#allocation8 + $0xeb0] sm:$0xff]  ;;  %v1021_v5 = vld [vmem:[#allocation8 + $0x1178] sm:$0xff]  ;;  %v8715_v10 = vcombine.low %v997_v54, %v1005_v27 }
 0x458   :  { %7891 = vmatprep.subr.bf16.mxu1 %v8540_v18  ;;  %v940_v18 = vld [vmem:[#allocation8 + $0xef0] sm:$0xff] }
 0x459   :  { %v8649_v59 = vcombine.low %v932_v16, %v940_v18 }
 0x45a   :  { %7728 = vmatpush1.bf16.msra.mxu0 %v8537_v24  ;;  %v8650_v24 = vcombine.high %v932_v16, %v940_v18  ;;  %v1029_v16 = vld [vmem:[#allocation8 + $0x11b8] sm:$0xff] }
 0x45b   :  { %7892 = vmatpush1.bf16.msra.mxu1 %v8539_v28  ;;  %7729 = vmatprep.subr.bf16.mxu0 %v8554_v29  ;;  %v8652_v28 = vcombine.high %v933_v19, %v941_v21  ;;  %v948_v29 = vld [vmem:[#allocation8 + $0xf30] sm:$0xff]  ;;  %v1037_v18 = vld [vmem:[#allocation8 + $0x11f8] sm:$0xff] }
 0x45c   :  { %7893 = vmatprep.subr.bf16.mxu1 %v8556_v0  ;;  %v956_v0 = vld [vmem:[#allocation8 + $0xf70] sm:$0xff] }
 0x45d   :  { %v8665_v39 = vcombine.low %v948_v29, %v956_v0 }
 0x45e   :  { %7730 = vmatpush1.bf16.msra.mxu0 %v8553_v61  ;;  %v8666_v61 = vcombine.high %v948_v29, %v956_v0  ;;  %v1053_v29 = vld [vmem:[#allocation8 + $0x1278] sm:$0xff]  ;;  %v8747_v0 = vcombine.low %v1029_v16, %v1037_v18 }
 0x45f   :  { %7894 = vmatpush1.bf16.msra.mxu1 %v8555_v34  ;;  %7731 = vmatprep.subr.bf16.mxu0 %v8570_v25  ;;  %v8668_v34 = vcombine.high %v949_v30, %v957_v31  ;;  %v964_v25 = vld [vmem:[#allocation8 + $0xfb0] sm:$0xff] }
 0x460   :  { %7895 = vmatprep.subr.bf16.mxu1 %v8572_v35  ;;  %v972_v35 = vld [vmem:[#allocation8 + $0xff0] sm:$0xff] }
 0x461   :  { %v8681_v46 = vcombine.low %v964_v25, %v972_v35 }
 0x462   :  { %7732 = vmatpush1.bf16.msra.mxu0 %v8569_v42  ;;  %v8682_v42 = vcombine.high %v964_v25, %v972_v35 }
 0x463   :  { %7896 = vmatpush1.bf16.msra.mxu1 %v8571_v7  ;;  %7733 = vmatprep.subr.bf16.mxu0 %v8586_v36  ;;  %v8684_v7 = vcombine.high %v965_v37, %v973_v38  ;;  %v980_v36 = vld [vmem:[#allocation8 + $0x1030] sm:$0xff] }
 0x464   :  { %7897 = vmatprep.subr.bf16.mxu1 %v8588_v17  ;;  %v988_v17 = vld [vmem:[#allocation8 + $0x1070] sm:$0xff] }
 0x465   :  { %v8697_v52 = vcombine.low %v980_v36, %v988_v17 }
 0x466   :  { %7734 = vmatpush1.bf16.msra.mxu0 %v8585_v47  ;;  %v8698_v47 = vcombine.high %v980_v36, %v988_v17 }
 0x467   :  { %7898 = vmatpush1.bf16.msra.mxu1 %v8587_v49  ;;  %7735 = vmatprep.subr.bf16.mxu0 %v8602_v26  ;;  %v8700_v49 = vcombine.high %v981_v44, %v989_v45  ;;  %v996_v26 = vld [vmem:[#allocation8 + $0x10b0] sm:$0xff] }
 0x468   :  { %7899 = vmatprep.subr.bf16.mxu1 %v8604_v50  ;;  %v1004_v50 = vld [vmem:[#allocation8 + $0x10f0] sm:$0xff] }
 0x469   :  { %v8713_v6 = vcombine.low %v996_v26, %v1004_v50 }
 0x46a   :  { %7736 = vmatpush1.bf16.msra.mxu0 %v8601_v56  ;;  %v8714_v56 = vcombine.high %v996_v26, %v1004_v50 }
 0x46b   :  { %7900 = vmatpush1.bf16.msra.mxu1 %v8603_v57  ;;  %7737 = vmatprep.subr.bf16.mxu0 %v8618_v58  ;;  %v1012_v57 = vld [vmem:[#allocation8 + $0x1130] sm:$0xff] }
 0x46c   :  { %7901 = vmatprep.subr.bf16.mxu1 %v8620_v63  ;;  %v1020_v58 = vld [vmem:[#allocation8 + $0x1170] sm:$0xff]  ;;  %v8716_v63 = vcombine.high %v997_v54, %v1005_v27 }
 0x46d   :  { %v8729_v19 = vcombine.low %v1012_v57, %v1020_v58  ;;  %v1108_v27 = vld [vmem:[#allocation8 + $0x1430] sm:$0xff] }
 0x46e   :  { %7738 = vmatpush1.bf16.msra.mxu0 %v8617_v11  ;;  %v8730_v11 = vcombine.high %v1012_v57, %v1020_v58  ;;  %v1117_v57 = vld [vmem:[#allocation8 + $0x1478] sm:$0xff] }
 0x46f   :  { %7902 = vmatpush1.bf16.msra.mxu1 %v8619_v12  ;;  %7739 = vmatprep.subr.bf16.mxu0 %v8634_v13  ;;  %v8732_v12 = vcombine.high %v1013_v4, %v1021_v5  ;;  %v1028_v13 = vld [vmem:[#allocation8 + $0x11b0] sm:$0xff] }
 0x470   :  { %7903 = vmatprep.subr.bf16.mxu1 %v8636_v15  ;;  %v1036_v15 = vld [vmem:[#allocation8 + $0x11f0] sm:$0xff] }
 0x471   :  { %v8746_v21 = vcombine.high %v1028_v13, %v1036_v15 }
 0x472   :  { %7740 = vmatpush1.bf16.msra.mxu0 %v8633_v22  ;;  %v8748_v22 = vcombine.high %v1029_v16, %v1037_v18 }
 0x473   :  { %7904 = vmatpush1.bf16.msra.mxu1 %v8635_v23  ;;  %7741 = vmatprep.subr.bf16.mxu0 %v8650_v24  ;;  %v1044_v23 = vld [vmem:[#allocation8 + $0x1230] sm:$0xff] }
 0x474   :  { %7905 = vmatprep.subr.bf16.mxu1 %v8652_v28  ;;  %v1052_v24 = vld [vmem:[#allocation8 + $0x1270] sm:$0xff]  ;;  %v1045_v28 = vld [vmem:[#allocation8 + $0x1238] sm:$0xff] }
 0x475   :  { %v8762_v30 = vcombine.high %v1044_v23, %v1052_v24  ;;  %v8764_v31 = vcombine.high %v1045_v28, %v1053_v29  ;;  %v8761_v25 = vcombine.low %v1044_v23, %v1052_v24  ;;  %v8763_v35 = vcombine.low %v1045_v28, %v1053_v29 }
 0x476   :  { %7742 = vmatpush1.bf16.msra.mxu0 %v8649_v59  ;;  %v1060_v59 = vld [vmem:[#allocation8 + $0x12b0] sm:$0xff] }
 0x477   :  { %7906 = vmatpush1.bf16.msra.mxu1 %v8651_v33  ;;  %7743 = vmatprep.subr.bf16.mxu0 %v8666_v61  ;;  %v1068_v33 = vld [vmem:[#allocation8 + $0x12f0] sm:$0xff]  ;;  %v1061_v61 = vld [vmem:[#allocation8 + $0x12b8] sm:$0xff] }
 0x478   :  { %7907 = vmatprep.subr.bf16.mxu1 %v8668_v34  ;;  %v1069_v34 = vld [vmem:[#allocation8 + $0x12f8] sm:$0xff]  ;;  %v8778_v37 = vcombine.high %v1060_v59, %v1068_v33  ;;  %v8777_v36 = vcombine.low %v1060_v59, %v1068_v33 }
 0x479   :  { %v8780_v38 = vcombine.high %v1061_v61, %v1069_v34  ;;  %v8779_v17 = vcombine.low %v1061_v61, %v1069_v34 }
 0x47a   :  { %7744 = vmatpush1.bf16.msra.mxu0 %v8665_v39  ;;  %v1076_v39 = vld [vmem:[#allocation8 + $0x1330] sm:$0xff] }
 0x47b   :  { %7908 = vmatpush1.bf16.msra.mxu1 %v8667_v40  ;;  %7745 = vmatprep.subr.bf16.mxu0 %v8682_v42  ;;  %v1084_v40 = vld [vmem:[#allocation8 + $0x1370] sm:$0xff]  ;;  %v1077_v42 = vld [vmem:[#allocation8 + $0x1338] sm:$0xff] }
 0x47c   :  { %7909 = vmatprep.subr.bf16.mxu1 %v8684_v7  ;;  %v1085_v7 = vld [vmem:[#allocation8 + $0x1378] sm:$0xff]  ;;  %v8794_v44 = vcombine.high %v1076_v39, %v1084_v40  ;;  %v8793_v26 = vcombine.low %v1076_v39, %v1084_v40 }
 0x47d   :  { %v8796_v45 = vcombine.high %v1077_v42, %v1085_v7  ;;  %v8795_v50 = vcombine.low %v1077_v42, %v1085_v7 }
 0x47e   :  { %7746 = vmatpush1.bf16.msra.mxu0 %v8681_v46  ;;  %v1092_v46 = vld [vmem:[#allocation8 + $0x13b0] sm:$0xff] }
 0x47f   :  { %7910 = vmatpush1.bf16.msra.mxu1 %v8683_v9  ;;  %7756 = vmatprep.subr.bf16.mxu0 %v8698_v47  ;;  %v1100_v9 = vld [vmem:[#allocation8 + $0x13f0] sm:$0xff]  ;;  %v1093_v47 = vld [vmem:[#allocation8 + $0x13b8] sm:$0xff] }
 0x480   :  { %7920 = vmatprep.subr.bf16.mxu1 %v8700_v49  ;;  %v1101_v49 = vld [vmem:[#allocation8 + $0x13f8] sm:$0xff]  ;;  %v8809_v58 = vcombine.low %v1092_v46, %v1100_v9 }
 0x481   :  { %7748 = vmatmul.mubr.bf16.vlgmr.msra.gmra.mrb[16].mxu0 %v9668_v53  ;;  %v8812_v54 = vcombine.high %v1093_v47, %v1101_v49 }
 0x482   :  { %7912 = vmatmul.mubr.bf16.vlgmr.msra.gmra.mrb[16].mxu1 %v9668_v53  ;;  %7757 = vmatpush1.bf16.msra.mxu0 %v8697_v52  ;;  %v8731_v53 = vcombine.low %v1013_v4, %v1021_v5  ;;  %v8810_v52 = vcombine.high %v1092_v46, %v1100_v9 }
 0x483   :  { %7788 = vmatprep.mubr.bf16.mxu0 %v9670_v3  ;;  %7921 = vmatpush1.bf16.msra.mxu1 %v8699_v55  ;;  %v1116_v55 = vld [vmem:[#allocation8 + $0x1470] sm:$0xff] }
 0x484   :  { %7952 = vmatprep.mubr.bf16.mxu1 %v9670_v3  ;;  %7758 = vmatprep.subr.bf16.mxu0 %v8714_v56  ;;  %v8745_v3 = vcombine.low %v1028_v13, %v1036_v15  ;;  %v1109_v56 = vld [vmem:[#allocation8 + $0x1438] sm:$0xff]  ;;  %v8826_v4 = vcombine.high %v1108_v27, %v1116_v55  ;;  %v8825_v13 = vcombine.low %v1108_v27, %v1116_v55 }
 0x485   :  { %7922 = vmatprep.subr.bf16.mxu1 %v8716_v63  ;;  %v8811_v63 = vcombine.low %v1093_v47, %v1101_v49  ;;  %v8828_v5 = vcombine.high %v1109_v56, %v1117_v57  ;;  %v8827_v15 = vcombine.low %v1109_v56, %v1117_v57 }
 0x486   :  { %7759 = vmatpush1.bf16.msra.mxu0 %v8713_v6  ;;  %v1124_v6 = vld [vmem:[#allocation8 + $0x14b0] sm:$0xff] }
 0x487   :  { %7923 = vmatpush1.bf16.msra.mxu1 %v8715_v10  ;;  %7760 = vmatprep.subr.bf16.mxu0 %v8730_v11  ;;  %v1132_v10 = vld [vmem:[#allocation8 + $0x14f0] sm:$0xff]  ;;  %v1125_v11 = vld [vmem:[#allocation8 + $0x14b8] sm:$0xff] }
 0x488   :  { %7924 = vmatprep.subr.bf16.mxu1 %v8732_v12  ;;  %v1133_v12 = vld [vmem:[#allocation8 + $0x14f8] sm:$0xff]  ;;  %v8842_v16 = vcombine.high %v1124_v6, %v1132_v10  ;;  %v8841_v23 = vcombine.low %v1124_v6, %v1132_v10 }
 0x489   :  { %v8844_v18 = vcombine.high %v1125_v11, %v1133_v12  ;;  %v8843_v24 = vcombine.low %v1125_v11, %v1133_v12 }
 0x48a   :  { %7761 = vmatpush1.bf16.msra.mxu0 %v8729_v19  ;;  %v1140_v19 = vld [vmem:[#allocation8 + $0x1530] sm:$0xff] }
 0x48b   :  { %7925 = vmatpush1.bf16.msra.mxu1 %v8731_v53  ;;  %7762 = vmatprep.subr.bf16.mxu0 %v8746_v21  ;;  %v1148_v53 = vld [vmem:[#allocation8 + $0x1570] sm:$0xff]  ;;  %v1141_v21 = vld [vmem:[#allocation8 + $0x1538] sm:$0xff] }
 0x48c   :  { %7926 = vmatprep.subr.bf16.mxu1 %v8748_v22  ;;  %v1149_v22 = vld [vmem:[#allocation8 + $0x1578] sm:$0xff]  ;;  %v8858_v28 = vcombine.high %v1140_v19, %v1148_v53  ;;  %v8857_v59 = vcombine.low %v1140_v19, %v1148_v53 }
 0x48d   :  { %v8860_v29 = vcombine.high %v1141_v21, %v1149_v22  ;;  %v8859_v33 = vcombine.low %v1141_v21, %v1149_v22 }
 0x48e   :  { %7763 = vmatpush1.bf16.msra.mxu0 %v8745_v3  ;;  %v1156_v3 = vld [vmem:[#allocation8 + $0x15b0] sm:$0xff] }
 0x48f   :  { %7927 = vmatpush1.bf16.msra.mxu1 %v8747_v0  ;;  %7764 = vmatprep.subr.bf16.mxu0 %v8762_v30  ;;  %v1164_v0 = vld [vmem:[#allocation8 + $0x15f0] sm:$0xff]  ;;  %v1157_v30 = vld [vmem:[#allocation8 + $0x15b8] sm:$0xff] }
 0x490   :  { %7928 = vmatprep.subr.bf16.mxu1 %v8764_v31  ;;  %v1165_v31 = vld [vmem:[#allocation8 + $0x15f8] sm:$0xff]  ;;  %v8874_v61 = vcombine.high %v1156_v3, %v1164_v0  ;;  %v8873_v39 = vcombine.low %v1156_v3, %v1164_v0 }
 0x491   :  { %v8876_v34 = vcombine.high %v1157_v30, %v1165_v31  ;;  %v8875_v40 = vcombine.low %v1157_v30, %v1165_v31  ;;  %v1261_v3 = vld [vmem:[#allocation8 + $0x18f8] sm:$0xff]  ;;  %v1268_v31 = vld [vmem:[#allocation8 + $0x1930] sm:$0xff] }
 0x492   :  { %7765 = vmatpush1.bf16.msra.mxu0 %v8761_v25  ;;  %v1172_v25 = vld [vmem:[#allocation8 + $0x1630] sm:$0xff] }
 0x493   :  { %7929 = vmatpush1.bf16.msra.mxu1 %v8763_v35  ;;  %7766 = vmatprep.subr.bf16.mxu0 %v8778_v37  ;;  %v1180_v35 = vld [vmem:[#allocation8 + $0x1670] sm:$0xff]  ;;  %v1173_v37 = vld [vmem:[#allocation8 + $0x1638] sm:$0xff] }
 0x494   :  { %7930 = vmatprep.subr.bf16.mxu1 %v8780_v38  ;;  %v1181_v38 = vld [vmem:[#allocation8 + $0x1678] sm:$0xff]  ;;  %v8890_v42 = vcombine.high %v1172_v25, %v1180_v35  ;;  %v8889_v46 = vcombine.low %v1172_v25, %v1180_v35 }
 0x495   :  { %v8892_v7 = vcombine.high %v1173_v37, %v1181_v38  ;;  %v8891_v9 = vcombine.low %v1173_v37, %v1181_v38 }
 0x496   :  { %7767 = vmatpush1.bf16.msra.mxu0 %v8777_v36  ;;  %v1188_v36 = vld [vmem:[#allocation8 + $0x16b0] sm:$0xff] }
 0x497   :  { %7931 = vmatpush1.bf16.msra.mxu1 %v8779_v17  ;;  %7768 = vmatprep.subr.bf16.mxu0 %v8794_v44  ;;  %v1196_v17 = vld [vmem:[#allocation8 + $0x16f0] sm:$0xff]  ;;  %v1189_v44 = vld [vmem:[#allocation8 + $0x16b8] sm:$0xff] }
 0x498   :  { %7932 = vmatprep.subr.bf16.mxu1 %v8796_v45  ;;  %v1197_v45 = vld [vmem:[#allocation8 + $0x16f8] sm:$0xff]  ;;  %v8906_v47 = vcombine.high %v1188_v36, %v1196_v17  ;;  %v8905_v27 = vcombine.low %v1188_v36, %v1196_v17 }
 0x499   :  { %v8908_v49 = vcombine.high %v1189_v44, %v1197_v45  ;;  %v8907_v55 = vcombine.low %v1189_v44, %v1197_v45  ;;  %v1300_v45 = vld [vmem:[#allocation8 + $0x1a30] sm:$0xff] }
 0x49a   :  { %7769 = vmatpush1.bf16.msra.mxu0 %v8793_v26  ;;  %v1204_v26 = vld [vmem:[#allocation8 + $0x1730] sm:$0xff] }
 0x49b   :  { %7933 = vmatpush1.bf16.msra.mxu1 %v8795_v50  ;;  %7770 = vmatprep.subr.bf16.mxu0 %v8810_v52  ;;  %v1212_v50 = vld [vmem:[#allocation8 + $0x1770] sm:$0xff]  ;;  %v1205_v52 = vld [vmem:[#allocation8 + $0x1738] sm:$0xff] }
 0x49c   :  { %7934 = vmatprep.subr.bf16.mxu1 %v8812_v54  ;;  %v1213_v54 = vld [vmem:[#allocation8 + $0x1778] sm:$0xff]  ;;  %v8922_v56 = vcombine.high %v1204_v26, %v1212_v50  ;;  %v8921_v6 = vcombine.low %v1204_v26, %v1212_v50 }
 0x49d   :  { %v8924_v57 = vcombine.high %v1205_v52, %v1213_v54  ;;  %v8923_v10 = vcombine.low %v1205_v52, %v1213_v54  ;;  %v1316_v52 = vld [vmem:[#allocation8 + $0x1ab0] sm:$0xff] }
 0x49e   :  { %7771 = vmatpush1.bf16.msra.mxu0 %v8809_v58  ;;  %v1220_v58 = vld [vmem:[#allocation8 + $0x17b0] sm:$0xff] }
 0x49f   :  { %7935 = vmatpush1.bf16.msra.mxu1 %v8811_v63  ;;  %7772 = vmatprep.subr.bf16.mxu0 %v8826_v4  ;;  %v1228_v63 = vld [vmem:[#allocation8 + $0x17f0] sm:$0xff]  ;;  %v1221_v4 = vld [vmem:[#allocation8 + $0x17b8] sm:$0xff] }
 0x4a0   :  { %7936 = vmatprep.subr.bf16.mxu1 %v8828_v5  ;;  %v1229_v5 = vld [vmem:[#allocation8 + $0x17f8] sm:$0xff]  ;;  %v8938_v11 = vcombine.high %v1220_v58, %v1228_v63  ;;  %v8937_v19 = vcombine.low %v1220_v58, %v1228_v63  ;;  %v1324_v54 = vld [vmem:[#allocation8 + $0x1af0] sm:$0xff] }
 0x4a1   :  { %v8940_v12 = vcombine.high %v1221_v4, %v1229_v5  ;;  %v8939_v53 = vcombine.low %v1221_v4, %v1229_v5  ;;  %v9034_v63 = vcombine.high %v1316_v52, %v1324_v54  ;;  %v1332_v5 = vld [vmem:[#allocation8 + $0x1b30] sm:$0xff] }
 0x4a2   :  { %7773 = vmatpush1.bf16.msra.mxu0 %v8825_v13  ;;  %v1236_v13 = vld [vmem:[#allocation8 + $0x1830] sm:$0xff] }
 0x4a3   :  { %7937 = vmatpush1.bf16.msra.mxu1 %v8827_v15  ;;  %7774 = vmatprep.subr.bf16.mxu0 %v8842_v16  ;;  %v1244_v15 = vld [vmem:[#allocation8 + $0x1870] sm:$0xff]  ;;  %v1237_v16 = vld [vmem:[#allocation8 + $0x1838] sm:$0xff] }
 0x4a4   :  { %7938 = vmatprep.subr.bf16.mxu1 %v8844_v18  ;;  %v1245_v18 = vld [vmem:[#allocation8 + $0x1878] sm:$0xff]  ;;  %v8954_v21 = vcombine.high %v1236_v13, %v1244_v15 }
 0x4a5   :  { %v8956_v22 = vcombine.high %v1237_v16, %v1245_v18  ;;  %v8955_v0 = vcombine.low %v1237_v16, %v1245_v18  ;;  %v9033_v16 = vcombine.low %v1316_v52, %v1324_v54  ;;  %v1381_v54 = vld [vmem:[#allocation8 + $0x1cb8] sm:$0xff] }
 0x4a6   :  { %7775 = vmatpush1.bf16.msra.mxu0 %v8841_v23  ;;  %v1252_v23 = vld [vmem:[#allocation8 + $0x18b0] sm:$0xff] }
 0x4a7   :  { %7939 = vmatpush1.bf16.msra.mxu1 %v8843_v24  ;;  %7776 = vmatprep.subr.bf16.mxu0 %v8858_v28  ;;  %v1260_v24 = vld [vmem:[#allocation8 + $0x18f0] sm:$0xff]  ;;  %v8953_v28 = vcombine.low %v1236_v13, %v1244_v15 }
 0x4a8   :  { %7940 = vmatprep.subr.bf16.mxu1 %v8860_v29  ;;  %v1253_v29 = vld [vmem:[#allocation8 + $0x18b8] sm:$0xff]  ;;  %v8970_v30 = vcombine.high %v1252_v23, %v1260_v24  ;;  %v8969_v25 = vcombine.low %v1252_v23, %v1260_v24  ;;  %v1356_v23 = vld [vmem:[#allocation8 + $0x1bf0] sm:$0xff] }
 0x4a9   :  { %v8971_v35 = vcombine.low %v1253_v29, %v1261_v3 }
 0x4aa   :  { %7777 = vmatpush1.bf16.msra.mxu0 %v8857_v59  ;;  %v1276_v59 = vld [vmem:[#allocation8 + $0x1970] sm:$0xff] }
 0x4ab   :  { %7941 = vmatpush1.bf16.msra.mxu1 %v8859_v33  ;;  %7778 = vmatprep.subr.bf16.mxu0 %v8874_v61  ;;  %v8972_v33 = vcombine.high %v1253_v29, %v1261_v3  ;;  %v1269_v61 = vld [vmem:[#allocation8 + $0x1938] sm:$0xff]  ;;  %v8986_v37 = vcombine.high %v1268_v31, %v1276_v59  ;;  %v8985_v36 = vcombine.low %v1268_v31, %v1276_v59 }
 0x4ac   :  { %7942 = vmatprep.subr.bf16.mxu1 %v8876_v34  ;;  %v1277_v34 = vld [vmem:[#allocation8 + $0x1978] sm:$0xff] }
 0x4ad   :  { %v8988_v38 = vcombine.high %v1269_v61, %v1277_v34  ;;  %v1357_v3 = vld [vmem:[#allocation8 + $0x1bf8] sm:$0xff] }
 0x4ae   :  { %7779 = vmatpush1.bf16.msra.mxu0 %v8873_v39  ;;  %v1284_v39 = vld [vmem:[#allocation8 + $0x19b0] sm:$0xff] }
 0x4af   :  { %7943 = vmatpush1.bf16.msra.mxu1 %v8875_v40  ;;  %7780 = vmatprep.subr.bf16.mxu0 %v8890_v42  ;;  %v1292_v40 = vld [vmem:[#allocation8 + $0x19f0] sm:$0xff]  ;;  %v1285_v42 = vld [vmem:[#allocation8 + $0x19b8] sm:$0xff] }
 0x4b0   :  { %7944 = vmatprep.subr.bf16.mxu1 %v8892_v7  ;;  %v1293_v7 = vld [vmem:[#allocation8 + $0x19f8] sm:$0xff]  ;;  %v9002_v17 = vcombine.high %v1284_v39, %v1292_v40 }
 0x4b1   :  { %v9004_v44 = vcombine.high %v1285_v42, %v1293_v7 }
 0x4b2   :  { %7781 = vmatpush1.bf16.msra.mxu0 %v8889_v46  ;;  %v1308_v46 = vld [vmem:[#allocation8 + $0x1a70] sm:$0xff] }
 0x4b3   :  { %7945 = vmatpush1.bf16.msra.mxu1 %v8891_v9  ;;  %7782 = vmatprep.subr.bf16.mxu0 %v8906_v47  ;;  %v1301_v9 = vld [vmem:[#allocation8 + $0x1a38] sm:$0xff]  ;;  %v9018_v26 = vcombine.high %v1300_v45, %v1308_v46 }
 0x4b4   :  { %7946 = vmatprep.subr.bf16.mxu1 %v8908_v49  ;;  %v1309_v47 = vld [vmem:[#allocation8 + $0x1a78] sm:$0xff]  ;;  %v9003_v49 = vcombine.low %v1285_v42, %v1293_v7  ;;  %v1364_v42 = vld [vmem:[#allocation8 + $0x1c30] sm:$0xff] }
 0x4b5   :  { %v9020_v50 = vcombine.high %v1301_v9, %v1309_v47  ;;  %v9019_v58 = vcombine.low %v1301_v9, %v1309_v47  ;;  %v1372_v7 = vld [vmem:[#allocation8 + $0x1c70] sm:$0xff] }
 0x4b6   :  { %7783 = vmatpush1.bf16.msra.mxu0 %v8905_v27  ;;  %v1317_v27 = vld [vmem:[#allocation8 + $0x1ab8] sm:$0xff]  ;;  %v9082_v47 = vcombine.high %v1364_v42, %v1372_v7 }
 0x4b7   :  { %7947 = vmatpush1.bf16.msra.mxu1 %v8907_v55  ;;  %7784 = vmatprep.subr.bf16.mxu0 %v8922_v56  ;;  %v1325_v55 = vld [vmem:[#allocation8 + $0x1af8] sm:$0xff]  ;;  %v9017_v56 = vcombine.low %v1300_v45, %v1308_v46 }
 0x4b8   :  { %7948 = vmatprep.subr.bf16.mxu1 %v8924_v57  ;;  %v9771_v57 = vld [vmem:[#allocation10 + $0x8] sm:$0xff]  ;;  %v9036_v4 = vcombine.high %v1317_v27, %v1325_v55 }
 0x4b9   :  { %v1533_v13 = vrot.slane %v9771_v57, %v9657_v8  ;;  %v1529_v15 = vrot.slane %v9771_v57, %v9623_v62  ;;  %v1537_v18 = vrot.slane %v9771_v57, %v9628_v1  ;;  %v1349_v8 = vld [vmem:[#allocation8 + $0x1bb8] sm:$0xff] }
 0x4ba   :  { %7785 = vmatpush1.bf16.msra.mxu0 %v8921_v6  ;;  %v1340_v6 = vld [vmem:[#allocation8 + $0x1b70] sm:$0xff]  ;;  %v9067_v9 = vcombine.low %v1349_v8, %v1357_v3 }
 0x4bb   :  { %7949 = vmatpush1.bf16.msra.mxu1 %v8923_v10  ;;  %7786 = vmatprep.subr.bf16.mxu0 %v8938_v11  ;;  %v1525_v10 = vrot.slane %v9771_v57, %v9618_v60  ;;  %v1333_v11 = vld [vmem:[#allocation8 + $0x1b38] sm:$0xff]  ;;  %v9049_v59 = vcombine.low %v1332_v5, %v1340_v6 }
 0x4bc   :  { %7950 = vmatprep.subr.bf16.mxu1 %v8940_v12  ;;  %v1341_v12 = vld [vmem:[#allocation8 + $0x1b78] sm:$0xff] }
 0x4bd   :  { %v9052_v60 = vcombine.high %v1333_v11, %v1341_v12 }
 0x4be   :  { %7787 = vmatpush1.bf16.msra.mxu0 %v8937_v19  ;;  %v9035_v19 = vcombine.low %v1317_v27, %v1325_v55  ;;  %v1389_v27 = vld [vmem:[#allocation8 + $0x1cf8] sm:$0xff]  ;;  %v9081_v55 = vcombine.low %v1364_v42, %v1372_v7 }
 0x4bf   :  { %7951 = vmatpush1.bf16.msra.mxu1 %v8939_v53  ;;  %7797 = vmatprep.subr.bf16.mxu0 %v8954_v21  ;;  %v9050_v53 = vcombine.high %v1332_v5, %v1340_v6  ;;  %v1396_v5 = vld [vmem:[#allocation8 + $0x1d30] sm:$0xff]  ;;  %v1469_v42 = vld [vmem:[#allocation8 + $0x1f78] sm:$0xff] }
 0x4c0   :  { %7961 = vmatprep.subr.bf16.mxu1 %v8956_v22  ;;  %v1348_v22 = vld [vmem:[#allocation8 + $0x1bb0] sm:$0xff] }
 0x4c1   :  { %7789 = vmatmul.mubr.bf16.vlgmr.msra.gmra.mrb[16].mxu0 %v9688_v41  ;;  %v9065_v45 = vcombine.low %v1348_v22, %v1356_v23  ;;  %v1404_v6 = vld [vmem:[#allocation8 + $0x1d70] sm:$0xff] }
 0x4c2   :  { %7953 = vmatmul.mubr.bf16.vlgmr.msra.gmra.mrb[16].mxu1 %v9688_v41  ;;  %7798 = vmatpush1.bf16.msra.mxu0 %v8953_v28  ;;  %v8987_v41 = vcombine.low %v1269_v61, %v1277_v34 }
 0x4c3   :  { %7829 = vmatprep.mubr.bf16.mxu0 %v9690_v48  ;;  %7962 = vmatpush1.bf16.msra.mxu1 %v8955_v0 }
 0x4c4   :  { %7993 = vmatprep.mubr.bf16.mxu1 %v9690_v48  ;;  %7799 = vmatprep.subr.bf16.mxu0 %v8970_v30  ;;  %v9001_v48 = vcombine.low %v1284_v39, %v1292_v40  ;;  %v9068_v40 = vcombine.high %v1349_v8, %v1357_v3  ;;  %v1429_v8 = vld [vmem:[#allocation8 + $0x1e38] sm:$0xff] }
 0x4c5   :  { %7963 = vmatprep.subr.bf16.mxu1 %v8972_v33  ;;  %v1437_v3 = vld [vmem:[#allocation8 + $0x1e78] sm:$0xff] }
 0x4c6   :  { %7800 = vmatpush1.bf16.msra.mxu0 %v8969_v25  ;;  %v9051_v25 = vcombine.low %v1333_v11, %v1341_v12  ;;  %v1405_v11 = vld [vmem:[#allocation8 + $0x1d78] sm:$0xff] }
 0x4c7   :  { %7964 = vmatpush1.bf16.msra.mxu1 %v8971_v35  ;;  %7801 = vmatprep.subr.bf16.mxu0 %v8986_v37  ;;  %v9066_v35 = vcombine.high %v1348_v22, %v1356_v23 }
 0x4c8   :  { %7965 = vmatprep.subr.bf16.mxu1 %v8988_v38 }
 0x4ca   :  { %7802 = vmatpush1.bf16.msra.mxu0 %v8985_v36 }
 0x4cb   :  { %7966 = vmatpush1.bf16.msra.mxu1 %v8987_v41  ;;  %7803 = vmatprep.subr.bf16.mxu0 %v9002_v17  ;;  %v1365_v41 = vld [vmem:[#allocation8 + $0x1c38] sm:$0xff] }
 0x4cc   :  { %7967 = vmatprep.subr.bf16.mxu1 %v9004_v44  ;;  %v1373_v17 = vld [vmem:[#allocation8 + $0x1c78] sm:$0xff] }
 0x4ce   :  { %7804 = vmatpush1.bf16.msra.mxu0 %v9001_v48 }
 0x4cf   :  { %7968 = vmatpush1.bf16.msra.mxu1 %v9003_v49  ;;  %7805 = vmatprep.subr.bf16.mxu0 %v9018_v26  ;;  %v9084_v49 = vcombine.high %v1365_v41, %v1373_v17  ;;  %v1380_v26 = vld [vmem:[#allocation8 + $0x1cb0] sm:$0xff] }
 0x4d0   :  { %7969 = vmatprep.subr.bf16.mxu1 %v9020_v50  ;;  %v1388_v50 = vld [vmem:[#allocation8 + $0x1cf0] sm:$0xff] }
 0x4d1   :  { %v9097_v12 = vcombine.low %v1380_v26, %v1388_v50 }
 0x4d2   :  { %7806 = vmatpush1.bf16.msra.mxu0 %v9017_v56 }
 0x4d3   :  { %7970 = vmatpush1.bf16.msra.mxu1 %v9019_v58  ;;  %7807 = vmatprep.subr.bf16.mxu0 %v9034_v63  ;;  %v9083_v58 = vcombine.low %v1365_v41, %v1373_v17  ;;  %v9098_v63 = vcombine.high %v1380_v26, %v1388_v50 }
 0x4d4   :  { %v7503_v21 = vpop.f32.mrb[12].mxu0  ;;  %7971 = vmatprep.subr.bf16.mxu1 %v9036_v4  ;;  %v9100_v4 = vcombine.high %v1381_v54, %v1389_v27 }
 0x4d5   :  { %v9245_v24 = vadd.f32 %v7503_v21, %v1525_v10  ;;  %v7667_v28 = vpop.f32.mrb[12].mxu1  ;;  %v7505_v29 = vpop.f32.mrb[13].mxu0  ;;  %v1397_v10 = vld [vmem:[#allocation8 + $0x1d38] sm:$0xff] }
 0x4d6   :  { %v9247_v0 = vadd.f32 %v7667_v28, %v1533_v13  ;;  %v9246_v62 = vadd.f32 %v7505_v29, %v1529_v15  ;;  %v7669_v30 = vpop.f32.mrb[13].mxu1  ;;  %v7507_v31 = vpop.f32.mrb[14].mxu0  ;;  %7808 = vmatpush1.bf16.msra.mxu0 %v9033_v16  ;;  %v9099_v13 = vcombine.low %v1381_v54, %v1389_v27  ;;  %v9114_v15 = vcombine.high %v1396_v5, %v1404_v6  ;;  %v1421_v21 = vld [vmem:[#allocation8 + $0x1df8] sm:$0xff]  ;;  %v1428_v28 = vld [vmem:[#allocation8 + $0x1e30] sm:$0xff] }
 0x4d7   :  { %v8010_v1 = vmax.f32 %v9245_v24, 0.0  ;;  %v9248_v33 = vadd.f32 %v7669_v30, %v1537_v18  ;;  %v7671_v61 = vpop.f32.mrb[14].mxu1  ;;  %7972 = vmatpush1.bf16.msra.mxu1 %v9035_v19  ;;  %v7508_v34 = vpop.f32.mrb[15].mxu0  ;;  %7809 = vmatprep.subr.bf16.mxu0 %v9050_v53  ;;  %v9116_v16 = vcombine.high %v1397_v10, %v1405_v11  ;;  %v1412_v18 = vld [vmem:[#allocation8 + $0x1db0] sm:$0xff]  ;;  %v1413_v53 = vld [vmem:[#allocation8 + $0x1db8] sm:$0xff]  ;;  %v9115_v22 = vcombine.low %v1397_v10, %v1405_v11 }
 0x4d8   :  { %v8012_v37 = vmax.f32 %v9247_v0, 0.0  ;;  %v8011_v38 = vmax.f32 %v9246_v62, 0.0  ;;  %v7672_v39 = vpop.f32.mrb[15].mxu1  ;;  %7973 = vmatprep.subr.bf16.mxu1 %v9052_v60  ;;  %v1420_v19 = vld [vmem:[#allocation8 + $0x1df0] sm:$0xff]  ;;  %v9113_v60 = vcombine.low %v1396_v5, %v1404_v6  ;;  %v9132_v24 = vcombine.high %v1413_v53, %v1421_v21  ;;  %v1453_v61 = vld [vmem:[#allocation8 + $0x1ef8] sm:$0xff] }
 0x4d9   :  { %v8013_v36 = vmax.f32 %v9248_v33, 0.0  ;;  %v9130_v23 = vcombine.high %v1412_v18, %v1420_v19  ;;  %v1436_v29 = vld [vmem:[#allocation8 + $0x1e70] sm:$0xff]  ;;  %v9129_v0 = vcombine.low %v1412_v18, %v1420_v19  ;;  %v9131_v62 = vcombine.low %v1413_v53, %v1421_v21  ;;  %v1445_v33 = vld [vmem:[#allocation8 + $0x1eb8] sm:$0xff] }
 0x4da   :  { %v9201_v44 = vpack.c.bf16 %v8011_v38, %v8010_v1  ;;  %7810 = vmatpush1.bf16.msra.mxu0 %v9049_v59  ;;  %v9146_v30 = vcombine.high %v1428_v28, %v1436_v29  ;;  %v9148_v31 = vcombine.high %v1429_v8, %v1437_v3  ;;  %v1444_v59 = vld [vmem:[#allocation8 + $0x1eb0] sm:$0xff]  ;;  %v9145_v34 = vcombine.low %v1428_v28, %v1436_v29 }
 0x4db   :  { %v9202_v46 = vpack.c.bf16 %v8013_v36, %v8012_v37  ;;  %7974 = vmatpush1.bf16.msra.mxu1 %v9051_v25  ;;  %7811 = vmatprep.subr.bf16.mxu0 %v9066_v35  ;;  %v1452_v1 = vld [vmem:[#allocation8 + $0x1ef0] sm:$0xff]  ;;  %v9147_v25 = vcombine.low %v1429_v8, %v1437_v3  ;;  %v9164_v37 = vcombine.high %v1445_v33, %v1453_v61 }
 0x4dc   :  { %v8109_v48 = vrot.slane %v9201_v44, %v9724_v14  ;;  %7975 = vmatprep.subr.bf16.mxu1 %v9068_v40  ;;  %v9162_v35 = vcombine.high %v1444_v59, %v1452_v1  ;;  %v1460_v38 = vld [vmem:[#allocation8 + $0x1f30] sm:$0xff]  ;;  %v1461_v40 = vld [vmem:[#allocation8 + $0x1f38] sm:$0xff]  ;;  %v9161_v7 = vcombine.low %v1444_v59, %v1452_v1  ;;  %v9163_v36 = vcombine.low %v1445_v33, %v1453_v61 }
 0x4dd   :  { %v8116_v52 = vrot.slane %v9202_v46, %v9724_v14  ;;  %v1468_v39 = vld [vmem:[#allocation8 + $0x1f70] sm:$0xff]  ;;  %v9180_v17 = vcombine.high %v1461_v40, %v1469_v42  ;;  %v1477_v46 = vld [vmem:[#allocation8 + $0x1fb8] sm:$0xff]  ;;  %v1541_v54 = vrot.slane %v9771_v57, %v9677_v51  ;;  %v1549_v27 = vrot.slane %v9771_v57, %v9697_v43 }
 0x4de   :  { %7812 = vmatpush1.bf16.msra.mxu0 %v9065_v45  ;;  %v9178_v41 = vcombine.high %v1460_v38, %v1468_v39  ;;  %v1476_v44 = vld [vmem:[#allocation8 + $0x1fb0] sm:$0xff] }
 0x4df   :  { %v9783_v56 = vcombine.low %v8109_v48, %v8116_v52  ;;  %7976 = vmatpush1.bf16.msra.mxu1 %v9067_v9  ;;  %7813 = vmatprep.subr.bf16.mxu0 %v9082_v47  ;;  %v1484_v45 = vld [vmem:[#allocation8 + $0x1ff0] sm:$0xff]  ;;  %v1485_v9 = vld [vmem:[#allocation8 + $0x1ff8] sm:$0xff]  ;;  %v9177_v47 = vcombine.low %v1460_v38, %v1468_v39  ;;  %v9179_v48 = vcombine.low %v1461_v40, %v1469_v42 }
 0x4e0   :  { %7977 = vmatprep.subr.bf16.mxu1 %v9084_v49  ;;  %v9194_v49 = vcombine.high %v1476_v44, %v1484_v45  ;;  %v9196_v26 = vcombine.high %v1477_v46, %v1485_v9  ;;  %v9193_v50 = vcombine.low %v1476_v44, %v1484_v45  ;;  %v9195_v52 = vcombine.low %v1477_v46, %v1485_v9 }
 0x4e2   :  { %7814 = vmatpush1.bf16.msra.mxu0 %v9081_v55  ;;  %v1545_v55 = vrot.slane %v9771_v57, %v9660_v20 }
 0x4e3   :  { %7978 = vmatpush1.bf16.msra.mxu1 %v9083_v58  ;;  %7815 = vmatprep.subr.bf16.mxu0 %v9098_v63  ;;  %v1553_v58 = vrot.slane %v9771_v57, %v9680_v2 }
 0x4e4   :  { %7979 = vmatprep.subr.bf16.mxu1 %v9100_v4 }
 0x4e6   :  { %7816 = vmatpush1.bf16.msra.mxu0 %v9097_v12 }
 0x4e7   :  { %7980 = vmatpush1.bf16.msra.mxu1 %v9099_v13  ;;  %7817 = vmatprep.subr.bf16.mxu0 %v9114_v15 }
 0x4e8   :  { %7981 = vmatprep.subr.bf16.mxu1 %v9116_v16 }
 0x4ea   :  { %7818 = vmatpush1.bf16.msra.mxu0 %v9113_v60 }
 0x4eb   :  { %7982 = vmatpush1.bf16.msra.mxu1 %v9115_v22  ;;  %7819 = vmatprep.subr.bf16.mxu0 %v9130_v23  ;;  %v8139_v22 = vrot.slane %v9783_v56, %v9724_v14 }
 0x4ec   :  { %7983 = vmatprep.subr.bf16.mxu1 %v9132_v24 }
 0x4ee   :  { %7820 = vmatpush1.bf16.msra.mxu0 %v9129_v0 }
 0x4ef   :  { %7984 = vmatpush1.bf16.msra.mxu1 %v9131_v62  ;;  %7821 = vmatprep.subr.bf16.mxu0 %v9146_v30 }
 0x4f0   :  { %7985 = vmatprep.subr.bf16.mxu1 %v9148_v31 }
 0x4f2   :  { %7822 = vmatpush1.bf16.msra.mxu0 %v9145_v34 }
 0x4f3   :  { %7986 = vmatpush1.bf16.msra.mxu1 %v9147_v25  ;;  %7823 = vmatprep.subr.bf16.mxu0 %v9162_v35 }
 0x4f4   :  { %7987 = vmatprep.subr.bf16.mxu1 %v9164_v37 }
 0x4f6   :  { %7824 = vmatpush1.bf16.msra.mxu0 %v9161_v7 }
 0x4f7   :  { %7988 = vmatpush1.bf16.msra.mxu1 %v9163_v36  ;;  %7825 = vmatprep.subr.bf16.mxu0 %v9178_v41 }
 0x4f8   :  { %7989 = vmatprep.subr.bf16.mxu1 %v9180_v17 }
 0x4fa   :  { %7826 = vmatpush1.bf16.msra.mxu0 %v9177_v47 }
 0x4fb   :  { %7990 = vmatpush1.bf16.msra.mxu1 %v9179_v48  ;;  %7827 = vmatprep.subr.bf16.mxu0 %v9194_v49 }
 0x4fc   :  { %7991 = vmatprep.subr.bf16.mxu1 %v9196_v26 }
 0x4fe   :  { %7828 = vmatpush1.bf16.msra.mxu0 %v9193_v50 }
 0x4ff   :  { %7992 = vmatpush1.bf16.msra.mxu1 %v9195_v52 }
 0x501   :  { %7830 = vmatmul.mubr.bf16.vlgmr.msra.gmra.mrb[16].mxu0 %v9701_v32 }
 0x502   :  { %7994 = vmatmul.mubr.bf16.vlgmr.msra.gmra.mrb[16].mxu1 %v9701_v32 }
 0x5d4   :  { %v7831_v63 = vpop.f32.mrb[16].mxu0 }
 0x5d5   :  { %v9249_v4 = vadd.f32 %v7831_v63, %v1541_v54  ;;  %v7995_v5 = vpop.f32.mrb[16].mxu1  ;;  %v7833_v6 = vpop.f32.mrb[17].mxu0 }
 0x5d6   :  { %v9251_v10 = vadd.f32 %v7995_v5, %v1549_v27  ;;  %v9250_v11 = vadd.f32 %v7833_v6, %v1545_v55  ;;  %v7997_v12 = vpop.f32.mrb[17].mxu1  ;;  %v7835_v32 = vpop.f32.mrb[18].mxu0 }
 0x5d7   :  { %v8014_v13 = vmax.f32 %v9249_v4, 0.0  ;;  %v9252_v15 = vadd.f32 %v7997_v12, %v1553_v58  ;;  %v7999_v51 = vpop.f32.mrb[18].mxu1  ;;  %v7836_v16 = vpop.f32.mrb[19].mxu0 }
 0x5d8   :  { %v8016_v18 = vmax.f32 %v9251_v10, 0.0  ;;  %v8015_v43 = vmax.f32 %v9250_v11, 0.0  ;;  %v8000_v19 = vpop.f32.mrb[19].mxu1 }
 0x5d9   :  { %v8017_v53 = vmax.f32 %v9252_v15, 0.0 }
 0x5da   :  { %v9203_v20 = vpack.c.bf16 %v8015_v43, %v8014_v13 }
 0x5db   :  { %v9204_v21 = vpack.c.bf16 %v8017_v53, %v8016_v18 }
 0x5dc   :  { %v8123_v2 = vrot.slane %v9203_v20, %v9724_v14 }
 0x5dd   :  { %v8130_v57 = vrot.slane %v9204_v21, %v9724_v14 }
 0x5df   :  { %v8132_v60 = vcombine.low %v8123_v2, %v8130_v57 }
 0x5e1   :  { %v8146_v23 = vrot.slane %v8132_v60, %v9724_v14 }
 0x5e3   :  { %v8147_v24 = vcombine.low %v8139_v22, %v8146_v23 }
 0x5e5   :  { %8151 = vst [vmem:[#allocation11 + $0x8] sm:$0xff] %v8147_v24 }
 0x5e6   :  { %9482 = shalt.err (!%p9479_p2)
}
 0x5e7   :  { %s9483_s28 = scalar_lea.hbm %s9817_s5, 256 }
 0x5e8   :  { %p9484_p3 = scmp.ne.s32.totalorder %s9817_s5, %s9483_s28  ;;  %p9487_p4 = scmp.lt.u32.totalorder %s9483_s28, %s9817_s5 }
 0x5ea   :  { %p9489_p5 = pnand %p9487_p4, %p9484_p3 }
 0x5ec   :  { %9492 = shalt.err (!%p9489_p5)
}
 0x5ed   :  { %8161 = dma.vmem_to_hbm [thread:$0]  %s8159_s25, 256, %s9817_s5, [#allocation4]  }
 0x5ee   :  { %9499 = dma.done.wait [#allocation4], 256  }
 0x5ef   :  { %9500 = vsyncadd [#allocation4], 4294967040 }
 0x5f0   :  { %8165 = vsyncpa [#allocation3], 1 }
 0x5f1   :  { %8166 = vsyncpa [#allocation6], 1 }
 0x5f2   :  { %8167 = vsyncpa [#allocation9], 1 }
 0x5f3   :  { %8168 = vsyncpa [#allocation4], 1 }

</bundles_post_ra>
